<compile_context>
chip_gen: v5e
topology: v5e:2x2
jax: 0.10.0
libtpu: 0.0.40
codegen_flags: <defaults>
</compile_context>

<pallas_src>
import jax
import jax.numpy as jnp
from jax.experimental import pallas as pl
from jax.experimental.pallas import tpu as pltpu

HYPER_IN = 10    # hyper_input_dim
MLP_IN = 9       # mlp_input_dim
MLP_OUT = 8      # mlp_output_dim
HIDDEN = 128     # output_hidden_dim (reduced from 400 for a small, lane-aligned demo)
J = HYPER_IN + 1 # hyper input augmented with a ones column


def _hypermlp_kernel(hx_ref, mx_ref, w0_ref, w1_ref, wb1_ref, w2_ref, wb2_ref,
                     out_ref):
    hx = hx_ref[...]                                  # (tn, J)   f32, hx[:, -1] == 1
    mx = mx_ref[...]                                  # (tn, 10)  f32, mx[:, -1] == 1

    # ---- generated layer 0 : t0 = mx_aug @ W0, then 11-way hx contraction ----
    t0 = jnp.dot(mx.astype(jnp.bfloat16), w0_ref[...],
                 preferred_element_type=jnp.float32)  # (tn, J*HIDDEN)
    a0 = hx[:, 0:1] * t0[:, 0:HIDDEN]
    for j in range(1, J):
        a0 = a0 + hx[:, j:j + 1] * t0[:, j * HIDDEN:(j + 1) * HIDDEN]
    a0 = jnp.maximum(a0, 0.0)                         # (tn, HIDDEN)

    # ---- generated layer 1 : dense K=HIDDEN matmul, no (tn,128,128) weights ----
    t1 = jnp.dot(a0.astype(jnp.bfloat16), w1_ref[...],
                 preferred_element_type=jnp.float32)  # (tn, J*HIDDEN)
    acc = jnp.dot(hx, wb1_ref[...],
                  preferred_element_type=jnp.float32) # generated bias b1 (tn, HIDDEN)
    for j in range(J):
        acc = acc + hx[:, j:j + 1] * t1[:, j * HIDDEN:(j + 1) * HIDDEN]
    a1 = jnp.maximum(acc, 0.0)                        # (tn, HIDDEN)

    # ---- generated layer 2 (final, no ReLU) ----
    t2 = jnp.dot(a1.astype(jnp.bfloat16), w2_ref[...],
                 preferred_element_type=jnp.float32)  # (tn, J*MLP_OUT)
    acc2 = jnp.dot(hx, wb2_ref[...],
                   preferred_element_type=jnp.float32)  # generated bias b2 (tn, MLP_OUT)
    for j in range(J):
        acc2 = acc2 + hx[:, j:j + 1] * t2[:, j * MLP_OUT:(j + 1) * MLP_OUT]

    out_ref[...] = acc2.astype(out_ref.dtype)


def init_params(key):
    """torch init: Linear weights ~ U(-0.05, 0.05), biases = 0.
    Returns raw torch-layout params: [(Ww, bw, Wb, bb)] per generated layer,
    Ww: (d_in*d_out, HYPER_IN), bw: (d_in*d_out,), Wb: (d_out, HYPER_IN), bb: (d_out,)."""
    dims = [(MLP_IN, HIDDEN), (HIDDEN, HIDDEN), (HIDDEN, MLP_OUT)]
    keys = jax.random.split(key, 2 * len(dims))
    u = lambda k, shape: jax.random.uniform(k, shape, jnp.float32, -0.05, 0.05)
    params = []
    for l, (din, dout) in enumerate(dims):
        Ww = u(keys[2 * l], (din * dout, HYPER_IN))
        Wb = u(keys[2 * l + 1], (dout, HYPER_IN))
        bw = jnp.zeros((din * dout,), jnp.float32)
        bb = jnp.zeros((dout,), jnp.float32)
        params.append((Ww, bw, Wb, bb))
    return params


def pack_params(raw):
    """Rearrange hypernetwork Linears into kernel operands (all reshapes done
    here, in the wrapper, so the kernel body stays purely 2-D)."""
    (Ww0, bw0, Wb0, bb0), (Ww1, bw1, Wb1, bb1), (Ww2, bw2, Wb2, bb2) = raw

    # layer 0: W0[i, j*H + h]; i indexes mx_aug (MLP_IN + ones), j indexes hx_aug.
    W0 = jnp.zeros((MLP_IN + 1, J, HIDDEN), jnp.float32)
    W0 = W0.at[:MLP_IN, :HYPER_IN, :].set(
        Ww0.T.reshape(HYPER_IN, MLP_IN, HIDDEN).transpose(1, 0, 2))
    W0 = W0.at[MLP_IN, :HYPER_IN, :].set(Wb0.T)                       # generated b0
    W0 = W0.at[:MLP_IN, HYPER_IN, :].set(bw0.reshape(MLP_IN, HIDDEN)) # bias of w-Linear
    W0 = W0.at[MLP_IN, HYPER_IN, :].set(bb0)                          # bias of b-Linear
    W0 = W0.reshape(MLP_IN + 1, J * HIDDEN).astype(jnp.bfloat16)

    # layer 1: W1[h, j*H + k]
    W1 = jnp.zeros((HIDDEN, J, HIDDEN), jnp.float32)
    W1 = W1.at[:, :HYPER_IN, :].set(
        Ww1.T.reshape(HYPER_IN, HIDDEN, HIDDEN).transpose(1, 0, 2))
    W1 = W1.at[:, HYPER_IN, :].set(bw1.reshape(HIDDEN, HIDDEN))
    W1 = W1.reshape(HIDDEN, J * HIDDEN).astype(jnp.bfloat16)
    WB1a = jnp.concatenate([Wb1.T, bb1[None, :]], axis=0).astype(jnp.float32)  # (J, HIDDEN)

    # layer 2: W2[h, j*MLP_OUT + k]
    W2 = jnp.zeros((HIDDEN, J, MLP_OUT), jnp.float32)
    W2 = W2.at[:, :HYPER_IN, :].set(
        Ww2.T.reshape(HYPER_IN, HIDDEN, MLP_OUT).transpose(1, 0, 2))
    W2 = W2.at[:, HYPER_IN, :].set(bw2.reshape(HIDDEN, MLP_OUT))
    W2 = W2.reshape(HIDDEN, J * MLP_OUT).astype(jnp.bfloat16)
    WB2a = jnp.concatenate([Wb2.T, bb2[None, :]], axis=0).astype(jnp.float32)  # (J, MLP_OUT)

    return W0, W1, WB1a, W2, WB2a


def hyper_mlp_forward(hyper_x, mlp_x, raw_params, *, tile_n=128):
    x_shape = hyper_x.shape
    hx2d = hyper_x.reshape(-1, HYPER_IN).astype(jnp.float32)
    n = hx2d.shape[0]
    mx2d = mlp_x.reshape(n, MLP_IN).astype(jnp.float32)

    ones = jnp.ones((n, 1), jnp.float32)
    hx_aug = jnp.concatenate([hx2d, ones], axis=1)          # (n, J)
    mx_aug = jnp.concatenate([mx2d, ones], axis=1)          # (n, MLP_IN+1)

    # pad batch to a multiple of tile_n (padded rows discarded after the call)
    n_pad = pl.cdiv(n, tile_n) * tile_n
    if n_pad != n:
        hx_aug = jnp.pad(hx_aug, ((0, n_pad - n), (0, 0)))
        mx_aug = jnp.pad(mx_aug, ((0, n_pad - n), (0, 0)))

    W0, W1, WB1a, W2, WB2a = pack_params(raw_params)

    flops = 2 * n_pad * ((MLP_IN + 1) * J * HIDDEN          # layer-0 matmul
                         + HIDDEN * J * HIDDEN              # layer-1 matmul
                         + J * HIDDEN                       # layer-1 bias matmul
                         + HIDDEN * J * MLP_OUT             # layer-2 matmul
                         + J * MLP_OUT)                     # layer-2 bias matmul
    bytes_accessed = ((hx_aug.size + mx_aug.size) * 4
                      + (W0.size + W1.size + W2.size) * 2
                      + (WB1a.size + WB2a.size) * 4
                      + n_pad * MLP_OUT * 4)
    cost = pl.CostEstimate(flops=int(flops), transcendentals=0,
                           bytes_accessed=int(bytes_accessed))

    out = pl.pallas_call(
        _hypermlp_kernel,
        out_shape=jax.ShapeDtypeStruct((n_pad, MLP_OUT), jnp.float32),
        grid_spec=pltpu.PrefetchScalarGridSpec(
            num_scalar_prefetch=0,
            grid=(n_pad // tile_n,),
            in_specs=[
                pl.BlockSpec((tile_n, J), lambda i: (i, 0)),
                pl.BlockSpec((tile_n, MLP_IN + 1), lambda i: (i, 0)),
                # params: full arrays, constant index_map -> fetched once,
                # stays resident across grid steps.
                pl.BlockSpec(W0.shape, lambda i: (0, 0)),
                pl.BlockSpec(W1.shape, lambda i: (0, 0)),
                pl.BlockSpec(WB1a.shape, lambda i: (0, 0)),
                pl.BlockSpec(W2.shape, lambda i: (0, 0)),
                pl.BlockSpec(WB2a.shape, lambda i: (0, 0)),
            ],
            out_specs=pl.BlockSpec((tile_n, MLP_OUT), lambda i: (i, 0)),
        ),
        compiler_params=pltpu.CompilerParams(
            dimension_semantics=("parallel",),   # batch axis shards across v7x's 2 TCs
            vmem_limit_bytes=32 << 20,           # working set is ~3-4 MiB; leave headroom
        ),
        cost_estimate=cost,
    )(hx_aug, mx_aug, W0, W1, WB1a, W2, WB2a)

    out = out[:n]
    if len(x_shape) == 2:
        return out
    elif len(x_shape) == 3:
        return out.reshape(x_shape[0], x_shape[1], MLP_OUT)
    else:
        raise ValueError


def hyper_mlp_reference(hyper_x, mlp_x, raw):
    """Pure-JAX f32 reference mirroring the torch forward (raw torch-layout params)."""
    hx = hyper_x.reshape(-1, HYPER_IN).astype(jnp.float32)
    n = hx.shape[0]
    out = mlp_x.reshape(n, 1, MLP_IN).astype(jnp.float32)
    dims = [(MLP_IN, HIDDEN), (HIDDEN, HIDDEN), (HIDDEN, MLP_OUT)]
    for l, (din, dout) in enumerate(dims):
        Ww, bw, Wb, bb = raw[l]
        w = (hx @ Ww.T + bw).reshape(n, din, dout)
        b = (hx @ Wb.T + bb).reshape(n, 1, dout)
        out = jnp.einsum('nqi,nio->nqo', out, w) + b
        if l != len(dims) - 1:
            out = jnp.maximum(out, 0.0)
    return out.reshape(n, MLP_OUT)


if __name__ == "__main__":
    key = jax.random.PRNGKey(0)
    kp, kh, km = jax.random.split(key, 3)
    raw = init_params(kp)

    B, S = 4, 64                       # n = 256 -> grid of 2 tiles at tile_n=128
    hyper_x = jax.random.normal(kh, (B, S, HYPER_IN), jnp.float32)
    mlp_x = jax.random.normal(km, (B, S, MLP_IN), jnp.float32)

    out = jax.block_until_ready(hyper_mlp_forward(hyper_x, mlp_x, raw))
    assert out.shape == (B, S, MLP_OUT)

    ref = hyper_mlp_reference(hyper_x, mlp_x, raw).reshape(B, S, MLP_OUT)
    max_err = float(jnp.max(jnp.abs(out - ref)))
    # bf16 MXU operands with f32 accumulation vs an all-f32 reference.
    assert max_err < 2e-2, f"max abs err {max_err}"
    print("KERNEL_OK")
</pallas_src>

<mosaic_0001>
module attributes {stable_mosaic.version = 11 : i64} {
  func.func @_hypermlp_kernel(%arg0: i32, %arg1: memref<128x11xf32, #tpu.memory_space<vmem>>, %arg2: memref<128x10xf32, #tpu.memory_space<vmem>>, %arg3: memref<10x1408xbf16, #tpu.memory_space<vmem>>, %arg4: memref<128x1408xbf16, #tpu.memory_space<vmem>>, %arg5: memref<11x128xf32, #tpu.memory_space<vmem>>, %arg6: memref<128x88xbf16, #tpu.memory_space<vmem>>, %arg7: memref<11x8xf32, #tpu.memory_space<vmem>>, %arg8: memref<128x8xf32, #tpu.memory_space<vmem>>) attributes {dimension_semantics = [#tpu.dimension_semantics<parallel>], iteration_bounds = array<i64: 2>, scalar_prefetch = 0 : i64, scratch_operands = 0 : i64, tpu.core_type = #tpu.core_type<tc>, window_params = [{transform_indices = @transform_0, window_bounds = array<i64: 128, 11>}, {transform_indices = @transform_1, window_bounds = array<i64: 128, 10>}, {pipeline_mode = #tpu.pipeline_mode<synchronous>, transform_indices = @transform_2, window_bounds = array<i64: 10, 1408>}, {pipeline_mode = #tpu.pipeline_mode<synchronous>, transform_indices = @transform_3, window_bounds = array<i64: 128, 1408>}, {pipeline_mode = #tpu.pipeline_mode<synchronous>, transform_indices = @transform_4, window_bounds = array<i64: 11, 128>}, {pipeline_mode = #tpu.pipeline_mode<synchronous>, transform_indices = @transform_5, window_bounds = array<i64: 128, 88>}, {pipeline_mode = #tpu.pipeline_mode<synchronous>, transform_indices = @transform_6, window_bounds = array<i64: 11, 8>}, {transform_indices = @transform_7, window_bounds = array<i64: 128, 8>}]} {
    %c0 = arith.constant 0 : index
    %c0_0 = arith.constant 0 : index
    %0 = vector.load %arg1[%c0, %c0_0] : memref<128x11xf32, #tpu.memory_space<vmem>>, vector<128x11xf32>
    %c0_1 = arith.constant 0 : index
    %c0_2 = arith.constant 0 : index
    %1 = vector.load %arg2[%c0_1, %c0_2] : memref<128x10xf32, #tpu.memory_space<vmem>>, vector<128x10xf32>
    %2 = arith.truncf %1 : vector<128x10xf32> to vector<128x10xbf16>
    %c0_3 = arith.constant 0 : index
    %c0_4 = arith.constant 0 : index
    %3 = vector.load %arg3[%c0_3, %c0_4] : memref<10x1408xbf16, #tpu.memory_space<vmem>>, vector<10x1408xbf16>
    %cst = arith.constant dense<0.000000e+00> : vector<128x1408xf32>
    %4 = tpu.matmul %2, %3, %cst {dimension_numbers = #tpu.dot_dimension_numbers<[1], [0], [0], [1], [0, 0, 1, 1], [], []>} : vector<128x10xbf16>, vector<10x1408xbf16>, vector<128x1408xf32> -> vector<128x1408xf32>
    %5 = vector.extract_strided_slice %0 {offsets = [0, 0], sizes = [128, 1], strides = [1, 1]} : vector<128x11xf32> to vector<128x1xf32>
    %6 = vector.extract_strided_slice %4 {offsets = [0, 0], sizes = [128, 128], strides = [1, 1]} : vector<128x1408xf32> to vector<128x128xf32>
    %7 = vector.broadcast %5 : vector<128x1xf32> to vector<128x128xf32>
    %8 = arith.mulf %7, %6 : vector<128x128xf32>
    %9 = vector.extract_strided_slice %0 {offsets = [0, 1], sizes = [128, 1], strides = [1, 1]} : vector<128x11xf32> to vector<128x1xf32>
    %10 = vector.extract_strided_slice %4 {offsets = [0, 128], sizes = [128, 128], strides = [1, 1]} : vector<128x1408xf32> to vector<128x128xf32>
    %11 = vector.broadcast %9 : vector<128x1xf32> to vector<128x128xf32>
    %12 = arith.mulf %11, %10 : vector<128x128xf32>
    %13 = arith.addf %8, %12 : vector<128x128xf32>
    %14 = vector.extract_strided_slice %0 {offsets = [0, 2], sizes = [128, 1], strides = [1, 1]} : vector<128x11xf32> to vector<128x1xf32>
    %15 = vector.extract_strided_slice %4 {offsets = [0, 256], sizes = [128, 128], strides = [1, 1]} : vector<128x1408xf32> to vector<128x128xf32>
    %16 = vector.broadcast %14 : vector<128x1xf32> to vector<128x128xf32>
    %17 = arith.mulf %16, %15 : vector<128x128xf32>
    %18 = arith.addf %13, %17 : vector<128x128xf32>
    %19 = vector.extract_strided_slice %0 {offsets = [0, 3], sizes = [128, 1], strides = [1, 1]} : vector<128x11xf32> to vector<128x1xf32>
    %20 = vector.extract_strided_slice %4 {offsets = [0, 384], sizes = [128, 128], strides = [1, 1]} : vector<128x1408xf32> to vector<128x128xf32>
    %21 = vector.broadcast %19 : vector<128x1xf32> to vector<128x128xf32>
    %22 = arith.mulf %21, %20 : vector<128x128xf32>
    %23 = arith.addf %18, %22 : vector<128x128xf32>
    %24 = vector.extract_strided_slice %0 {offsets = [0, 4], sizes = [128, 1], strides = [1, 1]} : vector<128x11xf32> to vector<128x1xf32>
    %25 = vector.extract_strided_slice %4 {offsets = [0, 512], sizes = [128, 128], strides = [1, 1]} : vector<128x1408xf32> to vector<128x128xf32>
    %26 = vector.broadcast %24 : vector<128x1xf32> to vector<128x128xf32>
    %27 = arith.mulf %26, %25 : vector<128x128xf32>
    %28 = arith.addf %23, %27 : vector<128x128xf32>
    %29 = vector.extract_strided_slice %0 {offsets = [0, 5], sizes = [128, 1], strides = [1, 1]} : vector<128x11xf32> to vector<128x1xf32>
    %30 = vector.extract_strided_slice %4 {offsets = [0, 640], sizes = [128, 128], strides = [1, 1]} : vector<128x1408xf32> to vector<128x128xf32>
    %31 = vector.broadcast %29 : vector<128x1xf32> to vector<128x128xf32>
    %32 = arith.mulf %31, %30 : vector<128x128xf32>
    %33 = arith.addf %28, %32 : vector<128x128xf32>
    %34 = vector.extract_strided_slice %0 {offsets = [0, 6], sizes = [128, 1], strides = [1, 1]} : vector<128x11xf32> to vector<128x1xf32>
    %35 = vector.extract_strided_slice %4 {offsets = [0, 768], sizes = [128, 128], strides = [1, 1]} : vector<128x1408xf32> to vector<128x128xf32>
    %36 = vector.broadcast %34 : vector<128x1xf32> to vector<128x128xf32>
    %37 = arith.mulf %36, %35 : vector<128x128xf32>
    %38 = arith.addf %33, %37 : vector<128x128xf32>
    %39 = vector.extract_strided_slice %0 {offsets = [0, 7], sizes = [128, 1], strides = [1, 1]} : vector<128x11xf32> to vector<128x1xf32>
    %40 = vector.extract_strided_slice %4 {offsets = [0, 896], sizes = [128, 128], strides = [1, 1]} : vector<128x1408xf32> to vector<128x128xf32>
    %41 = vector.broadcast %39 : vector<128x1xf32> to vector<128x128xf32>
    %42 = arith.mulf %41, %40 : vector<128x128xf32>
    %43 = arith.addf %38, %42 : vector<128x128xf32>
    %44 = vector.extract_strided_slice %0 {offsets = [0, 8], sizes = [128, 1], strides = [1, 1]} : vector<128x11xf32> to vector<128x1xf32>
    %45 = vector.extract_strided_slice %4 {offsets = [0, 1024], sizes = [128, 128], strides = [1, 1]} : vector<128x1408xf32> to vector<128x128xf32>
    %46 = vector.broadcast %44 : vector<128x1xf32> to vector<128x128xf32>
    %47 = arith.mulf %46, %45 : vector<128x128xf32>
    %48 = arith.addf %43, %47 : vector<128x128xf32>
    %49 = vector.extract_strided_slice %0 {offsets = [0, 9], sizes = [128, 1], strides = [1, 1]} : vector<128x11xf32> to vector<128x1xf32>
    %50 = vector.extract_strided_slice %4 {offsets = [0, 1152], sizes = [128, 128], strides = [1, 1]} : vector<128x1408xf32> to vector<128x128xf32>
    %51 = vector.broadcast %49 : vector<128x1xf32> to vector<128x128xf32>
    %52 = arith.mulf %51, %50 : vector<128x128xf32>
    %53 = arith.addf %48, %52 : vector<128x128xf32>
    %54 = vector.extract_strided_slice %0 {offsets = [0, 10], sizes = [128, 1], strides = [1, 1]} : vector<128x11xf32> to vector<128x1xf32>
    %55 = vector.extract_strided_slice %4 {offsets = [0, 1280], sizes = [128, 128], strides = [1, 1]} : vector<128x1408xf32> to vector<128x128xf32>
    %56 = vector.broadcast %54 : vector<128x1xf32> to vector<128x128xf32>
    %57 = arith.mulf %56, %55 : vector<128x128xf32>
    %58 = arith.addf %53, %57 : vector<128x128xf32>
    %cst_5 = arith.constant 0.000000e+00 : f32
    %59 = vector.broadcast %cst_5 : f32 to vector<128x128xf32>
    %60 = arith.maximumf %58, %59 : vector<128x128xf32>
    %61 = arith.truncf %60 : vector<128x128xf32> to vector<128x128xbf16>
    %c0_6 = arith.constant 0 : index
    %c0_7 = arith.constant 0 : index
    %62 = vector.load %arg4[%c0_6, %c0_7] : memref<128x1408xbf16, #tpu.memory_space<vmem>>, vector<128x1408xbf16>
    %cst_8 = arith.constant dense<0.000000e+00> : vector<128x1408xf32>
    %63 = tpu.matmul %61, %62, %cst_8 {dimension_numbers = #tpu.dot_dimension_numbers<[1], [0], [0], [1], [0, 0, 1, 1], [], []>} : vector<128x128xbf16>, vector<128x1408xbf16>, vector<128x1408xf32> -> vector<128x1408xf32>
    %c0_9 = arith.constant 0 : index
    %c0_10 = arith.constant 0 : index
    %64 = vector.load %arg5[%c0_9, %c0_10] : memref<11x128xf32, #tpu.memory_space<vmem>>, vector<11x128xf32>
    %cst_11 = arith.constant dense<0.000000e+00> : vector<128x128xf32>
    %65 = tpu.matmul %0, %64, %cst_11 {dimension_numbers = #tpu.dot_dimension_numbers<[1], [0], [0], [1], [0, 0, 1, 1], [], []>} : vector<128x11xf32>, vector<11x128xf32>, vector<128x128xf32> -> vector<128x128xf32>
    %66 = vector.extract_strided_slice %0 {offsets = [0, 0], sizes = [128, 1], strides = [1, 1]} : vector<128x11xf32> to vector<128x1xf32>
    %67 = vector.extract_strided_slice %63 {offsets = [0, 0], sizes = [128, 128], strides = [1, 1]} : vector<128x1408xf32> to vector<128x128xf32>
    %68 = vector.broadcast %66 : vector<128x1xf32> to vector<128x128xf32>
    %69 = arith.mulf %68, %67 : vector<128x128xf32>
    %70 = arith.addf %65, %69 : vector<128x128xf32>
    %71 = vector.extract_strided_slice %0 {offsets = [0, 1], sizes = [128, 1], strides = [1, 1]} : vector<128x11xf32> to vector<128x1xf32>
    %72 = vector.extract_strided_slice %63 {offsets = [0, 128], sizes = [128, 128], strides = [1, 1]} : vector<128x1408xf32> to vector<128x128xf32>
    %73 = vector.broadcast %71 : vector<128x1xf32> to vector<128x128xf32>
    %74 = arith.mulf %73, %72 : vector<128x128xf32>
    %75 = arith.addf %70, %74 : vector<128x128xf32>
    %76 = vector.extract_strided_slice %0 {offsets = [0, 2], sizes = [128, 1], strides = [1, 1]} : vector<128x11xf32> to vector<128x1xf32>
    %77 = vector.extract_strided_slice %63 {offsets = [0, 256], sizes = [128, 128], strides = [1, 1]} : vector<128x1408xf32> to vector<128x128xf32>
    %78 = vector.broadcast %76 : vector<128x1xf32> to vector<128x128xf32>
    %79 = arith.mulf %78, %77 : vector<128x128xf32>
    %80 = arith.addf %75, %79 : vector<128x128xf32>
    %81 = vector.extract_strided_slice %0 {offsets = [0, 3], sizes = [128, 1], strides = [1, 1]} : vector<128x11xf32> to vector<128x1xf32>
    %82 = vector.extract_strided_slice %63 {offsets = [0, 384], sizes = [128, 128], strides = [1, 1]} : vector<128x1408xf32> to vector<128x128xf32>
    %83 = vector.broadcast %81 : vector<128x1xf32> to vector<128x128xf32>
    %84 = arith.mulf %83, %82 : vector<128x128xf32>
    %85 = arith.addf %80, %84 : vector<128x128xf32>
    %86 = vector.extract_strided_slice %0 {offsets = [0, 4], sizes = [128, 1], strides = [1, 1]} : vector<128x11xf32> to vector<128x1xf32>
    %87 = vector.extract_strided_slice %63 {offsets = [0, 512], sizes = [128, 128], strides = [1, 1]} : vector<128x1408xf32> to vector<128x128xf32>
    %88 = vector.broadcast %86 : vector<128x1xf32> to vector<128x128xf32>
    %89 = arith.mulf %88, %87 : vector<128x128xf32>
    %90 = arith.addf %85, %89 : vector<128x128xf32>
    %91 = vector.extract_strided_slice %0 {offsets = [0, 5], sizes = [128, 1], strides = [1, 1]} : vector<128x11xf32> to vector<128x1xf32>
    %92 = vector.extract_strided_slice %63 {offsets = [0, 640], sizes = [128, 128], strides = [1, 1]} : vector<128x1408xf32> to vector<128x128xf32>
    %93 = vector.broadcast %91 : vector<128x1xf32> to vector<128x128xf32>
    %94 = arith.mulf %93, %92 : vector<128x128xf32>
    %95 = arith.addf %90, %94 : vector<128x128xf32>
    %96 = vector.extract_strided_slice %0 {offsets = [0, 6], sizes = [128, 1], strides = [1, 1]} : vector<128x11xf32> to vector<128x1xf32>
    %97 = vector.extract_strided_slice %63 {offsets = [0, 768], sizes = [128, 128], strides = [1, 1]} : vector<128x1408xf32> to vector<128x128xf32>
    %98 = vector.broadcast %96 : vector<128x1xf32> to vector<128x128xf32>
    %99 = arith.mulf %98, %97 : vector<128x128xf32>
    %100 = arith.addf %95, %99 : vector<128x128xf32>
    %101 = vector.extract_strided_slice %0 {offsets = [0, 7], sizes = [128, 1], strides = [1, 1]} : vector<128x11xf32> to vector<128x1xf32>
    %102 = vector.extract_strided_slice %63 {offsets = [0, 896], sizes = [128, 128], strides = [1, 1]} : vector<128x1408xf32> to vector<128x128xf32>
    %103 = vector.broadcast %101 : vector<128x1xf32> to vector<128x128xf32>
    %104 = arith.mulf %103, %102 : vector<128x128xf32>
    %105 = arith.addf %100, %104 : vector<128x128xf32>
    %106 = vector.extract_strided_slice %0 {offsets = [0, 8], sizes = [128, 1], strides = [1, 1]} : vector<128x11xf32> to vector<128x1xf32>
    %107 = vector.extract_strided_slice %63 {offsets = [0, 1024], sizes = [128, 128], strides = [1, 1]} : vector<128x1408xf32> to vector<128x128xf32>
    %108 = vector.broadcast %106 : vector<128x1xf32> to vector<128x128xf32>
    %109 = arith.mulf %108, %107 : vector<128x128xf32>
    %110 = arith.addf %105, %109 : vector<128x128xf32>
    %111 = vector.extract_strided_slice %0 {offsets = [0, 9], sizes = [128, 1], strides = [1, 1]} : vector<128x11xf32> to vector<128x1xf32>
    %112 = vector.extract_strided_slice %63 {offsets = [0, 1152], sizes = [128, 128], strides = [1, 1]} : vector<128x1408xf32> to vector<128x128xf32>
    %113 = vector.broadcast %111 : vector<128x1xf32> to vector<128x128xf32>
    %114 = arith.mulf %113, %112 : vector<128x128xf32>
    %115 = arith.addf %110, %114 : vector<128x128xf32>
    %116 = vector.extract_strided_slice %0 {offsets = [0, 10], sizes = [128, 1], strides = [1, 1]} : vector<128x11xf32> to vector<128x1xf32>
    %117 = vector.extract_strided_slice %63 {offsets = [0, 1280], sizes = [128, 128], strides = [1, 1]} : vector<128x1408xf32> to vector<128x128xf32>
    %118 = vector.broadcast %116 : vector<128x1xf32> to vector<128x128xf32>
    %119 = arith.mulf %118, %117 : vector<128x128xf32>
    %120 = arith.addf %115, %119 : vector<128x128xf32>
    %cst_12 = arith.constant 0.000000e+00 : f32
    %121 = vector.broadcast %cst_12 : f32 to vector<128x128xf32>
    %122 = arith.maximumf %120, %121 : vector<128x128xf32>
    %123 = arith.truncf %122 : vector<128x128xf32> to vector<128x128xbf16>
    %c0_13 = arith.constant 0 : index
    %c0_14 = arith.constant 0 : index
    %124 = vector.load %arg6[%c0_13, %c0_14] : memref<128x88xbf16, #tpu.memory_space<vmem>>, vector<128x88xbf16>
    %cst_15 = arith.constant dense<0.000000e+00> : vector<128x88xf32>
    %125 = tpu.matmul %123, %124, %cst_15 {dimension_numbers = #tpu.dot_dimension_numbers<[1], [0], [0], [1], [0, 0, 1, 1], [], []>} : vector<128x128xbf16>, vector<128x88xbf16>, vector<128x88xf32> -> vector<128x88xf32>
    %c0_16 = arith.constant 0 : index
    %c0_17 = arith.constant 0 : index
    %126 = vector.load %arg7[%c0_16, %c0_17] : memref<11x8xf32, #tpu.memory_space<vmem>>, vector<11x8xf32>
    %cst_18 = arith.constant dense<0.000000e+00> : vector<128x8xf32>
    %127 = tpu.matmul %0, %126, %cst_18 {dimension_numbers = #tpu.dot_dimension_numbers<[1], [0], [0], [1], [0, 0, 1, 1], [], []>} : vector<128x11xf32>, vector<11x8xf32>, vector<128x8xf32> -> vector<128x8xf32>
    %128 = vector.extract_strided_slice %0 {offsets = [0, 0], sizes = [128, 1], strides = [1, 1]} : vector<128x11xf32> to vector<128x1xf32>
    %129 = vector.extract_strided_slice %125 {offsets = [0, 0], sizes = [128, 8], strides = [1, 1]} : vector<128x88xf32> to vector<128x8xf32>
    %130 = vector.broadcast %128 : vector<128x1xf32> to vector<128x8xf32>
    %131 = arith.mulf %130, %129 : vector<128x8xf32>
    %132 = arith.addf %127, %131 : vector<128x8xf32>
    %133 = vector.extract_strided_slice %0 {offsets = [0, 1], sizes = [128, 1], strides = [1, 1]} : vector<128x11xf32> to vector<128x1xf32>
    %134 = vector.extract_strided_slice %125 {offsets = [0, 8], sizes = [128, 8], strides = [1, 1]} : vector<128x88xf32> to vector<128x8xf32>
    %135 = vector.broadcast %133 : vector<128x1xf32> to vector<128x8xf32>
    %136 = arith.mulf %135, %134 : vector<128x8xf32>
    %137 = arith.addf %132, %136 : vector<128x8xf32>
    %138 = vector.extract_strided_slice %0 {offsets = [0, 2], sizes = [128, 1], strides = [1, 1]} : vector<128x11xf32> to vector<128x1xf32>
    %139 = vector.extract_strided_slice %125 {offsets = [0, 16], sizes = [128, 8], strides = [1, 1]} : vector<128x88xf32> to vector<128x8xf32>
    %140 = vector.broadcast %138 : vector<128x1xf32> to vector<128x8xf32>
    %141 = arith.mulf %140, %139 : vector<128x8xf32>
    %142 = arith.addf %137, %141 : vector<128x8xf32>
    %143 = vector.extract_strided_slice %0 {offsets = [0, 3], sizes = [128, 1], strides = [1, 1]} : vector<128x11xf32> to vector<128x1xf32>
    %144 = vector.extract_strided_slice %125 {offsets = [0, 24], sizes = [128, 8], strides = [1, 1]} : vector<128x88xf32> to vector<128x8xf32>
    %145 = vector.broadcast %143 : vector<128x1xf32> to vector<128x8xf32>
    %146 = arith.mulf %145, %144 : vector<128x8xf32>
    %147 = arith.addf %142, %146 : vector<128x8xf32>
    %148 = vector.extract_strided_slice %0 {offsets = [0, 4], sizes = [128, 1], strides = [1, 1]} : vector<128x11xf32> to vector<128x1xf32>
    %149 = vector.extract_strided_slice %125 {offsets = [0, 32], sizes = [128, 8], strides = [1, 1]} : vector<128x88xf32> to vector<128x8xf32>
    %150 = vector.broadcast %148 : vector<128x1xf32> to vector<128x8xf32>
    %151 = arith.mulf %150, %149 : vector<128x8xf32>
    %152 = arith.addf %147, %151 : vector<128x8xf32>
    %153 = vector.extract_strided_slice %0 {offsets = [0, 5], sizes = [128, 1], strides = [1, 1]} : vector<128x11xf32> to vector<128x1xf32>
    %154 = vector.extract_strided_slice %125 {offsets = [0, 40], sizes = [128, 8], strides = [1, 1]} : vector<128x88xf32> to vector<128x8xf32>
    %155 = vector.broadcast %153 : vector<128x1xf32> to vector<128x8xf32>
    %156 = arith.mulf %155, %154 : vector<128x8xf32>
    %157 = arith.addf %152, %156 : vector<128x8xf32>
    %158 = vector.extract_strided_slice %0 {offsets = [0, 6], sizes = [128, 1], strides = [1, 1]} : vector<128x11xf32> to vector<128x1xf32>
    %159 = vector.extract_strided_slice %125 {offsets = [0, 48], sizes = [128, 8], strides = [1, 1]} : vector<128x88xf32> to vector<128x8xf32>
    %160 = vector.broadcast %158 : vector<128x1xf32> to vector<128x8xf32>
    %161 = arith.mulf %160, %159 : vector<128x8xf32>
    %162 = arith.addf %157, %161 : vector<128x8xf32>
    %163 = vector.extract_strided_slice %0 {offsets = [0, 7], sizes = [128, 1], strides = [1, 1]} : vector<128x11xf32> to vector<128x1xf32>
    %164 = vector.extract_strided_slice %125 {offsets = [0, 56], sizes = [128, 8], strides = [1, 1]} : vector<128x88xf32> to vector<128x8xf32>
    %165 = vector.broadcast %163 : vector<128x1xf32> to vector<128x8xf32>
    %166 = arith.mulf %165, %164 : vector<128x8xf32>
    %167 = arith.addf %162, %166 : vector<128x8xf32>
    %168 = vector.extract_strided_slice %0 {offsets = [0, 8], sizes = [128, 1], strides = [1, 1]} : vector<128x11xf32> to vector<128x1xf32>
    %169 = vector.extract_strided_slice %125 {offsets = [0, 64], sizes = [128, 8], strides = [1, 1]} : vector<128x88xf32> to vector<128x8xf32>
    %170 = vector.broadcast %168 : vector<128x1xf32> to vector<128x8xf32>
    %171 = arith.mulf %170, %169 : vector<128x8xf32>
    %172 = arith.addf %167, %171 : vector<128x8xf32>
    %173 = vector.extract_strided_slice %0 {offsets = [0, 9], sizes = [128, 1], strides = [1, 1]} : vector<128x11xf32> to vector<128x1xf32>
    %174 = vector.extract_strided_slice %125 {offsets = [0, 72], sizes = [128, 8], strides = [1, 1]} : vector<128x88xf32> to vector<128x8xf32>
    %175 = vector.broadcast %173 : vector<128x1xf32> to vector<128x8xf32>
    %176 = arith.mulf %175, %174 : vector<128x8xf32>
    %177 = arith.addf %172, %176 : vector<128x8xf32>
    %178 = vector.extract_strided_slice %0 {offsets = [0, 10], sizes = [128, 1], strides = [1, 1]} : vector<128x11xf32> to vector<128x1xf32>
    %179 = vector.extract_strided_slice %125 {offsets = [0, 80], sizes = [128, 8], strides = [1, 1]} : vector<128x88xf32> to vector<128x8xf32>
    %180 = vector.broadcast %178 : vector<128x1xf32> to vector<128x8xf32>
    %181 = arith.mulf %180, %179 : vector<128x8xf32>
    %182 = arith.addf %177, %181 : vector<128x8xf32>
    %c0_19 = arith.constant 0 : index
    %c0_20 = arith.constant 0 : index
    %183 = vector.load %arg8[%c0_19, %c0_20] : memref<128x8xf32, #tpu.memory_space<vmem>>, vector<128x8xf32>
    tpu.vector_store %arg8[%c0_19, %c0_20], %182 {strides = array<i32>} : memref<128x8xf32, #tpu.memory_space<vmem>>, vector<128x8xf32>,
    return
  }
  func.func @transform_0(%arg0: i32) -> (i32, i32) {
    %c0_i32 = arith.constant 0 : i32
    %c0_i32_0 = arith.constant 0 : i32
    return %arg0, %c0_i32 : i32, i32
  }
  func.func @transform_1(%arg0: i32) -> (i32, i32) {
    %c0_i32 = arith.constant 0 : i32
    %c0_i32_0 = arith.constant 0 : i32
    return %arg0, %c0_i32 : i32, i32
  }
  func.func @transform_2(%arg0: i32) -> (i32, i32) {
    %c0_i32 = arith.constant 0 : i32
    %c0_i32_0 = arith.constant 0 : i32
    %c0_i32_1 = arith.constant 0 : i32
    return %c0_i32, %c0_i32_0 : i32, i32
  }
  func.func @transform_3(%arg0: i32) -> (i32, i32) {
    %c0_i32 = arith.constant 0 : i32
    %c0_i32_0 = arith.constant 0 : i32
    %c0_i32_1 = arith.constant 0 : i32
    return %c0_i32, %c0_i32_0 : i32, i32
  }
  func.func @transform_4(%arg0: i32) -> (i32, i32) {
    %c0_i32 = arith.constant 0 : i32
    %c0_i32_0 = arith.constant 0 : i32
    %c0_i32_1 = arith.constant 0 : i32
    return %c0_i32, %c0_i32_0 : i32, i32
  }
  func.func @transform_5(%arg0: i32) -> (i32, i32) {
    %c0_i32 = arith.constant 0 : i32
    %c0_i32_0 = arith.constant 0 : i32
    %c0_i32_1 = arith.constant 0 : i32
    return %c0_i32, %c0_i32_0 : i32, i32
  }
  func.func @transform_6(%arg0: i32) -> (i32, i32) {
    %c0_i32 = arith.constant 0 : i32
    %c0_i32_0 = arith.constant 0 : i32
    %c0_i32_1 = arith.constant 0 : i32
    return %c0_i32, %c0_i32_0 : i32, i32
  }
  func.func @transform_7(%arg0: i32) -> (i32, i32) {
    %c0_i32 = arith.constant 0 : i32
    %c0_i32_0 = arith.constant 0 : i32
    return %arg0, %c0_i32 : i32, i32
  }
}

</mosaic_0001>

<bundles_post_ra>
// kernel: tpu_custom_call.1
= control target key start
LH: loop header
LB: loop body
LE: loop exit
PB: predicated region body
PF: predicated region fallthrough
CT: control target
= control target key end

     0   :  { %12 = vsyncpa [#allocation3], 0  ;;  %s9318_s0 = inlined_call_operand.vmem [shape: f32[256,11], index: 0, kind: input, shape index: {}]   ;;  %s9319_s1 = inlined_call_operand.vmem [shape: f32[256,10], index: 1, kind: input, shape index: {}]   ;;  %s9320_s2 = inlined_call_operand.hbm [shape: bf16[10,1408], index: 2, kind: input, shape index: {}]   ;;  %s9321_s3 = inlined_call_operand.vmem [shape: bf16[128,1408], index: 3, kind: input, shape index: {}]   ;;  %s9322_s4 = inlined_call_operand.hbm [shape: f32[11,128], index: 4, kind: input, shape index: {}]   ;;  %s9323_s5 = inlined_call_operand.vmem [shape: bf16[128,88], index: 5, kind: input, shape index: {}]   ;;  %s9324_s6 = inlined_call_operand.vmem [shape: f32[11,8], index: 6, kind: input, shape index: {}]   ;;  %s9325_s7 = inlined_call_operand.vmem [shape: f32[256,8], index: 7, kind: output, shape index: {}]  }
   0x1   :  { %13 = vsyncpa [#allocation5], 0  ;;  %s5905_s24 = smov 0  }
   0x2 LB: > { %s218_s27 = sshll.u32 %s9320_s2, 4  ;;  %s4927_s28 = sadd.s32 4294967295, %s5836_s24   ;;  %s5836_s24 = sphi %s5905_s24, %s19_s24   ;;  %s219_s27 = int_to_ptr.hbm [resolvable:$true] %s218_s27 }
   0x3   : > { %p4929_p0 = scmp.ge.s32.totalorder %s5836_s24, 1  ;;  %p207_p1 = scmp.lt.s32.totalorder %s5836_s24, 3 }
   0x4   : > { %p5916_p2 = scmp.eq.s32.totalorder %s4927_s28, 0  ;;  %s5838_s8 = smov [#allocation2]  }
   0x5   : > { %p5920_p3 = pnand %p4929_p0, %p207_p1  ;;  %s220_s9 = sshll.u32 %s5838_s8, 4  ;;  %s221_s9 = int_to_ptr.vmem [resolvable:$true] %s220_s9 }
   0x6   : > { %s235_s12 = sshll.u32 %s9322_s4, 4  ;;  %s5839_s13 = smov [#allocation4]   ;;  %s236_s12 = int_to_ptr.hbm [resolvable:$true] %s235_s12 }
   0x7   : > { %p5612_p4 = pneg %p5920_p3  ;;  %s237_s14 = sshll.u32 %s5839_s13, 4  ;;  %s238_s14 = int_to_ptr.vmem [resolvable:$true] %s237_s14 }
   0x8   : > { %s5840_s15 = smov 704   ;;  %s5841_s16 = smov 44  }
   0x9   : > { %p5613_p5 = pnand %p5916_p2, %p5612_p4  ;;  %s5842_s17 = smov 128  }
   0xa   : > { %s5843_s18 = smov 8   ;;  %277 = sbr.rel (%p5920_p3) target bundleno = 1662 (0x67e), region = 48 }
   0xb   : > { %5615 = dma.hbm_to_vmem [thread:$0]  (!%p5613_p5), %s219_s27, 1408, %s221_s9, [#allocation3], %s5840_s15, %s5840_s15, %s5841_s16  }
   0xc   : > { %5618 = dma.hbm_to_vmem [thread:$0]  (!%p5613_p5), %s236_s12, 256, %s238_s14, [#allocation5], %s5842_s17, %s5842_s17, %s5843_s18  }
   0xf   : > { %5827 = dma.done.wait (%p5916_p2), [#allocation3], 1408  }
  0x10   : > { %5829 = vsyncadd (%p5916_p2), [#allocation3], 4294965888 }
  0x11   : > { %5831 = dma.done.wait (%p5916_p2), [#allocation5], 256  }
  0x12   : > { %5833 = vsyncadd (%p5916_p2), [#allocation5], 4294967040  ;;  %s4936_s19 = sshll.u32 %s4927_s28, 4  ;;  %v5844_v0 = vmov 0   ;;  %v4944_v4 = vld [vmem:[#allocation2] sm:$0xf] }
  0x13   : > { %5660 = vset.pattern.permute.xlu2 %v5844_v0  ;;  %5659 = vset.pattern.permute.xlu1 %v5844_v0  ;;  %p321_p6 = scmp.lt.s32.totalorder %s4936_s19, 31  ;;  %v5499_v5 = vld [vmem:[#allocation2 + $0x28] sm:$0x10]  ;;  %vm461_vm0 = vcmask 1044480   ;;  %vm436_vm1 = vcmask 80896   ;;  %v5845_v61 = vmov 1  }
  0x14   : > { %5658 = vset.pattern.permute.xlu0 %v5844_v0  ;;  %v4945_v7 = vor.u32 %v5499_v5, %v4944_v4  ;;  %v5494_v23 = vld [vmem:[#allocation2 + $0x4] sm:$0xf]  ;;  %v4946_v24 = vld [vmem:[#allocation2 + $0x2c] sm:$0x10]  ;;  %v4952_v25 = vld [vmem:[#allocation2 + $0x8] sm:$0xf] }
  0x15   : > { %s10463_s19 = smov (!%p321_p6, %s4936_s19), 31  ;;  %v4949_v26 = vor.u32 %v5494_v23, %v4946_v24  ;;  %v5500_v27 = vld [vmem:[#allocation2 + $0x30] sm:$0x10]  ;;  %v5495_v28 = vld [vmem:[#allocation2 + $0xc] sm:$0xf]  ;;  %v5846_v62 = vmov 2  }
  0x16   : > { %s5941_s20 = sshll.u32 %s10463_s19, 3  ;;  %v463_v14 = vsel %vm461_vm0, %v4945_v7, 0  ;;  %v4954_v29 = vld [vmem:[#allocation2 + $0x34] sm:$0x10]  ;;  %v4953_v30 = vor.u32 %v5500_v27, %v4952_v25  ;;  %v4960_v53 = vld [vmem:[#allocation2 + $0x10] sm:$0xf] }
  0x17   : > { %s5947_s23 = scalar_lea.vmem %s9318_s0, %s5941_s20  ;;  %s5953_s27 = scalar_lea.vmem %s9319_s1, %s5941_s20  ;;  %502 = vmatpush.bf16.msra.mxu0 %v463_v14  ;;  %5601 = vmatpush.bf16.msra.mxu1 %v463_v14  ;;  %v4957_v31 = vor.u32 %v5495_v28, %v4954_v29  ;;  %v466_v32 = vsel %vm461_vm0, %v4949_v26, 0  ;;  %v5501_v54 = vld [vmem:[#allocation2 + $0x38] sm:$0x10]  ;;  %v4968_v5 = vld [vmem:[#allocation2 + $0x18] sm:$0xf]  ;;  %v5847_v25 = vmov 3  }
  0x18   : > { %v5956_v1 = vld [vmem:[%s5947_s23 + $0x20] sm:$0xff]  ;;  %v5959_v2 = vld [vmem:[%s5947_s23 + $0x10] sm:$0xff]  ;;  %v356_v8 = vld [vmem:[%s5953_s27 + $0x8] sm:$0xff]  ;;  %5602 = vmatpush.bf16.msra.mxu2 %v463_v14  ;;  %5603 = vmatpush.bf16.msra.mxu3 %v463_v14  ;;  %v469_v35 = vsel %vm461_vm0, %v4953_v30, 0  ;;  %v4961_v55 = vor.u32 %v5501_v54, %v4960_v53  ;;  %vm3248_vm2 = vcmask 1042432   ;;  %vm3215_vm3 = vcmask 89088   ;;  %s8906_s8 = scalar_lea.vmem %s9325_s7, %s5941_s20 }
  0x19   : > { %v5962_v3 = vld [vmem:[%s5947_s23] sm:$0xff]  ;;  %1056 = vperm.xlu2 %5660, %v5956_v1   ;;  %1046 = vperm.xlu1 %5659, %v5959_v2   ;;  %v360_v10 = vld [vmem:[%s5953_s27 + $0x28] sm:$0xff]  ;;  %v5988_v21 = vld [vmem:[%s5947_s23 + $0x18] sm:$0xff]  ;;  %v472_v36 = vsel %vm461_vm0, %v4957_v31, 0  ;;  %s5855_s16 = smov 104   ;;  %s5856_s17 = smov 112  }
  0x1a   : > { %v355_v6 = vld [vmem:[%s5953_s27] sm:$0xff]  ;;  %1036 = vperm.xlu0 %5658, %v5962_v3   ;;  %v364_v12 = vld [vmem:[%s5953_s27 + $0x48] sm:$0xff]  ;;  %v6009_v34 = vld [vmem:[%s5947_s23 + $0x38] sm:$0xff]  ;;  %v475_v58 = vsel %vm461_vm0, %v4961_v55, 0  ;;  %s5857_s18 = smov 120   ;;  %s5858_s19 = smov 80  }
  0x1b   : > { %v359_v9 = vld [vmem:[%s5953_s27 + $0x20] sm:$0xff]  ;;  %v5975_v15 = vpack.c.bf16 %v356_v8, %v355_v6  ;;  %v368_v17 = vld [vmem:[%s5953_s27 + $0x68] sm:$0xff]  ;;  %9683 = vst [vmem:[#allocation9_spill] sm:$0xff] %v6009_v34  ;;  %551 = vmatpush.bf16.msrb.mxu1 %v466_v32  ;;  %v6014_v37 = vld [vmem:[%s5947_s23 + $0x30] sm:$0xff]  ;;  %698 = vmatpush.bf16.msrb.mxu0 %v475_v58  ;;  %s5859_s21 = smov 88   ;;  %s5860_s22 = smov 96  }
  0x1c   : > { %v363_v11 = vld [vmem:[%s5953_s27 + $0x40] sm:$0xff]  ;;  %v5977_v16 = vpack.c.bf16 %v360_v10, %v359_v9  ;;  %v5985_v20 = vld [vmem:[%s5947_s23 + $0x28] sm:$0xff]  ;;  %v357_v38 = vld [vmem:[%s5953_s27 + $0x10] sm:$0xff]  ;;  %600 = vmatpush.bf16.msrb.mxu2 %v469_v35  ;;  %649 = vmatpush.bf16.msrb.mxu3 %v472_v36  ;;  %s5861_s25 = smov 56   ;;  %s5862_s26 = smov 64   ;;  %vm4820_vm4 = vcmask 64512  }
  0x1d   : > { %v367_v13 = vld [vmem:[%s5953_s27 + $0x60] sm:$0xff]  ;;  %v5980_v18 = vpack.c.bf16 %v364_v12, %v363_v11  ;;  %4986 = vmatmul.msk.bf16.vlgmr.msra.gmra.mxu0 %vm436_vm1, %v5975_v15  ;;  %v5995_v22 = vld [vmem:[%s5947_s23 + $0x8] sm:$0xff]  ;;  %v358_v39 = vld [vmem:[%s5953_s27 + $0x18] sm:$0xff]  ;;  %s5864_s28 = smov 48  }
  0x1e   : > { %v5982_v19 = vpack.c.bf16 %v368_v17, %v367_v13  ;;  %4988 = vmatmul.msk.bf16.vlgmr.msra.gmra.mxu1 %vm436_vm1, %v5977_v16  ;;  %v6006_v33 = vld [vmem:[%s5947_s23 + $0x40] sm:$0xff]  ;;  %v361_v40 = vld [vmem:[%s5953_s27 + $0x30] sm:$0xff]  ;;  %v362_v41 = vld [vmem:[%s5953_s27 + $0x38] sm:$0xff]  ;;  %v6027_v46 = vpack.c.bf16 %v358_v39, %v357_v38 }
  0x1f   : > { %4990 = vmatmul.msk.bf16.vlgmr.msra.gmra.mxu2 %vm436_vm1, %v5980_v18  ;;  %v365_v42 = vld [vmem:[%s5953_s27 + $0x50] sm:$0xff]  ;;  %v366_v43 = vld [vmem:[%s5953_s27 + $0x58] sm:$0xff]  ;;  %v6029_v47 = vpack.c.bf16 %v362_v41, %v361_v40  ;;  %v6046_v52 = vld [vmem:[%s5947_s23 + $0x48] sm:$0xff] }
  0x20   : > { %9682 = vst [vmem:[#allocation8_spill] sm:$0xff] %v5982_v19  ;;  %4992 = vmatmul.msk.bf16.vlgmr.msra.gmra.mxu3 %vm436_vm1, %v5982_v19  ;;  %v369_v44 = vld [vmem:[%s5953_s27 + $0x70] sm:$0xff]  ;;  %v370_v45 = vld [vmem:[%s5953_s27 + $0x78] sm:$0xff]  ;;  %v6031_v48 = vpack.c.bf16 %v366_v43, %v365_v42  ;;  %v6059_v57 = vld [vmem:[%s5947_s23 + $0x68] sm:$0xff]  ;;  %s5863_s27 = smov 72  }
  0x21   : > { %1061 = vperm.xlu2 %5660, %v5985_v20   ;;  %1051 = vperm.xlu1 %5659, %v5988_v21   ;;  %9684 = vst [vmem:[#allocation10_spill] sm:$0xff] %v6027_v46  ;;  %v6033_v49 = vpack.c.bf16 %v370_v45, %v369_v44  ;;  %v6036_v50 = vld [vmem:[%s5947_s23 + $0x58] sm:$0xff]  ;;  %v6039_v51 = vld [vmem:[%s5947_s23 + $0x50] sm:$0xff]  ;;  %v6063_v59 = vld [vmem:[%s5947_s23 + $0x60] sm:$0xff] }
  0x22   : > { %1041 = vperm.xlu0 %5658, %v5995_v22   ;;  %9685 = vst [vmem:[#allocation11_spill] sm:$0xff] %v6031_v48  ;;  %v6056_v56 = vld [vmem:[%s5947_s23 + $0x70] sm:$0xff]  ;;  %v6071_v60 = vld [vmem:[%s5947_s23 + $0x78] sm:$0xff]  ;;  %v5502_v6 = vld [vmem:[#allocation2 + $0x40] sm:$0x10] }
  0x23   : > { %9686 = vst [vmem:[#allocation12_spill] sm:$0xff] %v6033_v49  ;;  %v4969_v7 = vor.u32 %v5502_v6, %v4968_v5  ;;  %v5496_v8 = vld [vmem:[#allocation2 + $0x14] sm:$0xf]  ;;  %v4962_v9 = vld [vmem:[#allocation2 + $0x3c] sm:$0x10] }
  0x24   : > { %9687 = vst [vmem:[#allocation13_spill] sm:$0xff] %v6039_v51  ;;  %v4965_v11 = vor.u32 %v5496_v8, %v4962_v9 }
  0x25   : > { %9688 = vst [vmem:[#allocation14_spill] sm:$0xff] %v6059_v57  ;;  %v481_v10 = vsel %vm461_vm0, %v4969_v7, 0 }
  0x26   : > { %796 = vmatpush.bf16.msra.mxu2 %v481_v10  ;;  %v478_v12 = vsel %vm461_vm0, %v4965_v11, 0 }
  0x27   : > { %747 = vmatpush.bf16.msra.mxu1 %v478_v12 }
  0x29   : > { %1076 = vperm.xlu2 %5660, %v6006_v33   ;;  %1071 = vperm.xlu1 %5659, %v6009_v34  }
  0x2a   : > { %1066 = vperm.xlu0 %5658, %v6014_v37  }
  0x2d   : > { %4987 = vmatmul.msk.bf16.gmra.mxu0 %vm436_vm1, %v6027_v46 }
  0x2e   : > { %4989 = vmatmul.msk.bf16.gmra.mxu1 %vm436_vm1, %v6029_v47 }
  0x2f   : > { %4991 = vmatmul.msk.bf16.gmra.mxu2 %vm436_vm1, %v6031_v48 }
  0x30   : > { %4993 = vmatmul.msk.bf16.gmra.mxu3 %vm436_vm1, %v6033_v49 }
  0x31   : > { %1091 = vperm.xlu2 %5660, %v6036_v50   ;;  %1086 = vperm.xlu1 %5659, %v6039_v51  }
  0x32   : > { %1081 = vperm.xlu0 %5658, %v6046_v52  }
  0x39   : > { %1106 = vperm.xlu2 %5660, %v6056_v56   ;;  %1101 = vperm.xlu1 %5659, %v6059_v57  }
  0x3a   : > { %1096 = vperm.xlu0 %5658, %v6063_v59  }
  0x3d   : > { %5018 = vmatmul.msk.bf16.vlgmr.msrb.gmra.mxu0 %vm436_vm1, %v5975_v15 }
  0x3e   : > { %4994 = vmatmul.msk.bf16.vlgmr.msrb.gmra.mxu1 %vm436_vm1, %v5975_v15 }
  0x3f   : > { %5002 = vmatmul.msk.bf16.vlgmr.msrb.gmra.mxu2 %vm436_vm1, %v5975_v15 }
  0x40   : > { %5010 = vmatmul.msk.bf16.vlgmr.msrb.gmra.mxu3 %vm436_vm1, %v5975_v15 }
  0x41   : > { %5662 = vset.pattern.permute.xlu2 %v5845_v61  ;;  %5661 = vset.pattern.permute.xlu1 %v5845_v61 }
  0x42   : > { %1111 = vperm.xlu0 %5658, %v6071_v60   ;;  %1135 = vperm.xlu2 %5662, %v5995_v22  }
  0x43   : > { %1131 = vperm.xlu1 %5661, %v5962_v3  }
  0x4a   : > { %5663 = vset.pattern.permute.xlu0 %v5845_v61  ;;  %1147 = vperm.xlu2 %5662, %v5956_v1  }
  0x4b   : > { %1143 = vperm.xlu1 %5661, %v5988_v21   ;;  %1139 = vperm.xlu0 %5663, %v5959_v2  }
  0x4d   : > { %5019 = vmatmul.msk.bf16.gmra.mxu0 %vm436_vm1, %v6027_v46 }
  0x4e   : > { %4995 = vmatmul.msk.bf16.gmra.mxu1 %vm436_vm1, %v6027_v46 }
  0x4f   : > { %5003 = vmatmul.msk.bf16.gmra.mxu2 %vm436_vm1, %v6027_v46 }
  0x50   : > { %5011 = vmatmul.msk.bf16.gmra.mxu3 %vm436_vm1, %v6027_v46 }
  0x52   : > { %1155 = vperm.xlu2 %5662, %v6014_v37  }
  0x53   : > { %1151 = vperm.xlu1 %5661, %v5985_v20   ;;  %1159 = vperm.xlu0 %5663, %v6009_v34  }
  0x5a   : > { %1167 = vperm.xlu2 %5662, %v6046_v52  }
  0x5b   : > { %1163 = vperm.xlu1 %5661, %v6006_v33   ;;  %1171 = vperm.xlu0 %5663, %v6039_v51  }
  0x5d   : > { %5020 = vmatmul.msk.bf16.gmra.mxu0 %vm436_vm1, %v5977_v16 }
  0x5e   : > { %4996 = vmatmul.msk.bf16.gmra.mxu1 %vm436_vm1, %v5977_v16 }
  0x5f   : > { %5004 = vmatmul.msk.bf16.gmra.mxu2 %vm436_vm1, %v5977_v16 }
  0x60   : > { %5012 = vmatmul.msk.bf16.gmra.mxu3 %vm436_vm1, %v5977_v16 }
  0x62   : > { %1179 = vperm.xlu2 %5662, %v6063_v59  }
  0x63   : > { %1175 = vperm.xlu1 %5661, %v6036_v50   ;;  %1183 = vperm.xlu0 %5663, %v6059_v57  }
  0x6a   : > { %1191 = vperm.xlu2 %5662, %v6071_v60  }
  0x6b   : > { %1187 = vperm.xlu1 %5661, %v6056_v56   ;;  %5664 = vset.pattern.permute.xlu0 %v5846_v62 }
  0x6c   : > { %1227 = vperm.xlu0 %5664, %v5962_v3  }
  0x6d   : > { %5021 = vmatmul.msk.bf16.gmra.mxu0 %vm436_vm1, %v6029_v47 }
  0x6e   : > { %4997 = vmatmul.msk.bf16.gmra.mxu1 %vm436_vm1, %v6029_v47 }
  0x6f   : > { %5005 = vmatmul.msk.bf16.gmra.mxu2 %vm436_vm1, %v6029_v47 }
  0x70   : > { %5013 = vmatmul.msk.bf16.gmra.mxu3 %vm436_vm1, %v6029_v47 }
  0x72   : > { %5666 = vset.pattern.permute.xlu2 %v5846_v62 }
  0x73   : > { %v6121_v63 = vpop.permute.xlu2 %1056  ;;  %5665 = vset.pattern.permute.xlu1 %v5846_v62  ;;  %1235 = vperm.xlu2 %5666, %v5959_v2  }
  0x74   : > { %9689 = vst [vmem:[#allocation15_spill] sm:$0xff] %v6121_v63  ;;  %1231 = vperm.xlu1 %5665, %v5995_v22   ;;  %1247 = vperm.xlu0 %5664, %v5985_v20  }
  0x7b   : > { %1243 = vperm.xlu2 %5666, %v5956_v1   ;;  %v6127_v0 = vpop.permute.xlu2 %1061 }
  0x7c   : > { %9690 = vst [vmem:[#allocation16_spill] sm:$0xff] %v6127_v0  ;;  %1239 = vperm.xlu1 %5665, %v5988_v21   ;;  %1259 = vperm.xlu0 %5664, %v6006_v33  }
  0x7d   : > { %5022 = vmatmul.msk.bf16.gmra.mxu0 %vm436_vm1, %v5980_v18 }
  0x7e   : > { %4998 = vmatmul.msk.bf16.gmra.mxu1 %vm436_vm1, %v5980_v18 }
  0x7f   : > { %5006 = vmatmul.msk.bf16.gmra.mxu2 %vm436_vm1, %v5980_v18 }
  0x80   : > { %5014 = vmatmul.msk.bf16.gmra.mxu3 %vm436_vm1, %v5980_v18 }
  0x83   : > { %1255 = vperm.xlu2 %5666, %v6009_v34   ;;  %v6140_v4 = vpop.permute.xlu2 %1076 }
  0x84   : > { %9691 = vst [vmem:[#allocation17_spill] sm:$0xff] %v6140_v4  ;;  %1251 = vperm.xlu1 %5665, %v6014_v37   ;;  %1271 = vperm.xlu0 %5664, %v6036_v50  }
  0x8b   : > { %v6146_v13 = vpop.permute.xlu1 %1046  ;;  %1267 = vperm.xlu2 %5666, %v6039_v51   ;;  %v6149_v14 = vpop.permute.xlu2 %1091 }
  0x8c   : > { %9692 = vst [vmem:[#allocation18_spill] sm:$0xff] %v6146_v13  ;;  %v6151_v17 = vpop.permute.xlu0 %1036  ;;  %1263 = vperm.xlu1 %5665, %v6046_v52   ;;  %1283 = vperm.xlu0 %5664, %v6056_v56  }
  0x8d   : > { %9693 = vst [vmem:[#allocation19_spill] sm:$0xff] %v6149_v14  ;;  %5023 = vmatmul.msk.bf16.gmra.mxu0 %vm436_vm1, %v6031_v48 }
  0x8e   : > { %9694 = vst [vmem:[#allocation20_spill] sm:$0xff] %v6151_v17  ;;  %4999 = vmatmul.msk.bf16.gmra.mxu1 %vm436_vm1, %v6031_v48 }
  0x8f   : > { %5007 = vmatmul.msk.bf16.gmra.mxu2 %vm436_vm1, %v6031_v48 }
  0x90   : > { %5015 = vmatmul.msk.bf16.gmra.mxu3 %vm436_vm1, %v6031_v48 }
  0x93   : > { %v6163_v23 = vpop.permute.xlu1 %1051  ;;  %1279 = vperm.xlu2 %5666, %v6059_v57   ;;  %v6166_v24 = vpop.permute.xlu2 %1106 }
  0x94   : > { %9695 = vst [vmem:[#allocation21_spill] sm:$0xff] %v6163_v23  ;;  %1275 = vperm.xlu1 %5665, %v6063_v59   ;;  %5668 = vset.pattern.permute.xlu0 %v5847_v25  ;;  %v6169_v26 = vpop.permute.xlu0 %1041 }
  0x95   : > { %9696 = vst [vmem:[#allocation22_spill] sm:$0xff] %v6166_v24  ;;  %1327 = vperm.xlu0 %5668, %v5995_v22  }
  0x96   : > { %9697 = vst [vmem:[#allocation23_spill] sm:$0xff] %v6169_v26 }
  0x9a   : > { %v504_v35 = vpop.f32.mrf.mxu0 }
  0x9b   : > { %v6172_v27 = vpop.permute.xlu1 %1071  ;;  %5667 = vset.pattern.permute.xlu2 %v5847_v25  ;;  %v6175_v28 = vpop.f32.mrf.mxu1  ;;  %v1114_v10 = vmul.f32 %v6151_v17, %v504_v35 }
  0x9c   : > { %9698 = vst [vmem:[#allocation24_spill] sm:$0xff] %v6172_v27  ;;  %1287 = vperm.xlu1 %5665, %v6071_v60   ;;  %1323 = vperm.xlu2 %5667, %v5962_v3   ;;  %v6178_v29 = vpop.permute.xlu2 %1135  ;;  %v6181_v30 = vpop.permute.xlu0 %1066 }
  0x9d   : > { %9699 = vst [vmem:[#allocation25_spill] sm:$0xff] %v6178_v29  ;;  %1347 = vperm.xlu0 %5668, %v6014_v37   ;;  %5024 = vmatmul.msk.bf16.gmra.mxu0 %vm436_vm1, %v5982_v19 }
  0x9e   : > { %9700 = vst [vmem:[#allocation26_spill] sm:$0xff] %v6181_v30  ;;  %5000 = vmatmul.msk.bf16.gmra.mxu1 %vm436_vm1, %v5982_v19 }
  0x9f   : > { %5008 = vmatmul.msk.bf16.gmra.mxu2 %vm436_vm1, %v5982_v19 }
  0xa0   : > { %5016 = vmatmul.msk.bf16.gmra.mxu3 %vm436_vm1, %v5982_v19 }
  0xa2   : > { %v6191_v31 = vpop.f32.mrf.mxu2  ;;  %v6219_v53 = vpop.f32.mrf.mxu0 }
  0xa3   : > { %v6193_v32 = vpop.f32.mrf.mxu3  ;;  %v6195_v36 = vpop.permute.xlu1 %1086 }
  0xa4   : > { %9701 = vst [vmem:[#allocation27_spill] sm:$0xff] %v6193_v32  ;;  %5669 = vset.pattern.permute.xlu1 %v5847_v25  ;;  %1335 = vperm.xlu2 %5667, %v5988_v21   ;;  %v6198_v38 = vpop.f32.mrf.mxu1  ;;  %v6200_v39 = vpop.permute.xlu2 %1147  ;;  %v5848_v25 = vmov 4  }
  0xa5   : > { %9702 = vst [vmem:[#allocation28_spill] sm:$0xff] %v6195_v36  ;;  %1331 = vperm.xlu1 %5669, %v5959_v2   ;;  %1359 = vperm.xlu0 %5668, %v6046_v52   ;;  %v6204_v40 = vpop.permute.xlu0 %1081 }
  0xa6   : > { %9703 = vst [vmem:[#allocation29_spill] sm:$0xff] %v6200_v39 }
  0xa7   : > { %9704 = vst [vmem:[#allocation30_spill] sm:$0xff] %v6204_v40 }
  0xaa   : > { %v6206_v41 = vpop.f32.mrf.mxu2  ;;  %v509_v7 = vpop.f32.mrf.mxu0 }
  0xab   : > { %v6208_v42 = vpop.f32.mrf.mxu3  ;;  %v6210_v43 = vpop.permute.xlu1 %1101  ;;  %v1116_v14 = vmul.f32 %v6146_v13, %v509_v7 }
  0xac   : > { %9705 = vst [vmem:[#allocation31_spill] sm:$0xff] %v6208_v42  ;;  %1343 = vperm.xlu2 %5667, %v5985_v20   ;;  %v6213_v44 = vpop.f32.mrf.mxu1  ;;  %v6215_v45 = vpop.permute.xlu2 %1155 }
  0xad   : > { %9706 = vst [vmem:[#allocation32_spill] sm:$0xff] %v6210_v43  ;;  %1339 = vperm.xlu1 %5669, %v5956_v1   ;;  %1371 = vperm.xlu0 %5668, %v6063_v59   ;;  %v6221_v54 = vpop.permute.xlu0 %1096 }
  0xae   : > { %9707 = vst [vmem:[#allocation33_spill] sm:$0xff] %v6215_v45  ;;  %5001 = vmatmul.msk.bf16.gmra.mxu1 %vm436_vm1, %v6033_v49  ;;  %5025 = vmatmul.msk.bf16.gmra.mxu0 %vm436_vm1, %v6033_v49 }
  0xaf   : > { %9708 = vst [vmem:[#allocation34_spill] sm:$0xff] %v6221_v54  ;;  %5009 = vmatmul.msk.bf16.gmra.mxu2 %vm436_vm1, %v6033_v49 }
  0xb0   : > { %5017 = vmatmul.msk.bf16.gmra.mxu3 %vm436_vm1, %v6033_v49 }
  0xb2   : > { %v6231_v55 = vpop.f32.mrf.mxu2  ;;  %v6267_v17 = vpop.f32.mrf.mxu0 }
  0xb3   : > { %v6233_v58 = vpop.f32.mrf.mxu3 }
  0xb4   : > { %9709 = vst [vmem:[#allocation35_spill] sm:$0xff] %v6233_v58  ;;  %1355 = vperm.xlu2 %5667, %v6006_v33   ;;  %v6236_v61 = vpop.f32.mrf.mxu1  ;;  %v6238_v62 = vpop.permute.xlu2 %1167 }
  0xb5   : > { %9710 = vst [vmem:[#allocation36_spill] sm:$0xff] %v6238_v62  ;;  %1351 = vperm.xlu1 %5669, %v6009_v34   ;;  %1383 = vperm.xlu0 %5668, %v6071_v60   ;;  %v6242_v5 = vpop.permute.xlu1 %1131  ;;  %v6244_v6 = vpop.permute.xlu0 %1111 }
  0xb6   : > { %9711 = vst [vmem:[#allocation37_spill] sm:$0xff] %v6242_v5 }
  0xb7   : > { %9712 = vst [vmem:[#allocation38_spill] sm:$0xff] %v6244_v6 }
  0xba   : > { %v6246_v8 = vpop.f32.mrf.mxu2  ;;  %v6281_v54 = vpop.f32.mrf.mxu0 }
  0xbb   : > { %9713 = vst [vmem:[#allocation39_spill] sm:$0xff] %v6246_v8  ;;  %v6248_v9 = vpop.f32.mrf.mxu3 }
  0xbc   : > { %9714 = vst [vmem:[#allocation40_spill] sm:$0xff] %v6248_v9  ;;  %1367 = vperm.xlu2 %5667, %v6036_v50   ;;  %v553_v11 = vpop.f32.mrf.mxu1  ;;  %v6252_v12 = vpop.permute.xlu2 %1179 }
  0xbd   : > { %9715 = vst [vmem:[#allocation41_spill] sm:$0xff] %v6252_v12  ;;  %1363 = vperm.xlu1 %5669, %v6039_v51   ;;  %5672 = vset.pattern.permute.xlu0 %v5848_v25  ;;  %v1194_v49 = vmul.f32 %v6242_v5, %v553_v11  ;;  %v6256_v24 = vpop.permute.xlu1 %1143  ;;  %v6259_v6 = vpop.permute.xlu0 %1139  ;;  %v5497_v11 = vld [vmem:[#allocation2 + $0x1c] sm:$0xf]  ;;  %v4970_v5 = vld [vmem:[#allocation2 + $0x44] sm:$0x10] }
  0xbe   : > { %9716 = vst [vmem:[#allocation42_spill] sm:$0xff] %v6256_v24  ;;  %1427 = vperm.xlu0 %5672, %v5959_v2   ;;  %5026 = vmatmul.msk.bf16.vlgmr.msra.gmra.mxu1 %vm436_vm1, %v5975_v15  ;;  %v4973_v43 = vor.u32 %v5497_v11, %v4970_v5 }
  0xbf   : > { %9717 = vst [vmem:[#allocation43_spill] sm:$0xff] %v6259_v6  ;;  %v6263_v35 = vadd.f32 %v1194_v49, %v1114_v10  ;;  %5034 = vmatmul.msk.bf16.vlgmr.msra.gmra.mxu2 %vm436_vm1, %v5975_v15 }
  0xc0   : > { %v484_v12 = vsel %vm461_vm0, %v4973_v43, 0  ;;  %9721 = vst [vmem:[#allocation47_spill] sm:$0xff] %v6281_v54 }
  0xc1   : > { %845 = vmatpush.bf16.msra.mxu3 %v484_v12 }
  0xc2   : > { %v602_v9 = vpop.f32.mrf.mxu2  ;;  %v6307_v7 = vpop.f32.mrf.mxu0 }
  0xc3   : > { %v6269_v58 = vpop.f32.mrf.mxu3  ;;  %9726 = vst [vmem:[#allocation52_spill] sm:$0xff] %v6307_v7 }
  0xc4   : > { %1379 = vperm.xlu2 %5667, %v6056_v56   ;;  %v555_v42 = vpop.f32.mrf.mxu1  ;;  %v6272_v19 = vpop.permute.xlu2 %1191  ;;  %5042 = vmatmul.msk.bf16.vlgmr.msra.gmra.mxu3 %vm436_vm1, %v5975_v15 }
  0xc5   : > { %9718 = vst [vmem:[#allocation44_spill] sm:$0xff] %v6272_v19  ;;  %1375 = vperm.xlu1 %5669, %v6059_v57   ;;  %v6275_v49 = vpop.permute.xlu1 %1151  ;;  %v6278_v10 = vpop.permute.xlu0 %1159 }
  0xc6   : > { %9719 = vst [vmem:[#allocation45_spill] sm:$0xff] %v6275_v49  ;;  %1447 = vperm.xlu0 %5672, %v6009_v34  }
  0xc7   : > { %9720 = vst [vmem:[#allocation46_spill] sm:$0xff] %v6278_v10 }
  0xca   : > { %v6285_v5 = vpop.f32.mrf.mxu2 }
  0xcb   : > { %v6287_v11 = vpop.f32.mrf.mxu3 }
  0xcc   : > { %5671 = vset.pattern.permute.xlu2 %v5848_v25  ;;  %v558_v19 = vpop.f32.mrf.mxu1 }
  0xcd   : > { %5670 = vset.pattern.permute.xlu1 %v5848_v25  ;;  %1423 = vperm.xlu2 %5671, %v5995_v22   ;;  %v6290_v32 = vpop.permute.xlu2 %1235  ;;  %v1196_v43 = vmul.f32 %v6259_v6, %v558_v19  ;;  %v6294_v12 = vpop.permute.xlu1 %1163 }
  0xce   : > { %9722 = vst [vmem:[#allocation48_spill] sm:$0xff] %v6290_v32  ;;  %1419 = vperm.xlu1 %5670, %v5962_v3   ;;  %1459 = vperm.xlu0 %5672, %v6039_v51   ;;  %v6298_v54 = vpop.permute.xlu0 %1171 }
  0xcf   : > { %9723 = vst [vmem:[#allocation49_spill] sm:$0xff] %v6294_v12  ;;  %5027 = vmatmul.msk.bf16.gmra.mxu1 %vm436_vm1, %v6027_v46  ;;  %v1212_v25 = vadd.f32 %v1196_v43, %v1116_v14  ;;  %5035 = vmatmul.msk.bf16.gmra.mxu2 %vm436_vm1, %v6027_v46 }
  0xd0   : > { %9724 = vst [vmem:[#allocation50_spill] sm:$0xff] %v6298_v54 }
  0xd2   : > { %v607_v8 = vpop.f32.mrf.mxu2 }
  0xd3   : > { %v6304_v48 = vpop.f32.mrf.mxu3  ;;  %v1292_v19 = vmul.f32 %v6290_v32, %v607_v8 }
  0xd4   : > { %9725 = vst [vmem:[#allocation51_spill] sm:$0xff] %v6304_v48  ;;  %v560_v6 = vpop.f32.mrf.mxu1  ;;  %5043 = vmatmul.msk.bf16.gmra.mxu3 %vm436_vm1, %v6027_v46 }
  0xd5   : > { %1435 = vperm.xlu2 %5671, %v5956_v1   ;;  %v6310_v13 = vpop.permute.xlu2 %1243  ;;  %v6312_v51 = vadd.f32 %v1292_v19, %v1212_v25  ;;  %v6314_v34 = vpop.permute.xlu1 %1175  ;;  %v1118_v25 = vmul.f32 %v6121_v63, %v6175_v28 }
  0xd6   : > { %9727 = vst [vmem:[#allocation53_spill] sm:$0xff] %v6310_v13  ;;  %1431 = vperm.xlu1 %5670, %v5988_v21   ;;  %1471 = vperm.xlu0 %5672, %v6059_v57   ;;  %v6318_v14 = vpop.permute.xlu0 %1183  ;;  %v6342_v28 = vpop.f32.mrf.mxu0 }
  0xd7   : > { %9728 = vst [vmem:[#allocation54_spill] sm:$0xff] %v6312_v51 }
  0xd8   : > { %9729 = vst [vmem:[#allocation55_spill] sm:$0xff] %v6314_v34 }
  0xd9   : > { %9730 = vst [vmem:[#allocation56_spill] sm:$0xff] %v6318_v14  ;;  %v9358_v14 = vmov 5  }
  0xda   : > { %v609_v8 = vpop.f32.mrf.mxu2  ;;  %9734 = vst [vmem:[#allocation60_spill] sm:$0xff] %v6342_v28 }
  0xdb   : > { %v6322_v43 = vpop.f32.mrf.mxu3 }
  0xdc   : > { %v563_v32 = vpop.f32.mrf.mxu1 }
  0xdd   : > { %1443 = vperm.xlu2 %5671, %v6014_v37   ;;  %v6325_v7 = vpop.permute.xlu2 %1255  ;;  %v1198_v19 = vmul.f32 %v6200_v39, %v563_v32  ;;  %v6330_v51 = vpop.permute.xlu1 %1187  ;;  %v1195_v39 = vmul.f32 %v6178_v29, %v555_v42 }
  0xde   : > { %9731 = vst [vmem:[#allocation57_spill] sm:$0xff] %v6325_v7  ;;  %1439 = vperm.xlu1 %5670, %v5985_v20   ;;  %5673 = vset.pattern.permute.xlu0 %v9358_v14  ;;  %v6334_v57 = vpop.permute.xlu0 %1227  ;;  %v1115_v14 = vmul.f32 %v6169_v26, %v6219_v53  ;;  %v9777_v26 = vmov 6  }
  0xdf   : > { %9732 = vst [vmem:[#allocation58_spill] sm:$0xff] %v6330_v51  ;;  %v1290_v46 = vmul.f32 %v6334_v57, %v602_v9  ;;  %1515 = vperm.xlu0 %5673, %v5962_v3   ;;  %5028 = vmatmul.msk.bf16.gmra.mxu1 %vm436_vm1, %v5977_v16  ;;  %v1214_v48 = vadd.f32 %v1198_v19, %v1118_v25 }
  0xe0   : > { %9733 = vst [vmem:[#allocation59_spill] sm:$0xff] %v6334_v57  ;;  %5036 = vmatmul.msk.bf16.gmra.mxu2 %vm436_vm1, %v5977_v16  ;;  %v1119_v19 = vmul.f32 %v6127_v0, %v6198_v38  ;;  %v6369_v38 = vpop.f32.mrf.mxu0 }
  0xe1   : > { %v1306_v32 = vadd.f32 %v1290_v46, %v6263_v35  ;;  %v1211_v35 = vadd.f32 %v1195_v39, %v1115_v14  ;;  %v1120_v39 = vmul.f32 %v6181_v30, %v6213_v44  ;;  %v1117_v14 = vmul.f32 %v6163_v23, %v6267_v17 }
  0xe2   : > { %v612_v63 = vpop.f32.mrf.mxu2 }
  0xe3   : > { %v6348_v9 = vpop.f32.mrf.mxu3  ;;  %v1294_v57 = vmul.f32 %v6310_v13, %v612_v63 }
  0xe4   : > { %v565_v51 = vpop.f32.mrf.mxu1  ;;  %5044 = vmatmul.msk.bf16.gmra.mxu3 %vm436_vm1, %v5977_v16 }
  0xe5   : > { %1455 = vperm.xlu2 %5671, %v6046_v52   ;;  %v6352_v25 = vpop.permute.xlu2 %1267  ;;  %v6356_v28 = vadd.f32 %v1294_v57, %v1214_v48  ;;  %v1199_v46 = vmul.f32 %v6275_v49, %v565_v51  ;;  %v1197_v48 = vmul.f32 %v6256_v24, %v560_v6 }
  0xe6   : > { %9735 = vst [vmem:[#allocation61_spill] sm:$0xff] %v6352_v25  ;;  %1451 = vperm.xlu1 %5670, %v6006_v33   ;;  %v6360_v42 = vpop.permute.xlu1 %1231  ;;  %v6362_v53 = vpop.permute.xlu0 %1247 }
  0xe7   : > { %9736 = vst [vmem:[#allocation62_spill] sm:$0xff] %v6360_v42  ;;  %v1291_v63 = vmul.f32 %v6360_v42, %v6285_v5  ;;  %1535 = vperm.xlu0 %5673, %v5985_v20   ;;  %v1215_v13 = vadd.f32 %v1199_v46, %v1119_v19  ;;  %v1213_v44 = vadd.f32 %v1197_v48, %v1117_v14 }
  0xe8   : > { %9737 = vst [vmem:[#allocation63_spill] sm:$0xff] %v6362_v53  ;;  %v6401_v30 = vpop.f32.mrf.mxu0 }
  0xe9   : > { %v6367_v29 = vadd.f32 %v1291_v63, %v1211_v35 }
  0xea   : > { %v614_v51 = vpop.f32.mrf.mxu2 }
  0xeb   : > { %v6374_v57 = vpop.f32.mrf.mxu3  ;;  %v1295_v5 = vmul.f32 %v6362_v53, %v614_v51 }
  0xec   : > { %v568_v19 = vpop.f32.mrf.mxu1 }
  0xed   : > { %1467 = vperm.xlu2 %5671, %v6063_v59   ;;  %v6382_v46 = vpop.permute.xlu2 %1279  ;;  %v6384_v35 = vadd.f32 %v1295_v5, %v1215_v13  ;;  %v1200_v6 = vmul.f32 %v6215_v45, %v568_v19 }
  0xee   : > { %9738 = vst [vmem:[#allocation64_spill] sm:$0xff] %v6382_v46  ;;  %1463 = vperm.xlu1 %5670, %v6036_v50   ;;  %v6388_v63 = vpop.permute.xlu1 %1239  ;;  %v6390_v49 = vpop.permute.xlu0 %1259 }
  0xef   : > { %9739 = vst [vmem:[#allocation65_spill] sm:$0xff] %v6388_v63  ;;  %v1293_v51 = vmul.f32 %v6388_v63, %v609_v8  ;;  %1547 = vperm.xlu0 %5673, %v6006_v33   ;;  %5029 = vmatmul.msk.bf16.gmra.mxu1 %vm436_vm1, %v6029_v47  ;;  %v1216_v17 = vadd.f32 %v1200_v6, %v1120_v39 }
  0xf0   : > { %9740 = vst [vmem:[#allocation66_spill] sm:$0xff] %v6390_v49  ;;  %5037 = vmatmul.msk.bf16.gmra.mxu2 %vm436_vm1, %v6029_v47  ;;  %v1121_v8 = vmul.f32 %v6172_v27, %v6236_v61 }
  0xf1   : > { %v1309_v13 = vadd.f32 %v1293_v51, %v1213_v44 }
  0xf2   : > { %v617_v5 = vpop.f32.mrf.mxu2 }
  0xf3   : > { %v6398_v19 = vpop.f32.mrf.mxu3 }
  0xf4   : > { %v570_v45 = vpop.f32.mrf.mxu1  ;;  %5045 = vmatmul.msk.bf16.gmra.mxu3 %vm436_vm1, %v6029_v47 }
  0xf5   : > { %1479 = vperm.xlu2 %5671, %v6071_v60   ;;  %v1201_v48 = vmul.f32 %v6278_v10, %v570_v45 }
  0xf6   : > { %1475 = vperm.xlu1 %5670, %v6056_v56   ;;  %v6407_v39 = vpop.permute.xlu1 %1251  ;;  %v6409_v14 = vpop.permute.xlu2 %1323 }
  0xf7   : > { %9741 = vst [vmem:[#allocation67_spill] sm:$0xff] %v6407_v39  ;;  %v1296_v6 = vmul.f32 %v6407_v39, %v617_v5  ;;  %v1386_v44 = vmul.f32 %v6409_v14, %v6269_v58  ;;  %1559 = vperm.xlu0 %5673, %v6036_v50   ;;  %v6415_v51 = vpop.permute.xlu0 %1271  ;;  %v1217_v53 = vadd.f32 %v1201_v48, %v1121_v8  ;;  %v9744_v39 = vmov 5  }
  0xf8   : > { %9742 = vst [vmem:[#allocation68_spill] sm:$0xff] %v6409_v14  ;;  %v1122_v58 = vmul.f32 %v6140_v4, %v6191_v31  ;;  %v4976_v4 = vld [vmem:[#allocation2 + $0x20] sm:$0xf]  ;;  %v9792_v14 = vld [vmem:[#allocation44_spill] sm:$0xff] }
  0xf9   : > { %9743 = vst [vmem:[#allocation69_spill] sm:$0xff] %v6415_v51  ;;  %v6417_v0 = vadd.f32 %v1296_v6, %v1216_v17  ;;  %v6419_v61 = vadd.f32 %v1386_v44, %v1306_v32  ;;  %v6444_v6 = vpop.f32.mrf.mxu0 }
  0xfa   : > { %v619_v45 = vpop.f32.mrf.mxu2 }
  0xfb   : > { %v6423_v10 = vpop.f32.mrf.mxu3  ;;  %v1297_v5 = vmul.f32 %v6325_v7, %v619_v45  ;;  %v1123_v45 = vmul.f32 %v6204_v40, %v6206_v41  ;;  %v5498_v40 = vld [vmem:[#allocation2 + $0x24] sm:$0xf]  ;;  %v4978_v7 = vld [vmem:[#allocation2 + $0x4c] sm:$0x10] }
  0xfc   : > { %v573_v27 = vpop.f32.mrf.mxu1 }
  0xfd   : > { %5675 = vset.pattern.permute.xlu2 %v9744_v39  ;;  %v6429_v63 = vadd.f32 %v1297_v5, %v1217_v53  ;;  %v1202_v17 = vmul.f32 %v6294_v12, %v573_v27 }
  0xfe   : > { %5674 = vset.pattern.permute.xlu1 %v9744_v39  ;;  %v6433_v32 = vpop.permute.xlu1 %1263  ;;  %1523 = vperm.xlu2 %5675, %v5959_v2   ;;  %v6436_v8 = vpop.permute.xlu2 %1335 }
  0xff   : > { %9745 = vst [vmem:[#allocation70_spill] sm:$0xff] %v6433_v32  ;;  %v1389_v48 = vmul.f32 %v6436_v8, %v6322_v43  ;;  %1519 = vperm.xlu1 %5674, %v5995_v22   ;;  %1571 = vperm.xlu0 %5673, %v6056_v56   ;;  %v6442_v31 = vpop.permute.xlu0 %1283  ;;  %v1218_v53 = vadd.f32 %v1202_v17, %v1122_v58 }
 0x100   : > { %9746 = vst [vmem:[#allocation71_spill] sm:$0xff] %v6436_v8  ;;  %5030 = vmatmul.msk.bf16.gmra.mxu1 %vm436_vm1, %v5980_v18  ;;  %5038 = vmatmul.msk.bf16.gmra.mxu2 %vm436_vm1, %v5980_v18 }
 0x101   : > { %9747 = vst [vmem:[#allocation72_spill] sm:$0xff] %v6442_v31  ;;  %v6450_v2 = vadd.f32 %v1389_v48, %v1309_v13  ;;  %v5503_v13 = vld [vmem:[#allocation2 + $0x48] sm:$0x10] }
 0x102   : > { %v622_v27 = vpop.f32.mrf.mxu2 }
 0x103   : > { %v671_v39 = vpop.f32.mrf.mxu3  ;;  %v1298_v43 = vmul.f32 %v6390_v49, %v622_v27  ;;  %v9403_v27 = vmov 6  }
 0x104   : > { %v575_v44 = vpop.f32.mrf.mxu1  ;;  %5046 = vmatmul.msk.bf16.gmra.mxu3 %vm436_vm1, %v5980_v18 }
 0x105   : > { %v1314_v5 = vadd.f32 %v1298_v43, %v1218_v53  ;;  %v1203_v58 = vmul.f32 %v6238_v62, %v575_v44  ;;  %v4977_v53 = vor.u32 %v5503_v13, %v4976_v4  ;;  %v5504_v62 = vld [vmem:[#allocation2 + $0x50] sm:$0x10]  ;;  %v6477_v4 = vpop.f32.mrf.mxu0 }
 0x106   : > { %v6456_v17 = vpop.permute.xlu1 %1275  ;;  %1531 = vperm.xlu2 %5675, %v5956_v1   ;;  %v6459_v12 = vpop.permute.xlu2 %1343  ;;  %v4984_v1 = vld [vmem:[#allocation2 + $0x28] sm:$0xf] }
 0x107   : > { %9748 = vst [vmem:[#allocation73_spill] sm:$0xff] %v6456_v17  ;;  %v1391_v48 = vmul.f32 %v6459_v12, %v6374_v57  ;;  %1527 = vperm.xlu1 %5674, %v5988_v21   ;;  %5677 = vset.pattern.permute.xlu0 %v9403_v27  ;;  %v6465_v41 = vpop.permute.xlu0 %1327  ;;  %v1219_v43 = vadd.f32 %v1203_v58, %v1123_v45  ;;  %v487_v57 = vsel %vm461_vm0, %v4977_v53, 0 }
 0x108   : > { %9749 = vst [vmem:[#allocation74_spill] sm:$0xff] %v6459_v12  ;;  %v1387_v44 = vmul.f32 %v6465_v41, %v6287_v11  ;;  %1615 = vperm.xlu0 %5677, %v5995_v22   ;;  %v4985_v49 = vor.u32 %v5504_v62, %v4984_v1  ;;  %894 = vmatpush.bf16.msra.mxu0 %v487_v57 }
 0x109   : > { %9750 = vst [vmem:[#allocation75_spill] sm:$0xff] %v6465_v41  ;;  %v6472_v12 = vadd.f32 %v1391_v48, %v6384_v35  ;;  %v4981_v45 = vor.u32 %v5498_v40, %v4978_v7  ;;  %v9776_v41 = vld [vmem:[#allocation56_spill] sm:$0xff] }
 0x10a   : > { %v6475_v27 = vadd.f32 %v1387_v44, %v6367_v29  ;;  %v624_v22 = vpop.f32.mrf.mxu2  ;;  %v493_v62 = vsel %vm461_vm0, %v4985_v49, 0  ;;  %v1124_v29 = vmul.f32 %v6195_v36, %v6231_v55  ;;  %v9752_v49 = vld [vmem:[#allocation9_spill] sm:$0xff] }
 0x10b   : > { %v6481_v11 = vpop.f32.mrf.mxu3  ;;  %v1299_v58 = vmul.f32 %v6433_v32, %v624_v22  ;;  %992 = vmatpush.bf16.msrb.mxu2 %v493_v62  ;;  %v490_v35 = vsel %vm461_vm0, %v4981_v45, 0  ;;  %5050 = vmatmul.msk.bf16.vlgmr.msra.gmra.mxu0 %vm436_vm1, %v5975_v15  ;;  %v9764_v32 = vld [vmem:[#allocation10_spill] sm:$0xff] }
 0x10c   : > { %v578_v13 = vpop.f32.mrf.mxu1  ;;  %943 = vmatpush.bf16.msrb.mxu1 %v490_v35 }
 0x10d   : > { %v6490_v40 = vadd.f32 %v1299_v58, %v1219_v43  ;;  %v1204_v7 = vmul.f32 %v6298_v54, %v578_v13  ;;  %v9755_v43 = vld [vmem:[#allocation11_spill] sm:$0xff]  ;;  %v6516_v58 = vpop.f32.mrf.mxu0 }
 0x10e   : > { %v6493_v48 = vpop.permute.xlu1 %1287  ;;  %1543 = vperm.xlu2 %5675, %v9752_v49   ;;  %v6496_v53 = vpop.permute.xlu2 %1355  ;;  %v9756_v13 = vld [vmem:[#allocation39_spill] sm:$0xff] }
 0x10f   : > { %9751 = vst [vmem:[#allocation76_spill] sm:$0xff] %v6493_v48  ;;  %v1394_v44 = vmul.f32 %v6496_v53, %v671_v39  ;;  %1539 = vperm.xlu1 %5674, %v6014_v37   ;;  %v6500_v1 = vpop.permute.xlu0 %1347  ;;  %v1220_v57 = vadd.f32 %v1204_v7, %v1124_v29  ;;  %v9757_v29 = vld [vmem:[#allocation19_spill] sm:$0xff] }
 0x110   : > { %9753 = vst [vmem:[#allocation9_spill] sm:$0xff] %v6496_v53  ;;  %v1392_v55 = vmul.f32 %v6500_v1, %v6398_v19  ;;  %5031 = vmatmul.msk.bf16.gmra.mxu1 %vm436_vm1, %v9755_v43  ;;  %5039 = vmatmul.msk.bf16.gmra.mxu2 %vm436_vm1, %v9755_v43  ;;  %v1125_v7 = vmul.f32 %v9757_v29, %v9756_v13 }
 0x111   : > { %9754 = vst [vmem:[#allocation77_spill] sm:$0xff] %v6500_v1  ;;  %1635 = vperm.xlu0 %5677, %v6014_v37   ;;  %v6509_v45 = vadd.f32 %v1394_v44, %v1314_v5  ;;  %v9758_v5 = vld [vmem:[#allocation13_spill] sm:$0xff]  ;;  %v9769_v1 = vld [vmem:[#allocation14_spill] sm:$0xff] }
 0x112   : > { %v6512_v39 = vadd.f32 %v1392_v55, %v6417_v0  ;;  %v627_v22 = vpop.f32.mrf.mxu2 }
 0x113   : > { %v6514_v62 = vpop.f32.mrf.mxu3  ;;  %v1300_v19 = vmul.f32 %v6352_v25, %v627_v22  ;;  %v9762_v22 = vld [vmem:[#allocation51_spill] sm:$0xff] }
 0x114   : > { %v580_v35 = vpop.f32.mrf.mxu1  ;;  %5047 = vmatmul.msk.bf16.gmra.mxu3 %vm436_vm1, %v9755_v43 }
 0x115   : > { %v6521_v54 = vadd.f32 %v1300_v19, %v1220_v57  ;;  %v1205_v37 = vmul.f32 %v6314_v34, %v580_v35  ;;  %v9763_v57 = vld [vmem:[#allocation54_spill] sm:$0xff] }
 0x116   : > { %1555 = vperm.xlu2 %5675, %v9758_v5   ;;  %v6525_v44 = vpop.permute.xlu2 %1367 }
 0x117   : > { %9759 = vst [vmem:[#allocation11_spill] sm:$0xff] %v6525_v44  ;;  %1551 = vperm.xlu1 %5674, %v6046_v52   ;;  %v6528_v0 = vpop.permute.xlu1 %1331  ;;  %v6530_v55 = vpop.permute.xlu0 %1359  ;;  %v1221_v36 = vadd.f32 %v1205_v37, %v1125_v7 }
 0x118   : > { %9760 = vst [vmem:[#allocation39_spill] sm:$0xff] %v6528_v0  ;;  %v1388_v25 = vmul.f32 %v6528_v0, %v9762_v22  ;;  %v6545_v7 = vpop.f32.mrf.mxu0  ;;  %v9767_v22 = vld [vmem:[#allocation34_spill] sm:$0xff] }
 0x119   : > { %9761 = vst [vmem:[#allocation13_spill] sm:$0xff] %v6530_v55  ;;  %1647 = vperm.xlu0 %5677, %v6046_v52   ;;  %v9766_v52 = vld [vmem:[#allocation27_spill] sm:$0xff] }
 0x11a   : > { %v6536_v19 = vadd.f32 %v1388_v25, %v9763_v57  ;;  %v629_v35 = vpop.f32.mrf.mxu2  ;;  %v1126_v25 = vmul.f32 %v9767_v22, %v9766_v52  ;;  %v9768_v57 = vld [vmem:[#allocation41_spill] sm:$0xff] }
 0x11b   : > { %v6540_v13 = vpop.f32.mrf.mxu3  ;;  %v1301_v34 = vmul.f32 %v6415_v51, %v629_v35  ;;  %5051 = vmatmul.msk.bf16.gmra.mxu0 %vm436_vm1, %v9764_v32 }
 0x11c   : > { %v583_v29 = vpop.f32.mrf.mxu1 }
 0x11d   : > { %v6547_v37 = vadd.f32 %v1301_v34, %v1221_v36  ;;  %v1206_v53 = vmul.f32 %v9768_v57, %v583_v29  ;;  %v9773_v36 = vld [vmem:[#allocation8_spill] sm:$0xff] }
 0x11e   : > { %1567 = vperm.xlu2 %5675, %v9769_v1   ;;  %v6553_v8 = vpop.permute.xlu2 %1379 }
 0x11f   : > { %9765 = vst [vmem:[#allocation51_spill] sm:$0xff] %v6547_v37  ;;  %1563 = vperm.xlu1 %5674, %v6063_v59   ;;  %v6556_v35 = vpop.permute.xlu1 %1339  ;;  %v6558_v51 = vpop.permute.xlu0 %1371  ;;  %v1222_v24 = vadd.f32 %v1206_v53, %v1126_v25 }
 0x120   : > { %9770 = vst [vmem:[#allocation54_spill] sm:$0xff] %v6553_v8  ;;  %v1390_v34 = vmul.f32 %v6556_v35, %v6348_v9  ;;  %5032 = vmatmul.msk.bf16.gmra.mxu1 %vm436_vm1, %v9773_v36  ;;  %5040 = vmatmul.msk.bf16.gmra.mxu2 %vm436_vm1, %v9773_v36  ;;  %v9774_v9 = vld [vmem:[#allocation31_spill] sm:$0xff] }
 0x121   : > { %9771 = vst [vmem:[#allocation10_spill] sm:$0xff] %v6556_v35  ;;  %1659 = vperm.xlu0 %5677, %v6063_v59   ;;  %v9775_v35 = vld [vmem:[#allocation32_spill] sm:$0xff] }
 0x122   : > { %9772 = vst [vmem:[#allocation27_spill] sm:$0xff] %v6558_v51  ;;  %v6568_v29 = vadd.f32 %v1390_v34, %v6356_v28  ;;  %v632_v52 = vpop.f32.mrf.mxu2  ;;  %v1127_v0 = vmul.f32 %v9775_v35, %v9774_v9  ;;  %v6582_v34 = vpop.f32.mrf.mxu0 }
 0x123   : > { %v681_v57 = vpop.f32.mrf.mxu3  ;;  %v1302_v22 = vmul.f32 %v6456_v17, %v632_v52 }
 0x124   : > { %v1398_v53 = vmul.f32 %v6558_v51, %v681_v57  ;;  %v585_v25 = vpop.f32.mrf.mxu1  ;;  %5048 = vmatmul.msk.bf16.gmra.mxu3 %vm436_vm1, %v9773_v36  ;;  %v9788_v51 = vld [vmem:[#allocation12_spill] sm:$0xff] }
 0x125   : > { %v1318_v23 = vadd.f32 %v1302_v22, %v1222_v24  ;;  %v1207_v42 = vmul.f32 %v9776_v41, %v585_v25  ;;  %v9785_v41 = vld [vmem:[#allocation58_spill] sm:$0xff] }
 0x126   : > { %5676 = vset.pattern.permute.xlu2 %v9777_v26 }
 0x127   : > { %1575 = vperm.xlu1 %5674, %v6071_v60   ;;  %v6577_v59 = vpop.permute.xlu1 %1351  ;;  %1611 = vperm.xlu2 %5676, %v5962_v3   ;;  %v6580_v28 = vpop.permute.xlu2 %1423  ;;  %v6584_v57 = vadd.f32 %v1398_v53, %v1318_v23  ;;  %v1223_v24 = vadd.f32 %v1207_v42, %v1127_v0  ;;  %v9783_v0 = vld [vmem:[#allocation22_spill] sm:$0xff] }
 0x128   : > { %9778 = vst [vmem:[#allocation14_spill] sm:$0xff] %v6577_v59  ;;  %v1393_v22 = vmul.f32 %v6577_v59, %v6423_v10  ;;  %v6588_v52 = vpop.permute.xlu0 %1383  ;;  %v9782_v10 = vld [vmem:[#allocation35_spill] sm:$0xff] }
 0x129   : > { %9779 = vst [vmem:[#allocation8_spill] sm:$0xff] %v6580_v28  ;;  %1671 = vperm.xlu0 %5677, %v6071_v60   ;;  %v1128_v53 = vmul.f32 %v9783_v0, %v9782_v10  ;;  %v9791_v0 = vld [vmem:[#allocation38_spill] sm:$0xff] }
 0x12a   : > { %9780 = vst [vmem:[#allocation31_spill] sm:$0xff] %v6588_v52  ;;  %v6594_v25 = vadd.f32 %v1393_v22, %v6429_v63  ;;  %v634_v3 = vpop.f32.mrf.mxu2 }
 0x12b   : > { %v6596_v9 = vpop.f32.mrf.mxu3  ;;  %v1303_v23 = vmul.f32 %v6382_v46, %v634_v3  ;;  %5052 = vmatmul.msk.bf16.gmra.mxu0 %vm436_vm1, %v5977_v16 }
 0x12c   : > { %9781 = vst [vmem:[#allocation78_spill] sm:$0xff] %v6596_v9  ;;  %v588_v42 = vpop.f32.mrf.mxu1 }
 0x12d   : > { %v6603_v60 = vadd.f32 %v1303_v23, %v1223_v24  ;;  %v1208_v35 = vmul.f32 %v9785_v41, %v588_v42  ;;  %v6621_v23 = vld [vmem:[%s5947_s23 + $0x10] sm:$0xff]  ;;  %v9790_v41 = vld [vmem:[#allocation40_spill] sm:$0xff] }
 0x12e   : > { %v1129_v17 = vmul.f32 %v9791_v0, %v9790_v41 }
 0x12f   : > { %9784 = vst [vmem:[#allocation35_spill] sm:$0xff] %v6603_v60  ;;  %5678 = vset.pattern.permute.xlu1 %v9777_v26  ;;  %v6607_v63 = vpop.permute.xlu1 %1363  ;;  %1623 = vperm.xlu2 %5676, %v5988_v21   ;;  %v6610_v22 = vpop.permute.xlu2 %1435  ;;  %v1224_v3 = vadd.f32 %v1208_v35, %v1128_v53  ;;  %v9450_v26 = vmov 7  }
 0x130   : > { %9786 = vst [vmem:[#allocation79_spill] sm:$0xff] %v6607_v63  ;;  %v1396_v46 = vmul.f32 %v6607_v63, %v6514_v62  ;;  %5033 = vmatmul.msk.bf16.gmra.mxu1 %vm436_vm1, %v9788_v51  ;;  %5041 = vmatmul.msk.bf16.gmra.mxu2 %vm436_vm1, %v9788_v51  ;;  %v6618_v24 = vpop.permute.xlu0 %1427  ;;  %v725_v21 = vpop.f32.mrf.mxu0 }
 0x131   : > { %9787 = vst [vmem:[#allocation80_spill] sm:$0xff] %v6610_v22  ;;  %1619 = vperm.xlu1 %5678, %v6621_v23   ;;  %5681 = vset.pattern.permute.xlu0 %v9450_v26 }
 0x132   : > { %9789 = vst [vmem:[#allocation12_spill] sm:$0xff] %v6618_v24  ;;  %1715 = vperm.xlu0 %5681, %v6621_v23   ;;  %v1412_v62 = vadd.f32 %v1396_v46, %v6521_v54  ;;  %v637_v35 = vpop.f32.mrf.mxu2 }
 0x133   : > { %v686_v42 = vpop.f32.mrf.mxu3  ;;  %v1304_v10 = vmul.f32 %v6442_v31, %v637_v35  ;;  %v6642_v35 = vld [vmem:[%s5947_s23 + $0x20] sm:$0xff] }
 0x134   : > { %v590_v53 = vpop.f32.mrf.mxu1  ;;  %v1400_v59 = vmul.f32 %v6553_v8, %v686_v42  ;;  %5049 = vmatmul.msk.bf16.gmra.mxu3 %vm436_vm1, %v9788_v51  ;;  %v9466_v8 = vmov 10  }
 0x135   : > { %v1320_v63 = vadd.f32 %v1304_v10, %v1224_v3  ;;  %v1209_v52 = vmul.f32 %v9792_v14, %v590_v53 }
 0x137   : > { %v6632_v26 = vpop.permute.xlu1 %1375  ;;  %1631 = vperm.xlu2 %5676, %v5985_v20   ;;  %v6635_v60 = vpop.permute.xlu2 %1443  ;;  %v6637_v54 = vadd.f32 %v1400_v59, %v1320_v63  ;;  %v1225_v46 = vadd.f32 %v1209_v52, %v1129_v17 }
 0x138   : > { %9793 = vst [vmem:[#allocation40_spill] sm:$0xff] %v6632_v26  ;;  %v6639_v9 = vpop.permute.xlu0 %1447  ;;  %v6649_v20 = vpop.f32.mrf.mxu0 }
 0x139   : > { %9794 = vst [vmem:[#allocation81_spill] sm:$0xff] %v6635_v60  ;;  %1627 = vperm.xlu1 %5678, %v6642_v35  }
 0x13a   : > { %9795 = vst [vmem:[#allocation82_spill] sm:$0xff] %v6639_v9  ;;  %1735 = vperm.xlu0 %5681, %v9752_v49   ;;  %v639_v41 = vpop.f32.mrf.mxu2 }
 0x13b   : > { %v1305_v3 = vmul.f32 %v6493_v48, %v639_v41  ;;  %9796 = vst [vmem:[#allocation83_spill] sm:$0xff] %v6649_v20  ;;  %5053 = vmatmul.msk.bf16.gmra.mxu0 %vm436_vm1, %v6029_v47  ;;  %v9494_v20 = vmov 9  }
 0x13c   : > { %v749_v42 = vpop.f32.mrf.mxu1 }
 0x13d   : > { %v6653_v17 = vadd.f32 %v1305_v3, %v1225_v46 }
 0x13f   : > { %9797 = vst [vmem:[#allocation84_spill] sm:$0xff] %v6653_v17  ;;  %1643 = vperm.xlu2 %5676, %v6006_v33   ;;  %v6656_v59 = vpop.permute.xlu2 %1455 }
 0x140   : > { %9798 = vst [vmem:[#allocation85_spill] sm:$0xff] %v6656_v59  ;;  %v6658_v52 = vpop.permute.xlu1 %1419  ;;  %v6660_v63 = vpop.permute.xlu0 %1459  ;;  %5058 = vmatmul.msk.bf16.vlgmr.msrb.gmra.mxu1 %vm436_vm1, %v5975_v15  ;;  %5066 = vmatmul.msk.bf16.vlgmr.msrb.gmra.mxu2 %vm436_vm1, %v5975_v15 }
 0x141   : > { %9799 = vst [vmem:[#allocation86_spill] sm:$0xff] %v6658_v52  ;;  %1639 = vperm.xlu1 %5678, %v9752_v49   ;;  %v1492_v10 = vmul.f32 %v6660_v63, %v725_v21  ;;  %v730_v41 = vpop.f32.mrf.mxu0  ;;  %v9454_v21 = vmov 8  }
 0x142   : > { %9800 = vst [vmem:[#allocation87_spill] sm:$0xff] %v6660_v63  ;;  %1747 = vperm.xlu0 %5681, %v9758_v5   ;;  %v6669_v33 = vpop.f32.mrf.mxu2 }
 0x143   : > { %v6671_v53 = vadd.f32 %v1492_v10, %v1412_v62  ;;  %v6689_v10 = vld [vmem:[%s5947_s23] sm:$0xff] }
 0x144   : > { %v6673_v46 = vpop.f32.mrf.mxu1 }
 0x147   : > { %1655 = vperm.xlu2 %5676, %v6036_v50   ;;  %v6676_v3 = vpop.permute.xlu2 %1467 }
 0x148   : > { %9801 = vst [vmem:[#allocation88_spill] sm:$0xff] %v6676_v3  ;;  %v1494_v15 = vmul.f32 %v6676_v3, %v730_v41  ;;  %v6679_v48 = vpop.permute.xlu1 %1431  ;;  %v6681_v49 = vpop.permute.xlu0 %1471  ;;  %v9804_v41 = vld [vmem:[#allocation47_spill] sm:$0xff]  ;;  %v6718_v3 = vld [vmem:[%s5947_s23 + $0x8] sm:$0xff] }
 0x149   : > { %9802 = vst [vmem:[#allocation89_spill] sm:$0xff] %v6679_v48  ;;  %1651 = vperm.xlu1 %5678, %v9758_v5   ;;  %v1482_v5 = vmul.f32 %v6658_v52, %v9804_v41  ;;  %v9809_v52 = vmov 7  }
 0x14a   : > { %9803 = vst [vmem:[#allocation90_spill] sm:$0xff] %v6681_v49  ;;  %5682 = vset.pattern.permute.xlu0 %v9454_v21  ;;  %v6686_v62 = vadd.f32 %v1494_v15, %v6584_v57  ;;  %v6692_v50 = vpop.f32.mrf.mxu2 }
 0x14b   : > { %1803 = vperm.xlu0 %5682, %v6689_v10   ;;  %5054 = vmatmul.msk.bf16.gmra.mxu0 %vm436_vm1, %v5980_v18  ;;  %v1498_v0 = vadd.f32 %v1482_v5, %v6419_v61 }
 0x14c   : > { %v754_v14 = vpop.f32.mrf.mxu1 }
 0x14f   : > { %1667 = vperm.xlu2 %5676, %v6056_v56   ;;  %v6699_v21 = vpop.permute.xlu2 %1479 }
 0x150   : > { %9805 = vst [vmem:[#allocation47_spill] sm:$0xff] %v6699_v21  ;;  %v6701_v57 = vpop.permute.xlu1 %1439  ;;  %5059 = vmatmul.msk.bf16.gmra.mxu1 %vm436_vm1, %v9764_v32  ;;  %5067 = vmatmul.msk.bf16.gmra.mxu2 %vm436_vm1, %v9764_v32  ;;  %v9808_v32 = vld [vmem:[#allocation60_spill] sm:$0xff] }
 0x151   : > { %9806 = vst [vmem:[#allocation91_spill] sm:$0xff] %v6701_v57  ;;  %1663 = vperm.xlu1 %5678, %v9769_v1   ;;  %v6708_v15 = vpop.permute.xlu0 %1515  ;;  %v1484_v1 = vmul.f32 %v6618_v24, %v9808_v32  ;;  %v1486_v24 = vmul.f32 %v6610_v22, %v6401_v30  ;;  %v1487_v22 = vmul.f32 %v6701_v57, %v6444_v6 }
 0x152   : > { %9807 = vst [vmem:[#allocation92_spill] sm:$0xff] %v6708_v15  ;;  %v1578_v41 = vmul.f32 %v6708_v15, %v749_v42  ;;  %v6713_v56 = vpop.f32.mrf.mxu2  ;;  %v6744_v15 = vpop.f32.mrf.mxu0 }
 0x153   : > { %5687 = vset.pattern.permute.xlu0 %v9466_v8  ;;  %9813 = vst [vmem:[#allocation95_spill] sm:$0xff] %v6744_v15 }
 0x154   : > { %v6715_v31 = vadd.f32 %v1578_v41, %v1498_v0  ;;  %1999 = vperm.xlu0 %5687, %v6718_v3   ;;  %v6723_v63 = vpop.f32.mrf.mxu1  ;;  %v1500_v0 = vadd.f32 %v1484_v1, %v6536_v19 }
 0x157   : > { %5680 = vset.pattern.permute.xlu2 %v9809_v52 }
 0x158   : > { %v6726_v61 = vpop.permute.xlu1 %1451  ;;  %1711 = vperm.xlu2 %5680, %v6718_v3   ;;  %v6729_v42 = vpop.permute.xlu2 %1523 }
 0x159   : > { %9810 = vst [vmem:[#allocation60_spill] sm:$0xff] %v6726_v61  ;;  %5679 = vset.pattern.permute.xlu1 %v9809_v52  ;;  %v1580_v5 = vmul.f32 %v6729_v42, %v754_v14  ;;  %v6734_v41 = vpop.permute.xlu0 %1535 }
 0x15a   : > { %9811 = vst [vmem:[#allocation93_spill] sm:$0xff] %v6729_v42  ;;  %1707 = vperm.xlu1 %5679, %v6689_v10   ;;  %v6739_v8 = vpop.f32.mrf.mxu2  ;;  %v6764_v42 = vld [vmem:[%s5947_s23 + $0x18] sm:$0xff]  ;;  %v735_v6 = vpop.f32.mrf.mxu0 }
 0x15b   : > { %9812 = vst [vmem:[#allocation94_spill] sm:$0xff] %v6734_v41  ;;  %v6737_v32 = vadd.f32 %v1580_v5, %v1500_v0  ;;  %5055 = vmatmul.msk.bf16.gmra.mxu0 %vm436_vm1, %v9755_v43  ;;  %v1502_v0 = vadd.f32 %v1486_v24, %v6568_v29  ;;  %v9817_v29 = vmov 8   ;;  %v6773_v24 = vld [vmem:[%s5947_s23 + $0x28] sm:$0xff] }
 0x15c   : > { %2003 = vperm.xlu0 %5687, %v6621_v23   ;;  %v759_v19 = vpop.f32.mrf.mxu1 }
 0x160   : > { %v6748_v14 = vpop.permute.xlu1 %1463  ;;  %1723 = vperm.xlu2 %5680, %v6642_v35   ;;  %v6751_v1 = vpop.permute.xlu2 %1531  ;;  %5060 = vmatmul.msk.bf16.gmra.mxu1 %vm436_vm1, %v5977_v16 }
 0x161   : > { %9814 = vst [vmem:[#allocation96_spill] sm:$0xff] %v6748_v14  ;;  %v1582_v30 = vmul.f32 %v6751_v1, %v759_v19  ;;  %v6757_v5 = vpop.permute.xlu0 %1547  ;;  %5068 = vmatmul.msk.bf16.gmra.mxu2 %vm436_vm1, %v5977_v16  ;;  %v1503_v16 = vadd.f32 %v1487_v22, %v6472_v12 }
 0x162   : > { %9815 = vst [vmem:[#allocation97_spill] sm:$0xff] %v6751_v1  ;;  %1719 = vperm.xlu1 %5679, %v6764_v42  }
 0x163   : > { %9816 = vst [vmem:[#allocation98_spill] sm:$0xff] %v6757_v5  ;;  %v6767_v17 = vadd.f32 %v1582_v30, %v1502_v0  ;;  %v6769_v21 = vpop.f32.mrf.mxu2  ;;  %v6783_v0 = vld [vmem:[%s5947_s23 + $0x30] sm:$0xff] }
 0x164   : > { %5694 = vset.pattern.permute.xlu0 %v9817_v29  ;;  %v761_v19 = vpop.f32.mrf.mxu1 }
 0x165   : > { %1823 = vperm.xlu0 %5694, %v6773_v24   ;;  %v1583_v1 = vmul.f32 %v6734_v41, %v761_v19  ;;  %v9821_v19 = vld [vmem:[#allocation52_spill] sm:$0xff] }
 0x167   : > { %v6778_v57 = vadd.f32 %v1583_v1, %v1503_v16  ;;  %v1483_v16 = vmul.f32 %v6580_v28, %v9821_v19  ;;  %v1489_v19 = vmul.f32 %v6639_v9, %v6516_v58  ;;  %v6820_v28 = vld [vmem:[%s5947_s23 + $0x40] sm:$0xff]  ;;  %v6831_v9 = vld [vmem:[%s5947_s23 + $0x38] sm:$0xff] }
 0x168   : > { %v6780_v49 = vpop.permute.xlu1 %1475  ;;  %1731 = vperm.xlu2 %5680, %v6783_v0   ;;  %v6786_v30 = vpop.permute.xlu2 %1543 }
 0x169   : > { %9818 = vst [vmem:[#allocation99_spill] sm:$0xff] %v6780_v49  ;;  %v1496_v15 = vmul.f32 %v6780_v49, %v735_v6  ;;  %v6789_v26 = vpop.permute.xlu0 %1559  ;;  %v6803_v6 = vld [vmem:[%s5947_s23 + $0x48] sm:$0xff]  ;;  %v1499_v41 = vadd.f32 %v1483_v16, %v6475_v27  ;;  %v1485_v27 = vmul.f32 %v6679_v48, %v6369_v38  ;;  %v1505_v16 = vadd.f32 %v1489_v19, %v6594_v25  ;;  %v6848_v19 = vld [vmem:[%s5947_s23 + $0x58] sm:$0xff] }
 0x16a   : > { %9819 = vst [vmem:[#allocation100_spill] sm:$0xff] %v6786_v30  ;;  %1727 = vperm.xlu1 %5679, %v6773_v24   ;;  %v1490_v25 = vmul.f32 %v6726_v61, %v6545_v7  ;;  %v1488_v7 = vmul.f32 %v6635_v60, %v6477_v4 }
 0x16b   : > { %9820 = vst [vmem:[#allocation101_spill] sm:$0xff] %v6789_v26  ;;  %v6792_v12 = vpop.f32.mrf.mxu2  ;;  %v6795_v22 = vadd.f32 %v1496_v15, %v6637_v54  ;;  %5056 = vmatmul.msk.bf16.gmra.mxu0 %vm436_vm1, %v9773_v36  ;;  %v1501_v38 = vadd.f32 %v1485_v27, %v6450_v2 }
 0x16c   : > { %v764_v1 = vpop.f32.mrf.mxu1  ;;  %v1506_v27 = vadd.f32 %v1490_v25, %v6509_v45  ;;  %v1504_v4 = vadd.f32 %v1488_v7, %v6512_v39 }
 0x16d   : > { %1827 = vperm.xlu0 %5694, %v6783_v0  }
 0x170   : > { %1743 = vperm.xlu2 %5680, %v6803_v6   ;;  %v6806_v49 = vpop.permute.xlu2 %1555  ;;  %5061 = vmatmul.msk.bf16.gmra.mxu1 %vm436_vm1, %v6029_v47 }
 0x171   : > { %9822 = vst [vmem:[#allocation52_spill] sm:$0xff] %v6806_v49  ;;  %v6810_v54 = vpop.permute.xlu1 %1519  ;;  %v6812_v15 = vpop.permute.xlu0 %1571  ;;  %5069 = vmatmul.msk.bf16.gmra.mxu2 %vm436_vm1, %v6029_v47 }
 0x172   : > { %9823 = vst [vmem:[#allocation102_spill] sm:$0xff] %v6810_v54  ;;  %1739 = vperm.xlu1 %5679, %v6820_v28   ;;  %v1579_v26 = vmul.f32 %v6810_v54, %v6673_v46  ;;  %v6837_v46 = vld [vmem:[%s5947_s23 + $0x60] sm:$0xff] }
 0x173   : > { %9824 = vst [vmem:[#allocation103_spill] sm:$0xff] %v6812_v15  ;;  %v813_v37 = vpop.f32.mrf.mxu2 }
 0x174   : > { %v1595_v14 = vadd.f32 %v1579_v26, %v1499_v41  ;;  %v766_v47 = vpop.f32.mrf.mxu1 }
 0x175   : > { %5701 = vset.pattern.permute.xlu0 %v9494_v20  ;;  %v1585_v58 = vmul.f32 %v6786_v30, %v766_v47 }
 0x176   : > { %1927 = vperm.xlu0 %5701, %v6831_v9  }
 0x177   : > { %v6834_v44 = vadd.f32 %v1585_v58, %v1505_v16 }
 0x178   : > { %1755 = vperm.xlu2 %5680, %v6837_v46   ;;  %v6840_v26 = vpop.permute.xlu2 %1567 }
 0x179   : > { %9825 = vst [vmem:[#allocation104_spill] sm:$0xff] %v6840_v26  ;;  %v6842_v41 = vpop.permute.xlu1 %1527 }
 0x17a   : > { %9826 = vst [vmem:[#allocation105_spill] sm:$0xff] %v6842_v41  ;;  %1751 = vperm.xlu1 %5679, %v6848_v19   ;;  %v1581_v47 = vmul.f32 %v6842_v41, %v6723_v63  ;;  %v6853_v16 = vpop.permute.xlu0 %1615 }
 0x17b   : > { %9827 = vst [vmem:[#allocation106_spill] sm:$0xff] %v6853_v16  ;;  %v1675_v58 = vmul.f32 %v6853_v16, %v6692_v50  ;;  %v6857_v20 = vpop.f32.mrf.mxu2  ;;  %5057 = vmatmul.msk.bf16.gmra.mxu0 %vm436_vm1, %v9788_v51  ;;  %v9828_v50 = vmov 9  }
 0x17c   : > { %v1597_v30 = vadd.f32 %v1581_v47, %v1501_v38 }
 0x17d   : > { %v6859_v48 = vadd.f32 %v1675_v58, %v1595_v14  ;;  %v769_v2 = vpop.f32.mrf.mxu1 }
 0x17e   : > { %v1586_v63 = vmul.f32 %v6757_v5, %v769_v2  ;;  %1931 = vperm.xlu0 %5701, %v6820_v28  }
 0x180   : > { %v1602_v61 = vadd.f32 %v1586_v63, %v1506_v27  ;;  %5684 = vset.pattern.permute.xlu2 %v9828_v50  ;;  %5062 = vmatmul.msk.bf16.gmra.mxu1 %vm436_vm1, %v5980_v18 }
 0x181   : > { %v6871_v14 = vpop.permute.xlu1 %1539  ;;  %1899 = vperm.xlu2 %5684, %v6689_v10   ;;  %v6874_v38 = vpop.permute.xlu2 %1611  ;;  %5070 = vmatmul.msk.bf16.gmra.mxu2 %vm436_vm1, %v5980_v18 }
 0x182   : > { %9829 = vst [vmem:[#allocation107_spill] sm:$0xff] %v6871_v14  ;;  %5683 = vset.pattern.permute.xlu1 %v9817_v29  ;;  %v1584_v45 = vmul.f32 %v6871_v14, %v764_v1  ;;  %v1674_v25 = vmul.f32 %v6874_v38, %v6669_v33  ;;  %v9832_v1 = vmov 10  }
 0x183   : > { %9830 = vst [vmem:[#allocation108_spill] sm:$0xff] %v6874_v38  ;;  %1807 = vperm.xlu1 %5683, %v6718_v3   ;;  %v818_v47 = vpop.f32.mrf.mxu2  ;;  %v6884_v58 = vpop.permute.xlu0 %1635 }
 0x184   : > { %9831 = vst [vmem:[#allocation109_spill] sm:$0xff] %v6884_v58  ;;  %v1600_v2 = vadd.f32 %v1584_v45, %v1504_v4  ;;  %v6887_v27 = vadd.f32 %v1674_v25, %v6715_v31  ;;  %v1680_v18 = vmul.f32 %v6884_v58, %v813_v37 }
 0x185   : > { %v6890_v39 = vpop.f32.mrf.mxu1 }
 0x186   : > { %v6892_v7 = vadd.f32 %v1680_v18, %v1600_v2  ;;  %5708 = vset.pattern.permute.xlu0 %v9832_v1  ;;  %v6912_v2 = vld [vmem:[%s5947_s23 + $0x50] sm:$0xff] }
 0x187   : > { %2031 = vperm.xlu0 %5708, %v6803_v6  }
 0x189   : > { %v6896_v33 = vpop.permute.xlu1 %1551  ;;  %5686 = vset.pattern.permute.xlu2 %v9832_v1  ;;  %v6899_v63 = vpop.permute.xlu2 %1623 }
 0x18a   : > { %9833 = vst [vmem:[#allocation110_spill] sm:$0xff] %v6896_v33  ;;  %v1677_v31 = vmul.f32 %v6899_v63, %v6739_v8  ;;  %1995 = vperm.xlu2 %5686, %v6689_v10  }
 0x18b   : > { %9834 = vst [vmem:[#allocation111_spill] sm:$0xff] %v6899_v63  ;;  %5685 = vset.pattern.permute.xlu1 %v9828_v50  ;;  %v6905_v37 = vpop.f32.mrf.mxu2 }
 0x18c   : > { %v6907_v4 = vadd.f32 %v1677_v31, %v1597_v30  ;;  %1903 = vperm.xlu1 %5685, %v6718_v3  }
 0x18d   : > { %v774_v45 = vpop.f32.mrf.mxu1 }
 0x18e   : > { %v1588_v25 = vmul.f32 %v6806_v49, %v774_v45 }
 0x18f   : > { %2035 = vperm.xlu0 %5708, %v6912_v2  }
 0x190   : > { %v6916_v18 = vadd.f32 %v1588_v25, %v6671_v53  ;;  %5063 = vmatmul.msk.bf16.gmra.mxu1 %vm436_vm1, %v9755_v43 }
 0x191   : > { %v6920_v8 = vpop.permute.xlu1 %1563  ;;  %v6922_v10 = vpop.permute.xlu2 %1631  ;;  %5071 = vmatmul.msk.bf16.gmra.mxu2 %vm436_vm1, %v9755_v43 }
 0x192   : > { %9835 = vst [vmem:[#allocation112_spill] sm:$0xff] %v6920_v8  ;;  %v1679_v3 = vmul.f32 %v6922_v10, %v6792_v12  ;;  %5689 = vset.pattern.permute.xlu2 %v9817_v29  ;;  %v6940_v43 = vpop.permute.xlu0 %1647  ;;  %v5583_v12 = vld [vmem:[%s9321_s3 + $0x274] sm:$0xf] }
 0x193   : > { %9836 = vst [vmem:[#allocation113_spill] sm:$0xff] %v6922_v10  ;;  %v6929_v30 = vpop.f32.mrf.mxu2  ;;  %1815 = vperm.xlu2 %5689, %v6764_v42  }
 0x194   : > { %v6933_v53 = vadd.f32 %v1679_v3, %v6778_v57  ;;  %5688 = vset.pattern.permute.xlu1 %v9817_v29  ;;  %9837 = vst [vmem:[#allocation114_spill] sm:$0xff] %v6940_v43  ;;  %v5394_v57 = vld [vmem:[%s9321_s3 + $0x29c] sm:$0xf0] }
 0x195   : > { %1811 = vperm.xlu1 %5688, %v6621_v23   ;;  %v6937_v31 = vpop.f32.mrf.mxu1  ;;  %v5397_v3 = vor.u32 %v5583_v12, %v5394_v57 }
 0x197   : > { %5715 = vset.pattern.permute.xlu0 %v9817_v29  ;;  %2805 = vmatpush.bf16.msra.mxu2 %v5397_v3  ;;  %v5587_v3 = vld [vmem:[%s9321_s3 + $0x290] sm:$0xf0] }
 0x198   : > { %1851 = vperm.xlu0 %5715, %v6837_v46  }
 0x199   : > { %v6949_v45 = vpop.permute.xlu1 %1575  ;;  %v6951_v25 = vpop.permute.xlu2 %1643 }
 0x19a   : > { %9838 = vst [vmem:[#allocation115_spill] sm:$0xff] %v6949_v45  ;;  %v1682_v49 = vmul.f32 %v6951_v25, %v818_v47  ;;  %v5120_v45 = vld [vmem:[%s9321_s3 + $0x58] sm:$0xf] }
 0x19b   : > { %9839 = vst [vmem:[#allocation116_spill] sm:$0xff] %v6951_v25  ;;  %v6954_v5 = vpop.f32.mrf.mxu2  ;;  %5691 = vset.pattern.permute.xlu2 %v9828_v50  ;;  %v7004_v25 = vld [vmem:[%s5947_s23 + $0x70] sm:$0xff] }
 0x19c   : > { %9840 = vst [vmem:[#allocation117_spill] sm:$0xff] %v6954_v5  ;;  %v6957_v58 = vadd.f32 %v1682_v49, %v1602_v61  ;;  %1911 = vperm.xlu2 %5691, %v6764_v42   ;;  %v6972_v49 = vld [vmem:[%s5947_s23 + $0x68] sm:$0xff]  ;;  %v6975_v61 = vpop.permute.xlu0 %1659 }
 0x19d   : > { %5690 = vset.pattern.permute.xlu1 %v9828_v50  ;;  %v779_v14 = vpop.f32.mrf.mxu1  ;;  %9842 = vst [vmem:[#allocation119_spill] sm:$0xff] %v6975_v61 }
 0x19e   : > { %v1590_v60 = vmul.f32 %v6920_v8, %v779_v14  ;;  %1907 = vperm.xlu1 %5690, %v6621_v23  }
 0x1a0   : > { %v1606_v12 = vadd.f32 %v1590_v60, %v6686_v62  ;;  %5064 = vmatmul.msk.bf16.gmra.mxu1 %vm436_vm1, %v9773_v36  ;;  %5720 = vset.pattern.permute.xlu0 %v9832_v1 }
 0x1a1   : > { %v6967_v47 = vpop.permute.xlu2 %1655  ;;  %5072 = vmatmul.msk.bf16.gmra.mxu2 %vm436_vm1, %v9773_v36  ;;  %2047 = vperm.xlu0 %5720, %v6972_v49   ;;  %v5384_v36 = vld [vmem:[%s9321_s3 + $0x268] sm:$0xf] }
 0x1a2   : > { %9841 = vst [vmem:[#allocation118_spill] sm:$0xff] %v6967_v47 }
 0x1a3   : > { %v6977_v14 = vpop.permute.xlu1 %1619  ;;  %v828_v23 = vpop.f32.mrf.mxu2 }
 0x1a4   : > { %v1686_v60 = vmul.f32 %v6975_v61, %v828_v23  ;;  %5693 = vset.pattern.permute.xlu2 %v9817_v29  ;;  %v5572_v23 = vld [vmem:[%s9321_s3 + $0x21c] sm:$0xf]  ;;  %v5385_v61 = vor.u32 %v5587_v3, %v5384_v36  ;;  %v5386_v3 = vld [vmem:[%s9321_s3 + $0x294] sm:$0xf0] }
 0x1a5   : > { %v6981_v62 = vpop.f32.mrf.mxu1  ;;  %1819 = vperm.xlu2 %5693, %v6642_v35  }
 0x1a6   : > { %9843 = vst [vmem:[#allocation120_spill] sm:$0xff] %v6981_v62  ;;  %v6984_v57 = vadd.f32 %v1686_v60, %v1606_v12  ;;  %5692 = vset.pattern.permute.xlu1 %v9832_v1  ;;  %v5350_v12 = vld [vmem:[%s9321_s3 + $0x244] sm:$0xf0]  ;;  %2658 = vmatpush.bf16.msrb.mxu3 %v5385_v61  ;;  %v5582_v61 = vld [vmem:[%s9321_s3 + $0x26c] sm:$0xf] }
 0x1a7   : > { %2007 = vperm.xlu1 %5692, %v6764_v42   ;;  %v5353_v60 = vor.u32 %v5572_v23, %v5350_v12  ;;  %v5392_v23 = vld [vmem:[%s9321_s3 + $0x270] sm:$0xf] }
 0x1a8   : > { %9844 = vst [vmem:[#allocation121_spill] sm:$0xff] %v6984_v57 }
 0x1a9   : > { %5725 = vset.pattern.permute.xlu0 %v9828_v50  ;;  %v7001_v8 = vpop.permute.xlu2 %1667  ;;  %2806 = vmatpush.bf16.msra.mxu2 %v5353_v60  ;;  %v5389_v60 = vor.u32 %v5582_v61, %v5386_v3 }
 0x1aa   : > { %9845 = vst [vmem:[#allocation122_spill] sm:$0xff] %v7001_v8  ;;  %1955 = vperm.xlu0 %5725, %v7004_v25  }
 0x1ab   : > { %v7007_v10 = vpop.permute.xlu1 %1627  ;;  %v7009_v63 = vpop.f32.mrf.mxu2  ;;  %2707 = vmatpush.bf16.msrb.mxu0 %v5389_v60 }
 0x1ac   : > { %9846 = vst [vmem:[#allocation123_spill] sm:$0xff] %v7007_v10 }
 0x1ad   : > { %9847 = vst [vmem:[#allocation124_spill] sm:$0xff] %v7009_v63  ;;  %v784_v42 = vpop.f32.mrf.mxu1  ;;  %5696 = vset.pattern.permute.xlu2 %v9828_v50 }
 0x1ae   : > { %v1592_v36 = vmul.f32 %v6812_v15, %v784_v42  ;;  %1919 = vperm.xlu2 %5696, %v6773_v24   ;;  %v5588_v42 = vld [vmem:[%s9321_s3 + $0x298] sm:$0xf0] }
 0x1af   : > { %5695 = vset.pattern.permute.xlu1 %v9828_v50  ;;  %v5393_v15 = vor.u32 %v5588_v42, %v5392_v23 }
 0x1b0   : > { %v1608_v12 = vadd.f32 %v1592_v36, %v6795_v22  ;;  %1915 = vperm.xlu1 %5695, %v6642_v35   ;;  %5065 = vmatmul.msk.bf16.gmra.mxu1 %vm436_vm1, %v9788_v51 }
 0x1b1   : > { %5073 = vmatmul.msk.bf16.gmra.mxu2 %vm436_vm1, %v9788_v51  ;;  %2756 = vmatpush.bf16.msra.mxu1 %v5393_v15  ;;  %v5340_v51 = vld [vmem:[%s9321_s3 + $0x210] sm:$0xf] }
 0x1b2   : > { %5729 = vset.pattern.permute.xlu0 %v9832_v1  ;;  %v7039_v3 = vpop.permute.xlu2 %1711 }
 0x1b3   : > { %v7034_v41 = vpop.permute.xlu1 %1639  ;;  %v833_v22 = vpop.f32.mrf.mxu2 }
 0x1b4   : > { %9848 = vst [vmem:[#allocation125_spill] sm:$0xff] %v7034_v41  ;;  %v1681_v36 = vmul.f32 %v7034_v41, %v6857_v20  ;;  %v1688_v61 = vmul.f32 %v7001_v8, %v833_v22  ;;  %v5576_v20 = vld [vmem:[%s9321_s3 + $0x238] sm:$0xf0]  ;;  %v5208_v41 = vld [vmem:[%s9321_s3 + $0x108] sm:$0xf] }
 0x1b5   : > { %v5341_v15 = vor.u32 %v5576_v20, %v5340_v51 }
 0x1b6   : > { %v7042_v16 = vadd.f32 %v1681_v36, %v6834_v44  ;;  %v7044_v23 = vadd.f32 %v1688_v61, %v1608_v12  ;;  %5698 = vset.pattern.permute.xlu2 %v9832_v1  ;;  %v5561_v44 = vld [vmem:[%s9321_s3 + $0x1c4] sm:$0xf]  ;;  %v5306_v12 = vld [vmem:[%s9321_s3 + $0x1ec] sm:$0xf0]  ;;  %v5571_v61 = vld [vmem:[%s9321_s3 + $0x214] sm:$0xf] }
 0x1b7   : > { %2015 = vperm.xlu2 %5698, %v6773_v24   ;;  %v5309_v24 = vor.u32 %v5561_v44, %v5306_v12  ;;  %2659 = vmatpush.bf16.msrb.mxu3 %v5341_v15  ;;  %v5296_v12 = vld [vmem:[%s9321_s3 + $0x1b8] sm:$0xf] }
 0x1b8   : > { %9849 = vst [vmem:[#allocation126_spill] sm:$0xff] %v7044_v23  ;;  %5697 = vset.pattern.permute.xlu1 %v9832_v1 }
 0x1b9   : > { %2011 = vperm.xlu1 %5697, %v6642_v35   ;;  %2807 = vmatpush.bf16.msra.mxu2 %v5309_v24  ;;  %v5342_v35 = vld [vmem:[%s9321_s3 + $0x23c] sm:$0xf0]  ;;  %v5565_v24 = vld [vmem:[%s9321_s3 + $0x1e0] sm:$0xf0] }
 0x1ba   : > { %v7069_v36 = vpop.permute.xlu2 %1723  ;;  %v5345_v51 = vor.u32 %v5571_v61, %v5342_v35  ;;  %v5297_v61 = vor.u32 %v5565_v24, %v5296_v12  ;;  %v5262_v35 = vld [vmem:[%s9321_s3 + $0x194] sm:$0xf0]  ;;  %v5304_v12 = vld [vmem:[%s9321_s3 + $0x1c0] sm:$0xf]  ;;  %v5566_v24 = vld [vmem:[%s9321_s3 + $0x1e8] sm:$0xf0] }
 0x1bb   : > { %v7062_v60 = vpop.permute.xlu1 %1651  ;;  %9852 = vst [vmem:[#allocation129_spill] sm:$0xff] %v7069_v36  ;;  %v7276_v63 = vpop.f32.mrf.mxu2 }
 0x1bc   : > { %9850 = vst [vmem:[#allocation127_spill] sm:$0xff] %v7062_v60  ;;  %v1684_v42 = vmul.f32 %v7062_v60, %v6929_v30  ;;  %2708 = vmatpush.bf16.msrb.mxu0 %v5345_v51  ;;  %v5577_v30 = vld [vmem:[%s9321_s3 + $0x240] sm:$0xf0]  ;;  %2660 = vmatpush.bf16.msrb.mxu3 %v5297_v61 }
 0x1bd   : > { %9869 = vst [vmem:[#allocation146_spill] sm:$0xff] %v7276_v63 }
 0x1be   : > { %v7067_v22 = vadd.f32 %v1684_v42, %v6916_v18  ;;  %v5348_v18 = vld [vmem:[%s9321_s3 + $0x218] sm:$0xf]  ;;  %v5550_v42 = vld [vmem:[%s9321_s3 + $0x16c] sm:$0xf] }
 0x1bf   : > { %5700 = vset.pattern.permute.xlu2 %v9828_v50  ;;  %v5349_v15 = vor.u32 %v5577_v30, %v5348_v18  ;;  %v7109_v18 = vpop.permute.xlu0 %1671  ;;  %v5560_v30 = vld [vmem:[%s9321_s3 + $0x1bc] sm:$0xf] }
 0x1c0   : > { %9851 = vst [vmem:[#allocation128_spill] sm:$0xff] %v7067_v22  ;;  %1923 = vperm.xlu2 %5700, %v6783_v0  }
 0x1c1   : > { %5699 = vset.pattern.permute.xlu1 %v9817_v29  ;;  %2757 = vmatpush.bf16.msra.mxu1 %v5349_v15  ;;  %9856 = vst [vmem:[#allocation133_spill] sm:$0xff] %v7109_v18  ;;  %v5298_v15 = vld [vmem:[%s9321_s3 + $0x1e4] sm:$0xf0] }
 0x1c2   : > { %1831 = vperm.xlu1 %5699, %v6831_v9   ;;  %v7090_v44 = vpop.permute.xlu2 %1731 }
 0x1c3   : > { %v7087_v20 = vpop.permute.xlu1 %1663  ;;  %9854 = vst [vmem:[#allocation131_spill] sm:$0xff] %v7090_v44 }
 0x1c4   : > { %9853 = vst [vmem:[#allocation130_spill] sm:$0xff] %v7087_v20 }
 0x1c7   : > { %v7158_v54 = vpop.permute.xlu0 %1715 }
 0x1c8   : > { %5703 = vset.pattern.permute.xlu2 %v9832_v1  ;;  %9859 = vst [vmem:[#allocation136_spill] sm:$0xff] %v7158_v54 }
 0x1c9   : > { %2023 = vperm.xlu2 %5703, %v6831_v9   ;;  %v5265_v9 = vor.u32 %v5550_v42, %v5262_v35  ;;  %v5305_v42 = vor.u32 %v5566_v24, %v5304_v12  ;;  %v5252_v35 = vld [vmem:[%s9321_s3 + $0x160] sm:$0xf]  ;;  %v5260_v24 = vld [vmem:[%s9321_s3 + $0x168] sm:$0xf] }
 0x1ca   : > { %5702 = vset.pattern.permute.xlu1 %v9832_v1  ;;  %v7125_v61 = vpop.permute.xlu2 %1743 }
 0x1cb   : > { %2019 = vperm.xlu1 %5702, %v6783_v0   ;;  %2808 = vmatpush.bf16.msra.mxu2 %v5265_v9  ;;  %v5301_v0 = vor.u32 %v5560_v30, %v5298_v15  ;;  %9857 = vst [vmem:[#allocation134_spill] sm:$0xff] %v7125_v61  ;;  %v5554_v9 = vld [vmem:[%s9321_s3 + $0x188] sm:$0xf0]  ;;  %v5549_v30 = vld [vmem:[%s9321_s3 + $0x164] sm:$0xf] }
 0x1cc   : > { %v7107_v51 = vpop.permute.xlu1 %1707  ;;  %2758 = vmatpush.bf16.msra.mxu1 %v5305_v42  ;;  %v5253_v12 = vor.u32 %v5554_v9, %v5252_v35  ;;  %v5555_v42 = vld [vmem:[%s9321_s3 + $0x190] sm:$0xf0]  ;;  %v5218_v9 = vld [vmem:[%s9321_s3 + $0x13c] sm:$0xf0] }
 0x1cd   : > { %9855 = vst [vmem:[#allocation132_spill] sm:$0xff] %v7107_v51  ;;  %2709 = vmatpush.bf16.msrb.mxu0 %v5301_v0  ;;  %v5254_v0 = vld [vmem:[%s9321_s3 + $0x18c] sm:$0xf0]  ;;  %v5261_v60 = vor.u32 %v5555_v42, %v5260_v24  ;;  %v5539_v35 = vld [vmem:[%s9321_s3 + $0x114] sm:$0xf] }
 0x1ce   : > { %v5257_v8 = vor.u32 %v5549_v30, %v5254_v0  ;;  %2661 = vmatpush.bf16.msrb.mxu3 %v5253_v12  ;;  %v5221_v38 = vor.u32 %v5539_v35, %v5218_v9  ;;  %v5210_v30 = vld [vmem:[%s9321_s3 + $0x134] sm:$0xf0]  ;;  %v5216_v24 = vld [vmem:[%s9321_s3 + $0x110] sm:$0xf]  ;;  %v5544_v42 = vld [vmem:[%s9321_s3 + $0x138] sm:$0xf0] }
 0x1cf   : > { %v5164_v35 = vld [vmem:[%s9321_s3 + $0xb0] sm:$0xf]  ;;  %v5217_v9 = vor.u32 %v5544_v42, %v5216_v24  ;;  %v5533_v24 = vld [vmem:[%s9321_s3 + $0xe0] sm:$0xf0]  ;;  %v5528_v42 = vld [vmem:[%s9321_s3 + $0xbc] sm:$0xf] }
 0x1d0   : > { %2759 = vmatpush.bf16.msra.mxu1 %v5261_v60  ;;  %v5538_v60 = vld [vmem:[%s9321_s3 + $0x10c] sm:$0xf]  ;;  %2809 = vmatpush.bf16.msra.mxu2 %v5221_v38  ;;  %v5172_v38 = vld [vmem:[%s9321_s3 + $0xb8] sm:$0xf] }
 0x1d1   : > { %5705 = vset.pattern.permute.xlu2 %v9817_v29  ;;  %2710 = vmatpush.bf16.msrb.mxu0 %v5257_v8  ;;  %v5543_v8 = vld [vmem:[%s9321_s3 + $0x130] sm:$0xf0]  ;;  %v5213_v0 = vor.u32 %v5538_v60, %v5210_v30  ;;  %v5166_v60 = vld [vmem:[%s9321_s3 + $0xdc] sm:$0xf0] }
 0x1d2   : > { %1839 = vperm.xlu2 %5705, %v6803_v6   ;;  %v5209_v12 = vor.u32 %v5543_v8, %v5208_v41  ;;  %v5532_v41 = vld [vmem:[%s9321_s3 + $0xd8] sm:$0xf0]  ;;  %v5527_v8 = vld [vmem:[%s9321_s3 + $0xb4] sm:$0xf] }
 0x1d3   : > { %5704 = vset.pattern.permute.xlu1 %v9817_v29  ;;  %v5165_v30 = vor.u32 %v5532_v41, %v5164_v35  ;;  %v7204_v35 = vpop.permute.xlu2 %1755  ;;  %v5173_v41 = vor.u32 %v5533_v24, %v5172_v38  ;;  %v7227_v38 = vpop.f32.mrf.mxu3 }
 0x1d4   : > { %1835 = vperm.xlu1 %5704, %v6820_v28   ;;  %v7138_v15 = vpop.permute.xlu1 %1719  ;;  %2662 = vmatpush.bf16.msrb.mxu3 %v5209_v12  ;;  %v5174_v12 = vld [vmem:[%s9321_s3 + $0xe4] sm:$0xf0]  ;;  %9861 = vst [vmem:[#allocation138_spill] sm:$0xff] %v7204_v35 }
 0x1d5   : > { %9858 = vst [vmem:[#allocation135_spill] sm:$0xff] %v7138_v15  ;;  %2711 = vmatpush.bf16.msrb.mxu0 %v5213_v0  ;;  %2760 = vmatpush.bf16.msra.mxu1 %v5217_v9  ;;  %v5177_v18 = vor.u32 %v5528_v42, %v5174_v12  ;;  %v5521_v0 = vld [vmem:[%s9321_s3 + $0x80] sm:$0xf0]  ;;  %v5128_v9 = vld [vmem:[%s9321_s3 + $0x60] sm:$0xf] }
 0x1d6   : > { %9863 = vst [vmem:[#allocation140_spill] sm:$0xff] %v7227_v38 }
 0x1d7   : > { %2810 = vmatpush.bf16.msra.mxu2 %v5177_v18  ;;  %v5122_v18 = vld [vmem:[%s9321_s3 + $0x84] sm:$0xf0] }
 0x1d8   : > { %2663 = vmatpush.bf16.msrb.mxu3 %v5165_v30  ;;  %v5522_v30 = vld [vmem:[%s9321_s3 + $0x88] sm:$0xf0] }
 0x1d9   : > { %2761 = vmatpush.bf16.msra.mxu1 %v5173_v41  ;;  %v5129_v42 = vor.u32 %v5522_v30, %v5128_v9  ;;  %v5510_v41 = vld [vmem:[%s9321_s3 + $0x28] sm:$0xf0]  ;;  %v5084_v30 = vld [vmem:[%s9321_s3 + $0x8] sm:$0xf] }
 0x1da   : > { %5707 = vset.pattern.permute.xlu2 %v9832_v1 }
 0x1db   : > { %2027 = vperm.xlu2 %5707, %v6820_v28   ;;  %v5169_v28 = vor.u32 %v5527_v8, %v5166_v60  ;;  %v5516_v8 = vld [vmem:[%s9321_s3 + $0x5c] sm:$0xf]  ;;  %v7216_v60 = vpop.permute.xlu0 %1735  ;;  %v7267_v35 = vpop.permute.xlu2 %1899 }
 0x1dc   : > { %5706 = vset.pattern.permute.xlu1 %v9828_v50  ;;  %v7199_v23 = vpop.permute.xlu1 %1727  ;;  %9862 = vst [vmem:[#allocation139_spill] sm:$0xff] %v7216_v60  ;;  %v5125_v24 = vor.u32 %v5516_v8, %v5122_v18  ;;  %v5505_v8 = vld [vmem:[%s9321_s3 + $0x4] sm:$0xf] }
 0x1dd   : > { %9860 = vst [vmem:[#allocation137_spill] sm:$0xff] %v7199_v23  ;;  %1935 = vperm.xlu1 %5706, %v6803_v6   ;;  %2712 = vmatpush.bf16.msrb.mxu0 %v5169_v28  ;;  %v5121_v6 = vor.u32 %v5521_v0, %v5120_v45  ;;  %v5517_v45 = vld [vmem:[%s9321_s3 + $0x64] sm:$0xf]  ;;  %v5130_v28 = vld [vmem:[%s9321_s3 + $0x8c] sm:$0xf0] }
 0x1de   : > { %v5133_v12 = vor.u32 %v5517_v45, %v5130_v28  ;;  %v5076_v0 = vld [vmem:[%s9321_s3] sm:$0xf]  ;;  %v5511_v45 = vld [vmem:[%s9321_s3 + $0x30] sm:$0xf0]  ;;  %v7257_v28 = vpop.f32.mrf.mxu0  ;;  %2762 = vmatpush.bf16.msra.mxu1 %v5129_v42 }
 0x1df   : > { %2664 = vmatpush.bf16.msrb.mxu3 %v5121_v6  ;;  %v5077_v9 = vor.u32 %v5510_v41, %v5076_v0  ;;  %v5078_v6 = vld [vmem:[%s9321_s3 + $0x2c] sm:$0xf0]  ;;  %9865 = vst [vmem:[#allocation142_spill] sm:$0xff] %v7257_v28  ;;  %v5086_v0 = vld [vmem:[%s9321_s3 + $0x34] sm:$0xf0]  ;;  %v5085_v41 = vor.u32 %v5511_v45, %v5084_v30  ;;  %v847_v28 = vpop.f32.mrf.mxu3  ;;  %v994_v45 = vpop.f32.mrf.mxu2 }
 0x1e0   : > { %v5081_v38 = vor.u32 %v5505_v8, %v5078_v6  ;;  %2811 = vmatpush.bf16.msra.mxu2 %v5133_v12  ;;  %v7271_v8 = vpop.f32.mrf.mxu1  ;;  %v1770_v30 = vmul.f32 %v7107_v51, %v847_v28 }
 0x1e1   : > { %2713 = vmatpush.bf16.msrb.mxu0 %v5125_v24  ;;  %v5506_v24 = vld [vmem:[%s9321_s3 + $0xc] sm:$0xf]  ;;  %9867 = vst [vmem:[#allocation144_spill] sm:$0xff] %v7271_v8 }
 0x1e2   : > { %v5089_v57 = vor.u32 %v5506_v24, %v5086_v0  ;;  %2763 = vmatpush.bf16.msra.mxu1 %v5085_v41  ;;  %v1786_v63 = vadd.f32 %v1770_v30, %v6887_v27 }
 0x1e3   : > { %5710 = vset.pattern.permute.xlu2 %v9817_v29  ;;  %2665 = vmatpush.bf16.msrb.mxu3 %v5077_v9  ;;  %v7269_v42 = vpop.permute.xlu0 %1747 }
 0x1e4   : > { %v7245_v18 = vpop.permute.xlu1 %1739  ;;  %1847 = vperm.xlu2 %5710, %v6848_v19   ;;  %9866 = vst [vmem:[#allocation143_spill] sm:$0xff] %v7269_v42  ;;  %2812 = vmatpush.bf16.msra.mxu2 %v5089_v57 }
 0x1e5   : > { %9864 = vst [vmem:[#allocation141_spill] sm:$0xff] %v7245_v18  ;;  %5709 = vset.pattern.permute.xlu1 %v9817_v29  ;;  %2714 = vmatpush.bf16.msrb.mxu0 %v5081_v38  ;;  %v7281_v38 = vpop.permute.xlu2 %1995 }
 0x1e6   : > { %1843 = vperm.xlu1 %5709, %v6912_v2   ;;  %v896_v20 = vpop.f32.mrf.mxu0  ;;  %9870 = vst [vmem:[#allocation147_spill] sm:$0xff] %v7281_v38  ;;  %v2058_v47 = vmul.f32 %v7281_v38, %v994_v45 }
 0x1e7   : > { %v849_v12 = vpop.f32.mrf.mxu3 }
 0x1e8   : > { %v945_v57 = vpop.f32.mrf.mxu1 }
 0x1e9   : > { %v1962_v28 = vmul.f32 %v7267_v35, %v945_v57 }
 0x1eb   : > { %v7283_v9 = vpop.permute.xlu0 %1803 }
 0x1ec   : > { %v7273_v6 = vpop.permute.xlu1 %1751  ;;  %5712 = vset.pattern.permute.xlu2 %v9828_v50  ;;  %v1866_v41 = vmul.f32 %v7283_v9, %v896_v20 }
 0x1ed   : > { %9868 = vst [vmem:[#allocation145_spill] sm:$0xff] %v7273_v6  ;;  %1943 = vperm.xlu2 %5712, %v6848_v19   ;;  %v7296_v51 = vpop.permute.xlu2 %1815 }
 0x1ee   : > { %5711 = vset.pattern.permute.xlu1 %v9828_v50  ;;  %v898_v0 = vpop.f32.mrf.mxu0  ;;  %9871 = vst [vmem:[#allocation148_spill] sm:$0xff] %v7296_v51  ;;  %v1882_v6 = vadd.f32 %v1866_v41, %v1786_v63 }
 0x1ef   : > { %1939 = vperm.xlu1 %5711, %v6912_v2   ;;  %v1771_v2 = vmul.f32 %v7039_v3, %v849_v12  ;;  %v852_v62 = vpop.f32.mrf.mxu3 }
 0x1f0   : > { %v947_v26 = vpop.f32.mrf.mxu1  ;;  %v1978_v27 = vadd.f32 %v1962_v28, %v1882_v6 }
 0x1f1   : > { %v1787_v22 = vadd.f32 %v1771_v2, %v6859_v48 }
 0x1f2   : > { %v2074_v63 = vadd.f32 %v2058_v47, %v1978_v27  ;;  %v1676_v47 = vmul.f32 %v6977_v14, %v6713_v56 }
 0x1f3   : > { %v7301_v5 = vpop.permute.xlu0 %1999 }
 0x1f4   : > { %v2090_v2 = vmax.f32 %v2074_v63, 0.0  ;;  %v7336_v63 = vld [vmem:[%s5947_s23 + $0x78] sm:$0xff] }
 0x1f5   : > { %v7286_v24 = vpop.permute.xlu1 %1807  ;;  %5714 = vset.pattern.permute.xlu2 %v9809_v52 }
 0x1f6   : > { %1759 = vperm.xlu2 %5714, %v6972_v49   ;;  %v1867_v8 = vmul.f32 %v7286_v24, %v898_v0  ;;  %v901_v48 = vpop.f32.mrf.mxu0  ;;  %v7311_v41 = vpop.permute.xlu2 %1911 }
 0x1f7   : > { %5713 = vset.pattern.permute.xlu1 %v9832_v1  ;;  %9872 = vst [vmem:[#allocation149_spill] sm:$0xff] %v7311_v41 }
 0x1f8   : > { %2039 = vperm.xlu1 %5713, %v6848_v19   ;;  %v996_v19 = vpop.f32.mrf.mxu2  ;;  %v1883_v57 = vadd.f32 %v1867_v8, %v1787_v22  ;;  %v950_v6 = vpop.f32.mrf.mxu1 }
 0x1f9   : > { %v2059_v20 = vmul.f32 %v7301_v5, %v996_v19 }
 0x1fe   : > { %v7303_v12 = vpop.permute.xlu1 %1903  ;;  %5717 = vset.pattern.permute.xlu2 %v9828_v50  ;;  %v903_v8 = vpop.f32.mrf.mxu0 }
 0x1ff   : > { %v1963_v30 = vmul.f32 %v7303_v12, %v947_v26  ;;  %1947 = vperm.xlu2 %5717, %v6837_v46   ;;  %v854_v26 = vpop.f32.mrf.mxu3  ;;  %v7329_v27 = vpop.permute.xlu2 %1819 }
 0x200   : > { %5716 = vset.pattern.permute.xlu1 %v9817_v29  ;;  %v999_v28 = vpop.f32.mrf.mxu2  ;;  %9874 = vst [vmem:[#allocation151_spill] sm:$0xff] %v7329_v27 }
 0x201   : > { %v1979_v45 = vadd.f32 %v1963_v30, %v1883_v57  ;;  %1855 = vperm.xlu1 %5716, %v6972_v49  }
 0x203   : > { %v2075_v0 = vadd.f32 %v2059_v20, %v1979_v45  ;;  %v952_v20 = vpop.f32.mrf.mxu1 }
 0x205   : > { %v2091_v38 = vmax.f32 %v2075_v0, 0.0  ;;  %v1869_v0 = vmul.f32 %v7296_v51, %v903_v8 }
 0x207   : > { %v7313_v19 = vpack.c.bf16 %v2091_v38, %v2090_v2  ;;  %v7315_v22 = vpop.permute.xlu1 %1811  ;;  %5719 = vset.pattern.permute.xlu2 %v9832_v1  ;;  %v1692_v38 = vadd.f32 %v1676_v47, %v6737_v32  ;;  %v857_v45 = vpop.f32.mrf.mxu3  ;;  %v1773_v32 = vmul.f32 %v7138_v15, %v854_v26 }
 0x208   : > { %9873 = vst [vmem:[#allocation150_spill] sm:$0xff] %v7315_v22  ;;  %2043 = vperm.xlu2 %5719, %v6837_v46   ;;  %v1772_v46 = vmul.f32 %v7158_v54, %v852_v62  ;;  %v1868_v57 = vmul.f32 %v7315_v22, %v901_v48  ;;  %v1001_v56 = vpop.f32.mrf.mxu2  ;;  %v906_v2 = vpop.f32.mrf.mxu0  ;;  %v1965_v54 = vmul.f32 %v7311_v41, %v952_v20 }
 0x209   : > { %5718 = vset.pattern.permute.xlu1 %v9828_v50  ;;  %2666 = vmatmul.bf16.vlgmr.msrb.gmra.mxu3 %v7313_v19  ;;  %v7344_v47 = vpop.permute.xlu0 %2003  ;;  %v1789_v22 = vadd.f32 %v1773_v32, %v6907_v4 }
 0x20a   : > { %2715 = vmatmul.bf16.vlgmr.msrb.gmra.mxu0 %v7313_v19  ;;  %2764 = vmatmul.bf16.vlgmr.msra.gmra.mxu1 %v7313_v19  ;;  %9876 = vst [vmem:[#allocation153_spill] sm:$0xff] %v7344_v47 }
 0x20b   : > { %2813 = vmatmul.bf16.vlgmr.msra.gmra.mxu2 %v7313_v19  ;;  %1951 = vperm.xlu1 %5718, %v6972_v49   ;;  %v1788_v49 = vadd.f32 %v1772_v46, %v1692_v38  ;;  %v2060_v38 = vmul.f32 %v7344_v47, %v999_v28  ;;  %v1885_v26 = vadd.f32 %v1869_v0, %v1789_v22  ;;  %v955_v15 = vpop.f32.mrf.mxu1  ;;  %v5585_v28 = vld [vmem:[%s9321_s3 + $0x284] sm:$0xf] }
 0x20d   : > { %v1884_v48 = vadd.f32 %v1868_v57, %v1788_v49  ;;  %v1981_v8 = vadd.f32 %v1965_v54, %v1885_v26  ;;  %v5410_v54 = vld [vmem:[%s9321_s3 + $0x2ac] sm:$0xf0] }
 0x20f   : > { %v859_v32 = vpop.f32.mrf.mxu3 }
 0x210   : > { %v7332_v30 = vpop.permute.xlu1 %1907  ;;  %5722 = vset.pattern.permute.xlu2 %v9809_v52  ;;  %v1004_v4 = vpop.f32.mrf.mxu2 }
 0x211   : > { %9875 = vst [vmem:[#allocation152_spill] sm:$0xff] %v7332_v30  ;;  %1767 = vperm.xlu2 %5722, %v7336_v63   ;;  %v1964_v62 = vmul.f32 %v7332_v30, %v950_v6  ;;  %v7349_v6 = vpop.permute.xlu2 %1919  ;;  %v908_v0 = vpop.f32.mrf.mxu0 }
 0x212   : > { %9877 = vst [vmem:[#allocation154_spill] sm:$0xff] %v7349_v6 }
 0x213   : > { %5721 = vset.pattern.permute.xlu1 %v9809_v52  ;;  %v1980_v46 = vadd.f32 %v1964_v62, %v1884_v48  ;;  %v1775_v48 = vmul.f32 %v7199_v23, %v859_v32 }
 0x214   : > { %1763 = vperm.xlu1 %5721, %v7004_v25  }
 0x215   : > { %v2076_v57 = vadd.f32 %v2060_v38, %v1980_v46  ;;  %v7369_v46 = vpop.permute.xlu0 %1823 }
 0x216   : > { %9879 = vst [vmem:[#allocation156_spill] sm:$0xff] %v7369_v46  ;;  %v1871_v32 = vmul.f32 %v7369_v46, %v908_v0 }
 0x217   : > { %v2092_v22 = vmax.f32 %v2076_v57, 0.0 }
 0x219   : > { %v7351_v52 = vpop.permute.xlu1 %2007  ;;  %5724 = vset.pattern.permute.xlu2 %v9817_v29  ;;  %v7375_v57 = vpop.permute.xlu2 %2015 }
 0x21a   : > { %9878 = vst [vmem:[#allocation155_spill] sm:$0xff] %v7351_v52  ;;  %v2061_v49 = vmul.f32 %v7351_v52, %v1001_v56  ;;  %1863 = vperm.xlu2 %5724, %v7336_v63   ;;  %v5413_v56 = vor.u32 %v5585_v28, %v5410_v54  ;;  %v862_v28 = vpop.f32.mrf.mxu3 }
 0x21b   : > { %9881 = vst [vmem:[#allocation158_spill] sm:$0xff] %v7375_v57 }
 0x21c   : > { %v2077_v20 = vadd.f32 %v2061_v49, %v1981_v8  ;;  %5723 = vset.pattern.permute.xlu1 %v9817_v29  ;;  %3001 = vmatpush.bf16.msrb.mxu2 %v5413_v56  ;;  %v1678_v29 = vmul.f32 %v7007_v10, %v6769_v21  ;;  %v957_v8 = vpop.f32.mrf.mxu1  ;;  %v1774_v49 = vmul.f32 %v7069_v36, %v857_v45  ;;  %v8143_v10 = vld [vmem:[%s5947_s23 + $0x20] sm:$0xff] }
 0x21d   : > { %1859 = vperm.xlu1 %5723, %v7004_v25   ;;  %v1791_v21 = vadd.f32 %v1775_v48, %v6933_v53  ;;  %v911_v48 = vpop.f32.mrf.mxu0  ;;  %9994 = vst [vmem:[#allocation225_spill] sm:$0xff] %v8143_v10 }
 0x21e   : > { %v2093_v62 = vmax.f32 %v2077_v20, 0.0  ;;  %v1006_v20 = vpop.f32.mrf.mxu2  ;;  %v1694_v54 = vadd.f32 %v1678_v29, %v6767_v17 }
 0x21f   : > { %v1887_v56 = vadd.f32 %v1871_v32, %v1791_v21  ;;  %v2063_v53 = vmul.f32 %v7375_v57, %v1006_v20  ;;  %v5589_v21 = vld [vmem:[%s9321_s3 + $0x2a0] sm:$0xf0] }
 0x220   : > { %v7365_v38 = vpack.c.bf16 %v2093_v62, %v2092_v22  ;;  %v1870_v22 = vmul.f32 %v7329_v27, %v906_v2  ;;  %v1967_v62 = vmul.f32 %v7349_v6, %v957_v8  ;;  %v1790_v45 = vadd.f32 %v1774_v49, %v1694_v54 }
 0x221   : > { %v7396_v6 = vpop.permute.xlu2 %1923 }
 0x222   : > { %v7371_v26 = vpop.permute.xlu1 %1915  ;;  %2671 = vmatmul.bf16.gmra.mxu3 %v7365_v38  ;;  %2720 = vmatmul.bf16.gmra.mxu0 %v7365_v38  ;;  %v1886_v46 = vadd.f32 %v1870_v22, %v1790_v45  ;;  %9884 = vst [vmem:[#allocation161_spill] sm:$0xff] %v7396_v6 }
 0x223   : > { %9880 = vst [vmem:[#allocation157_spill] sm:$0xff] %v7371_v26  ;;  %2769 = vmatmul.bf16.gmra.mxu1 %v7365_v38  ;;  %2818 = vmatmul.bf16.gmra.mxu2 %v7365_v38  ;;  %v1966_v0 = vmul.f32 %v7371_v26, %v955_v15  ;;  %v5400_v15 = vld [vmem:[%s9321_s3 + $0x278] sm:$0xf]  ;;  %v8111_v26 = vld [vmem:[%s5947_s23 + $0x10] sm:$0xff] }
 0x224   : > { %5727 = vset.pattern.permute.xlu2 %v9832_v1  ;;  %v960_v29 = vpop.f32.mrf.mxu1  ;;  %v5401_v22 = vor.u32 %v5589_v21, %v5400_v15 }
 0x225   : > { %5726 = vset.pattern.permute.xlu1 %v9828_v50  ;;  %2051 = vperm.xlu2 %5727, %v7004_v25   ;;  %v1983_v50 = vadd.f32 %v1967_v62, %v1887_v56  ;;  %v7393_v25 = vpop.permute.xlu0 %1827  ;;  %v1982_v2 = vadd.f32 %v1966_v0, %v1886_v46  ;;  %v864_v46 = vpop.f32.mrf.mxu3  ;;  %v5402_v56 = vld [vmem:[%s9321_s3 + $0x2a4] sm:$0xf0] }
 0x226   : > { %1959 = vperm.xlu1 %5726, %v7336_v63   ;;  %9883 = vst [vmem:[#allocation160_spill] sm:$0xff] %v7393_v25  ;;  %v1009_v49 = vpop.f32.mrf.mxu2  ;;  %v1777_v62 = vmul.f32 %v7216_v60, %v864_v46  ;;  %2854 = vmatpush.bf16.msra.mxu3 %v5401_v22  ;;  %v1872_v22 = vmul.f32 %v7393_v25, %v911_v48  ;;  %v5547_v60 = vld [vmem:[%s9321_s3 + $0x150] sm:$0xf0] }
 0x227   : > { %v2079_v17 = vadd.f32 %v2063_v53, %v1983_v50  ;;  %v913_v50 = vpop.f32.mrf.mxu0  ;;  %v1968_v48 = vmul.f32 %v7396_v6, %v960_v29  ;;  %v5573_v29 = vld [vmem:[%s9321_s3 + $0x224] sm:$0xf]  ;;  %v5240_v6 = vld [vmem:[%s9321_s3 + $0x128] sm:$0xf] }
 0x229   : > { %v2095_v20 = vmax.f32 %v2079_v17, 0.0 }
 0x22b   : > { %v7391_v23 = vpop.permute.xlu1 %2011 }
 0x22c   : > { %9882 = vst [vmem:[#allocation159_spill] sm:$0xff] %v7391_v23  ;;  %v2062_v8 = vmul.f32 %v7391_v23, %v1004_v4  ;;  %v5574_v4 = vld [vmem:[%s9321_s3 + $0x22c] sm:$0xf]  ;;  %v962_v15 = vpop.f32.mrf.mxu1  ;;  %v5196_v23 = vld [vmem:[%s9321_s3 + $0xd0] sm:$0xf] }
 0x22d   : > { %v7421_v17 = vpop.permute.xlu0 %1927 }
 0x22e   : > { %v2078_v32 = vadd.f32 %v2062_v8, %v1982_v2  ;;  %5728 = vset.pattern.permute.xlu1 %v9832_v1  ;;  %v5366_v1 = vld [vmem:[%s9321_s3 + $0x254] sm:$0xf0]  ;;  %9885 = vst [vmem:[#allocation162_spill] sm:$0xff] %v7421_v17  ;;  %v1776_v8 = vmul.f32 %v7090_v44, %v862_v28  ;;  %v1969_v46 = vmul.f32 %v7421_v17, %v962_v15  ;;  %v5408_v28 = vld [vmem:[%s9321_s3 + $0x280] sm:$0xf] }
 0x22f   : > { %2055 = vperm.xlu1 %5728, %v7336_v63   ;;  %v5584_v63 = vld [vmem:[%s9321_s3 + $0x27c] sm:$0xf]  ;;  %v5369_v45 = vor.u32 %v5574_v4, %v5366_v1  ;;  %v1793_v4 = vadd.f32 %v1777_v62, %v7042_v16  ;;  %v5590_v1 = vld [vmem:[%s9321_s3 + $0x2a8] sm:$0xf0]  ;;  %v5563_v15 = vld [vmem:[%s9321_s3 + $0x1d4] sm:$0xf] }
 0x230   : > { %v2094_v54 = vmax.f32 %v2078_v32, 0.0  ;;  %v5405_v0 = vor.u32 %v5584_v63, %v5402_v56  ;;  %v7428_v32 = vpop.permute.xlu2 %2023  ;;  %v5356_v63 = vld [vmem:[%s9321_s3 + $0x220] sm:$0xf]  ;;  %v1792_v16 = vadd.f32 %v1776_v8, %v6892_v7  ;;  %v5409_v62 = vor.u32 %v5590_v1, %v5408_v28 }
 0x231   : > { %3002 = vmatpush.bf16.msrb.mxu2 %v5369_v45  ;;  %9887 = vst [vmem:[#allocation164_spill] sm:$0xff] %v7428_v32  ;;  %v5578_v45 = vld [vmem:[%s9321_s3 + $0x248] sm:$0xf0]  ;;  %v5322_v7 = vld [vmem:[%s9321_s3 + $0x1fc] sm:$0xf0] }
 0x232   : > { %v7419_v53 = vpack.c.bf16 %v2095_v20, %v2094_v54  ;;  %2903 = vmatpush.bf16.msra.mxu0 %v5405_v0  ;;  %v1011_v20 = vpop.f32.mrf.mxu2  ;;  %2952 = vmatpush.bf16.msrb.mxu1 %v5409_v62  ;;  %v1888_v8 = vadd.f32 %v1872_v22, %v1792_v16  ;;  %v5579_v22 = vld [vmem:[%s9321_s3 + $0x250] sm:$0xf0]  ;;  %v867_v62 = vpop.f32.mrf.mxu3 }
 0x233   : > { %v2065_v0 = vmul.f32 %v7428_v32, %v1011_v20  ;;  %v5559_v32 = vld [vmem:[%s9321_s3 + $0x1b0] sm:$0xf0] }
 0x234   : > { %v7423_v2 = vpop.permute.xlu1 %1831  ;;  %2676 = vmatmul.bf16.gmra.mxu3 %v7419_v53  ;;  %2725 = vmatmul.bf16.gmra.mxu0 %v7419_v53  ;;  %v1984_v28 = vadd.f32 %v1968_v48, %v1888_v8 }
 0x235   : > { %9886 = vst [vmem:[#allocation163_spill] sm:$0xff] %v7423_v2  ;;  %v1873_v21 = vmul.f32 %v7423_v2, %v913_v50  ;;  %2774 = vmatmul.bf16.gmra.mxu1 %v7419_v53  ;;  %2823 = vmatmul.bf16.gmra.mxu2 %v7419_v53  ;;  %v5357_v50 = vor.u32 %v5578_v45, %v5356_v63  ;;  %v7482_v8 = vpop.permute.xlu0 %1931 }
 0x236   : > { %9890 = vst [vmem:[#allocation167_spill] sm:$0xff] %v7482_v8 }
 0x237   : > { %v1889_v54 = vadd.f32 %v1873_v21, %v1793_v4  ;;  %2855 = vmatpush.bf16.msra.mxu3 %v5357_v50  ;;  %v5325_v21 = vor.u32 %v5563_v15, %v5322_v7  ;;  %v5358_v4 = vld [vmem:[%s9321_s3 + $0x24c] sm:$0xf0]  ;;  %v1395_v50 = vmul.f32 %v6530_v55, %v6481_v11  ;;  %v916_v7 = vpop.f32.mrf.mxu0 }
 0x238   : > { %v7472_v45 = vpop.permute.xlu2 %1839 }
 0x239   : > { %v1985_v56 = vadd.f32 %v1969_v46, %v1889_v54  ;;  %v5364_v46 = vld [vmem:[%s9321_s3 + $0x228] sm:$0xf]  ;;  %v5361_v54 = vor.u32 %v5573_v29, %v5358_v4  ;;  %3003 = vmatpush.bf16.msrb.mxu2 %v5325_v21  ;;  %9889 = vst [vmem:[#allocation166_spill] sm:$0xff] %v7472_v45  ;;  %v1491_v29 = vmul.f32 %v6656_v59, %v6582_v34  ;;  %v965_v21 = vpop.f32.mrf.mxu1  ;;  %v9942_v59 = vld [vmem:[#allocation126_spill] sm:$0xff] }
 0x23a   : > { %v5365_v16 = vor.u32 %v5579_v22, %v5364_v46  ;;  %v1014_v11 = vpop.f32.mrf.mxu2 }
 0x23b   : > { %v2081_v1 = vadd.f32 %v2065_v0, %v1985_v56  ;;  %2904 = vmatpush.bf16.msra.mxu0 %v5361_v54  ;;  %v1411_v56 = vadd.f32 %v1395_v50, %v6490_v40  ;;  %v1778_v0 = vmul.f32 %v7245_v18, %v867_v62  ;;  %v5552_v62 = vld [vmem:[%s9321_s3 + $0x17c] sm:$0xf]  ;;  %v869_v50 = vpop.f32.mrf.mxu3 }
 0x23c   : > { %2953 = vmatpush.bf16.msrb.mxu1 %v5365_v16  ;;  %v5567_v16 = vld [vmem:[%s9321_s3 + $0x1f0] sm:$0xf0] }
 0x23d   : > { %v7466_v20 = vpop.permute.xlu1 %2019  ;;  %v2097_v4 = vmax.f32 %v2081_v1, 0.0  ;;  %v1507_v54 = vadd.f32 %v1491_v29, %v1411_v56  ;;  %v1794_v1 = vadd.f32 %v1778_v0, %v6957_v58  ;;  %v1779_v58 = vmul.f32 %v7125_v61, %v869_v50 }
 0x23e   : > { %9888 = vst [vmem:[#allocation165_spill] sm:$0xff] %v7466_v20  ;;  %v2064_v63 = vmul.f32 %v7466_v20, %v1009_v49  ;;  %v1587_v49 = vmul.f32 %v6896_v33, %v6890_v39 }
 0x240   : > { %v2080_v15 = vadd.f32 %v2064_v63, %v1984_v28  ;;  %v7490_v34 = vpop.permute.xlu2 %2027  ;;  %v1603_v39 = vadd.f32 %v1587_v49, %v1507_v54  ;;  %v1683_v28 = vmul.f32 %v6940_v43, %v6905_v37  ;;  %v5312_v63 = vld [vmem:[%s9321_s3 + $0x1c8] sm:$0xf]  ;;  %v7513_v54 = vpop.permute.xlu0 %2031 }
 0x241   : > { %9892 = vst [vmem:[#allocation169_spill] sm:$0xff] %v7490_v34  ;;  %v5278_v37 = vld [vmem:[%s9321_s3 + $0x1a4] sm:$0xf0] }
 0x242   : > { %v2096_v48 = vmax.f32 %v2080_v15, 0.0  ;;  %v5313_v15 = vor.u32 %v5567_v16, %v5312_v63  ;;  %v1699_v56 = vadd.f32 %v1683_v28, %v1603_v39  ;;  %9893 = vst [vmem:[#allocation170_spill] sm:$0xff] %v7513_v54  ;;  %v967_v63 = vpop.f32.mrf.mxu1  ;;  %v2066_v16 = vmul.f32 %v7490_v34, %v1014_v11  ;;  %v5562_v39 = vld [vmem:[%s9321_s3 + $0x1cc] sm:$0xf]  ;;  %v5314_v28 = vld [vmem:[%s9321_s3 + $0x1f4] sm:$0xf0] }
 0x243   : > { %v5320_v11 = vld [vmem:[%s9321_s3 + $0x1d0] sm:$0xf] }
 0x244   : > { %v7484_v46 = vpack.c.bf16 %v2097_v4, %v2096_v48  ;;  %v5281_v4 = vor.u32 %v5552_v62, %v5278_v37  ;;  %v918_v48 = vpop.f32.mrf.mxu0  ;;  %2856 = vmatpush.bf16.msra.mxu3 %v5313_v15  ;;  %v1795_v0 = vadd.f32 %v1779_v58, %v1699_v56  ;;  %v5317_v37 = vor.u32 %v5562_v39, %v5314_v28  ;;  %v5541_v56 = vld [vmem:[%s9321_s3 + $0x124] sm:$0xf] }
 0x245   : > { %v1875_v49 = vmul.f32 %v7472_v45, %v918_v48  ;;  %v5268_v48 = vld [vmem:[%s9321_s3 + $0x170] sm:$0xf]  ;;  %v9940_v45 = vld [vmem:[#allocation146_spill] sm:$0xff] }
 0x246   : > { %v7486_v22 = vpop.permute.xlu1 %1835  ;;  %2681 = vmatmul.bf16.gmra.mxu3 %v7484_v46  ;;  %2730 = vmatmul.bf16.gmra.mxu0 %v7484_v46 }
 0x247   : > { %9891 = vst [vmem:[#allocation168_spill] sm:$0xff] %v7486_v22  ;;  %v1874_v40 = vmul.f32 %v7486_v22, %v916_v7  ;;  %2779 = vmatmul.bf16.gmra.mxu1 %v7484_v46  ;;  %2828 = vmatmul.bf16.gmra.mxu2 %v7484_v46  ;;  %v1970_v7 = vmul.f32 %v7482_v8, %v965_v21  ;;  %v1016_v22 = vpop.f32.mrf.mxu2  ;;  %v9941_v8 = vld [vmem:[#allocation133_spill] sm:$0xff] }
 0x248   : > { %3004 = vmatpush.bf16.msrb.mxu2 %v5281_v4  ;;  %v1891_v50 = vadd.f32 %v1875_v49, %v1795_v0  ;;  %v2067_v21 = vmul.f32 %v7513_v54, %v1016_v22  ;;  %v5568_v22 = vld [vmem:[%s9321_s3 + $0x1f8] sm:$0xf0]  ;;  %2905 = vmatpush.bf16.msra.mxu0 %v5317_v37  ;;  %v9900_v37 = vld [vmem:[#allocation96_spill] sm:$0xff]  ;;  %v1689_v61 = vmul.f32 %v9941_v8, %v9940_v45 }
 0x249   : > { %v1890_v29 = vadd.f32 %v1874_v40, %v1794_v1  ;;  %v7520_v1 = vpop.permute.xlu2 %1847  ;;  %v5321_v58 = vor.u32 %v5568_v22, %v5320_v11  ;;  %v9898_v11 = vld [vmem:[#allocation11_spill] sm:$0xff] }
 0x24a   : > { %9895 = vst [vmem:[#allocation172_spill] sm:$0xff] %v7520_v1  ;;  %v970_v39 = vpop.f32.mrf.mxu1 }
 0x24b   : > { %v1986_v43 = vadd.f32 %v1970_v7, %v1890_v29  ;;  %2954 = vmatpush.bf16.msrb.mxu1 %v5321_v58  ;;  %v9901_v58 = vld [vmem:[#allocation51_spill] sm:$0xff] }
 0x24d   : > { %v2082_v62 = vadd.f32 %v2066_v16, %v1986_v43  ;;  %v5556_v43 = vld [vmem:[%s9321_s3 + $0x198] sm:$0xf0]  ;;  %v5234_v16 = vld [vmem:[%s9321_s3 + $0x14c] sm:$0xf0] }
 0x24f   : > { %v7516_v33 = vpop.permute.xlu1 %1935  ;;  %v2098_v29 = vmax.f32 %v2082_v62, 0.0  ;;  %v1397_v62 = vmul.f32 %v9898_v11, %v6540_v13 }
 0x250   : > { %9894 = vst [vmem:[#allocation171_spill] sm:$0xff] %v7516_v33  ;;  %v1971_v40 = vmul.f32 %v7516_v33, %v967_v63  ;;  %v5269_v63 = vor.u32 %v5556_v43, %v5268_v48  ;;  %v1019_v33 = vpop.f32.mrf.mxu2 }
 0x251   : > { %v7552_v28 = vpop.permute.xlu2 %1943 }
 0x252   : > { %v1987_v15 = vadd.f32 %v1971_v40, %v1891_v50  ;;  %v872_v50 = vpop.f32.mrf.mxu3  ;;  %v921_v40 = vpop.f32.mrf.mxu0  ;;  %9897 = vst [vmem:[#allocation174_spill] sm:$0xff] %v7552_v28  ;;  %2857 = vmatpush.bf16.msra.mxu3 %v5269_v63  ;;  %v9906_v63 = vld [vmem:[#allocation145_spill] sm:$0xff] }
 0x253   : > { %v1780_v48 = vmul.f32 %v7269_v42, %v872_v50  ;;  %v972_v50 = vpop.f32.mrf.mxu1  ;;  %v7575_v42 = vpop.permute.xlu0 %2035 }
 0x254   : > { %v2083_v7 = vadd.f32 %v2067_v21, %v1987_v15  ;;  %v5237_v21 = vor.u32 %v5541_v56, %v5234_v16  ;;  %v9899_v15 = vld [vmem:[#allocation83_spill] sm:$0xff]  ;;  %v9903_v56 = vld [vmem:[#allocation117_spill] sm:$0xff]  ;;  %v9904_v16 = vld [vmem:[#allocation118_spill] sm:$0xff] }
 0x255   : > { %v1493_v22 = vmul.f32 %v9900_v37, %v9899_v15  ;;  %v1685_v54 = vmul.f32 %v9904_v16, %v9903_v56  ;;  %v9907_v37 = vld [vmem:[#allocation128_spill] sm:$0xff]  ;;  %9909 = vst [vmem:[#allocation117_spill] sm:$0xff] %v7575_v42 }
 0x256   : > { %v2099_v4 = vmax.f32 %v2083_v7, 0.0  ;;  %3005 = vmatpush.bf16.msrb.mxu2 %v5237_v21  ;;  %v1413_v7 = vadd.f32 %v1397_v62, %v9901_v58  ;;  %v1796_v62 = vadd.f32 %v1780_v48, %v9907_v37  ;;  %v2068_v37 = vmul.f32 %v7575_v42, %v1019_v33  ;;  %v5557_v48 = vld [vmem:[%s9321_s3 + $0x1a0] sm:$0xf0]  ;;  %v5530_v33 = vld [vmem:[%s9321_s3 + $0xcc] sm:$0xf]  ;;  %v9912_v42 = vld [vmem:[#allocation78_spill] sm:$0xff] }
 0x258   : > { %v7543_v49 = vpack.c.bf16 %v2099_v4, %v2098_v29  ;;  %v7545_v0 = vpop.permute.xlu1 %1843  ;;  %v9902_v29 = vld [vmem:[#allocation101_spill] sm:$0xff]  ;;  %v1509_v43 = vadd.f32 %v1493_v22, %v1413_v7 }
 0x259   : > { %9896 = vst [vmem:[#allocation173_spill] sm:$0xff] %v7545_v0  ;;  %v1589_v4 = vmul.f32 %v9902_v29, %v6937_v31  ;;  %v1876_v13 = vmul.f32 %v7545_v0, %v921_v40  ;;  %v7573_v7 = vpop.permute.xlu2 %1759  ;;  %v5551_v40 = vld [vmem:[%s9321_s3 + $0x174] sm:$0xf]  ;;  %v5180_v0 = vld [vmem:[%s9321_s3 + $0xc0] sm:$0xf] }
 0x25a   : > { %2686 = vmatmul.bf16.gmra.mxu3 %v7543_v49  ;;  %2735 = vmatmul.bf16.gmra.mxu0 %v7543_v49  ;;  %v874_v34 = vpop.f32.mrf.mxu3  ;;  %v923_v29 = vpop.f32.mrf.mxu0  ;;  %9908 = vst [vmem:[#allocation51_spill] sm:$0xff] %v7573_v7 }
 0x25b   : > { %2784 = vmatmul.bf16.gmra.mxu1 %v7543_v49  ;;  %2833 = vmatmul.bf16.gmra.mxu2 %v7543_v49  ;;  %v1605_v15 = vadd.f32 %v1589_v4, %v1509_v43  ;;  %v1781_v21 = vmul.f32 %v9906_v63, %v874_v34  ;;  %v1877_v22 = vmul.f32 %v7520_v1, %v923_v29  ;;  %v5270_v34 = vld [vmem:[%s9321_s3 + $0x19c] sm:$0xf0] }
 0x25c   : > { %v1892_v56 = vadd.f32 %v1876_v13, %v1796_v62  ;;  %v5273_v4 = vor.u32 %v5551_v40, %v5270_v34  ;;  %v1021_v62 = vpop.f32.mrf.mxu2 }
 0x25d   : > { %v1701_v31 = vadd.f32 %v1685_v54, %v1605_v15  ;;  %v5276_v54 = vld [vmem:[%s9321_s3 + $0x178] sm:$0xf] }
 0x25e   : > { %v5277_v43 = vor.u32 %v5557_v48, %v5276_v54  ;;  %2906 = vmatpush.bf16.msra.mxu0 %v5273_v4  ;;  %v5224_v15 = vld [vmem:[%s9321_s3 + $0x118] sm:$0xf] }
 0x25f   : > { %v1797_v16 = vadd.f32 %v1781_v21, %v1701_v31  ;;  %v5545_v21 = vld [vmem:[%s9321_s3 + $0x140] sm:$0xf0] }
 0x260   : > { %2955 = vmatpush.bf16.msrb.mxu1 %v5277_v43  ;;  %v5225_v31 = vor.u32 %v5545_v21, %v5224_v15  ;;  %v9913_v43 = vld [vmem:[#allocation40_spill] sm:$0xff] }
 0x261   : > { %v7567_v11 = vpop.permute.xlu1 %1939  ;;  %v1893_v13 = vadd.f32 %v1877_v22, %v1797_v16  ;;  %v5190_v16 = vld [vmem:[%s9321_s3 + $0xf4] sm:$0xf0]  ;;  %v7606_v4 = vpop.permute.xlu2 %1947  ;;  %v1399_v15 = vmul.f32 %v9913_v43, %v9912_v42 }
 0x262   : > { %9905 = vst [vmem:[#allocation83_spill] sm:$0xff] %v7567_v11  ;;  %v1972_v58 = vmul.f32 %v7567_v11, %v970_v39  ;;  %v1973_v39 = vmul.f32 %v7552_v28, %v972_v50  ;;  %v5193_v40 = vor.u32 %v5530_v33, %v5190_v16  ;;  %2858 = vmatpush.bf16.msra.mxu3 %v5225_v31  ;;  %v877_v34 = vpop.f32.mrf.mxu3  ;;  %v926_v21 = vpop.f32.mrf.mxu0  ;;  %v9914_v11 = vld [vmem:[#allocation95_spill] sm:$0xff]  ;;  %v9920_v16 = vld [vmem:[#allocation104_spill] sm:$0xff] }
 0x263   : > { %9911 = vst [vmem:[#allocation175_spill] sm:$0xff] %v7606_v4  ;;  %v7620_v33 = vpop.permute.xlu0 %1851 }
 0x264   : > { %v1988_v29 = vadd.f32 %v1972_v58, %v1892_v56  ;;  %v1989_v50 = vadd.f32 %v1973_v39, %v1893_v13  ;;  %3006 = vmatpush.bf16.msrb.mxu2 %v5193_v40  ;;  %v9915_v39 = vld [vmem:[#allocation90_spill] sm:$0xff]  ;;  %v5226_v13 = vld [vmem:[%s9321_s3 + $0x144] sm:$0xf0]  ;;  %9916 = vst [vmem:[#allocation78_spill] sm:$0xff] %v7620_v33  ;;  %v5546_v40 = vld [vmem:[%s9321_s3 + $0x148] sm:$0xf0] }
 0x266   : > { %v2084_v22 = vadd.f32 %v2068_v37, %v1988_v29  ;;  %v1495_v37 = vmul.f32 %v9915_v39, %v9914_v11  ;;  %v5540_v29 = vld [vmem:[%s9321_s3 + $0x11c] sm:$0xf]  ;;  %v9919_v11 = vld [vmem:[#allocation120_spill] sm:$0xff] }
 0x267   : > { %v5229_v42 = vor.u32 %v5540_v29, %v5226_v13  ;;  %v9921_v13 = vld [vmem:[#allocation124_spill] sm:$0xff] }
 0x268   : > { %v2100_v48 = vmax.f32 %v2084_v22, 0.0  ;;  %v975_v22 = vpop.f32.mrf.mxu1 }
 0x269   : > { %2907 = vmatpush.bf16.msra.mxu0 %v5229_v42  ;;  %v5534_v42 = vld [vmem:[%s9321_s3 + $0xe8] sm:$0xf0] }
 0x26a   : > { %v7600_v58 = vpop.permute.xlu1 %2039 }
 0x26b   : > { %9910 = vst [vmem:[#allocation128_spill] sm:$0xff] %v7600_v58  ;;  %v2069_v56 = vmul.f32 %v7600_v58, %v1021_v62  ;;  %v1878_v58 = vmul.f32 %v7620_v33, %v926_v21 }
 0x26d   : > { %v2085_v54 = vadd.f32 %v2069_v56, %v1989_v50  ;;  %v1591_v50 = vmul.f32 %v9920_v16, %v9919_v11  ;;  %v5232_v56 = vld [vmem:[%s9321_s3 + $0x120] sm:$0xf]  ;;  %v9923_v16 = vld [vmem:[#allocation138_spill] sm:$0xff] }
 0x26e   : > { %v1782_v39 = vmul.f32 %v9923_v16, %v877_v34  ;;  %v9925_v34 = vld [vmem:[#allocation121_spill] sm:$0xff] }
 0x26f   : > { %v2101_v28 = vmax.f32 %v2085_v54, 0.0  ;;  %v879_v54 = vpop.f32.mrf.mxu3 }
 0x270   : > { %v1783_v63 = vmul.f32 %v7573_v7, %v879_v54  ;;  %v7653_v54 = vpop.permute.xlu0 %2047 }
 0x271   : > { %v7610_v1 = vpack.c.bf16 %v2101_v28, %v2100_v48  ;;  %v9918_v28 = vld [vmem:[#allocation35_spill] sm:$0xff]  ;;  %v1024_v48 = vpop.f32.mrf.mxu2  ;;  %9926 = vst [vmem:[#allocation120_spill] sm:$0xff] %v7653_v54 }
 0x272   : > { %v1415_v31 = vadd.f32 %v1399_v15, %v9918_v28  ;;  %v5233_v15 = vor.u32 %v5546_v40, %v5232_v56  ;;  %v9922_v28 = vld [vmem:[#allocation130_spill] sm:$0xff]  ;;  %v5181_v56 = vor.u32 %v5534_v42, %v5180_v0 }
 0x273   : > { %v7622_v62 = vpop.permute.xlu1 %1855  ;;  %2691 = vmatmul.bf16.gmra.mxu3 %v7610_v1  ;;  %2740 = vmatmul.bf16.gmra.mxu0 %v7610_v1  ;;  %v1687_v11 = vmul.f32 %v9922_v28, %v9921_v13  ;;  %v5146_v13 = vld [vmem:[%s9321_s3 + $0x9c] sm:$0xf0] }
 0x274   : > { %9917 = vst [vmem:[#allocation95_spill] sm:$0xff] %v7622_v62  ;;  %2789 = vmatmul.bf16.gmra.mxu1 %v7610_v1  ;;  %2838 = vmatmul.bf16.gmra.mxu2 %v7610_v1  ;;  %v1511_v29 = vadd.f32 %v1495_v37, %v1415_v31  ;;  %v7648_v37 = vpop.permute.xlu2 %2043  ;;  %v928_v31 = vpop.f32.mrf.mxu0 }
 0x275   : > { %2956 = vmatpush.bf16.msrb.mxu1 %v5233_v15  ;;  %9924 = vst [vmem:[#allocation35_spill] sm:$0xff] %v7648_v37  ;;  %v1798_v15 = vadd.f32 %v1782_v39, %v9925_v34  ;;  %v1879_v21 = vmul.f32 %v7622_v62, %v928_v31  ;;  %2859 = vmatpush.bf16.msra.mxu3 %v5181_v56  ;;  %v977_v39 = vpop.f32.mrf.mxu1 }
 0x276   : > { %v1607_v43 = vadd.f32 %v1591_v50, %v1511_v29  ;;  %v1974_v50 = vmul.f32 %v7606_v4, %v975_v22  ;;  %v5519_v29 = vld [vmem:[%s9321_s3 + $0x74] sm:$0xf] }
 0x277   : > { %v1894_v7 = vadd.f32 %v1878_v58, %v1798_v15  ;;  %v5182_v58 = vld [vmem:[%s9321_s3 + $0xec] sm:$0xf0] }
 0x278   : > { %v1703_v40 = vadd.f32 %v1687_v11, %v1607_v43  ;;  %v2070_v43 = vmul.f32 %v7648_v37, %v1024_v48  ;;  %v5149_v11 = vor.u32 %v5519_v29, %v5146_v13  ;;  %v5188_v29 = vld [vmem:[%s9321_s3 + $0xc8] sm:$0xf]  ;;  %v7743_v33 = vpop.permute.xlu0 %1955 }
 0x279   : > { %v1026_v22 = vpop.f32.mrf.mxu2  ;;  %v1990_v31 = vadd.f32 %v1974_v50, %v1894_v7  ;;  %v5136_v13 = vld [vmem:[%s9321_s3 + $0x68] sm:$0xf] }
 0x27a   : > { %v1799_v0 = vadd.f32 %v1783_v63, %v1703_v40  ;;  %v2071_v62 = vmul.f32 %v7653_v54, %v1026_v22  ;;  %3007 = vmatpush.bf16.msrb.mxu2 %v5149_v11  ;;  %v5529_v63 = vld [vmem:[%s9321_s3 + $0xc4] sm:$0xf]  ;;  %v5102_v11 = vld [vmem:[%s9321_s3 + $0x44] sm:$0xf0]  ;;  %v882_v22 = vpop.f32.mrf.mxu3 }
 0x27b   : > { %v2086_v4 = vadd.f32 %v2070_v43, %v1990_v31  ;;  %v5185_v40 = vor.u32 %v5529_v63, %v5182_v58  ;;  %v5518_v63 = vld [vmem:[%s9321_s3 + $0x6c] sm:$0xf]  ;;  %v5138_v58 = vld [vmem:[%s9321_s3 + $0x94] sm:$0xf0] }
 0x27c   : > { %v1895_v34 = vadd.f32 %v1879_v21, %v1799_v0  ;;  %v5523_v0 = vld [vmem:[%s9321_s3 + $0x90] sm:$0xf0]  ;;  %v9936_v37 = vld [vmem:[#allocation84_spill] sm:$0xff] }
 0x27d   : > { %v7662_v42 = vpop.permute.xlu1 %1951  ;;  %v2102_v15 = vmax.f32 %v2086_v4, 0.0  ;;  %2908 = vmatpush.bf16.msra.mxu0 %v5185_v40  ;;  %v5137_v43 = vor.u32 %v5523_v0, %v5136_v13  ;;  %v5144_v40 = vld [vmem:[%s9321_s3 + $0x70] sm:$0xf]  ;;  %v980_v13 = vpop.f32.mrf.mxu1 }
 0x27e   : > { %9927 = vst [vmem:[#allocation124_spill] sm:$0xff] %v7662_v42  ;;  %v1975_v56 = vmul.f32 %v7662_v42, %v977_v39  ;;  %v5508_v39 = vld [vmem:[%s9321_s3 + $0x1c] sm:$0xf] }
 0x27f   : > { %2860 = vmatpush.bf16.msra.mxu3 %v5137_v43  ;;  %v5105_v31 = vor.u32 %v5508_v39, %v5102_v11  ;;  %v5092_v43 = vld [vmem:[%s9321_s3 + $0x10] sm:$0xf]  ;;  %v5512_v39 = vld [vmem:[%s9321_s3 + $0x38] sm:$0xf0]  ;;  %v5507_v11 = vld [vmem:[%s9321_s3 + $0x14] sm:$0xf] }
 0x280   : > { %v1991_v28 = vadd.f32 %v1975_v56, %v1895_v34  ;;  %v931_v34 = vpop.f32.mrf.mxu0 }
 0x281   : > { %3008 = vmatpush.bf16.msrb.mxu2 %v5105_v31  ;;  %v9934_v31 = vld [vmem:[#allocation142_spill] sm:$0xff] }
 0x282   : > { %v2087_v48 = vadd.f32 %v2071_v62, %v1991_v28  ;;  %v5535_v62 = vld [vmem:[%s9321_s3 + $0xf0] sm:$0xf0]  ;;  %v7684_v28 = vpop.permute.xlu2 %1767  ;;  %9939 = vst [vmem:[#allocation142_spill] sm:$0xff] %v7743_v33 }
 0x283   : > { %9929 = vst [vmem:[#allocation176_spill] sm:$0xff] %v7684_v28  ;;  %v5189_v4 = vor.u32 %v5535_v62, %v5188_v29  ;;  %v9932_v29 = vld [vmem:[#allocation31_spill] sm:$0xff] }
 0x284   : > { %v2103_v7 = vmax.f32 %v2087_v48, 0.0  ;;  %v5141_v48 = vor.u32 %v5518_v63, %v5138_v58  ;;  %v9935_v63 = vld [vmem:[#allocation47_spill] sm:$0xff] }
 0x285   : > { %2957 = vmatpush.bf16.msrb.mxu1 %v5189_v4  ;;  %v1497_v58 = vmul.f32 %v9935_v63, %v9934_v31  ;;  %v9937_v63 = vld [vmem:[#allocation144_spill] sm:$0xff] }
 0x286   : > { %v7672_v50 = vpack.c.bf16 %v2103_v7, %v2102_v15  ;;  %v7674_v21 = vpop.permute.xlu1 %1763  ;;  %v5524_v15 = vld [vmem:[%s9321_s3 + $0x98] sm:$0xf0]  ;;  %v9931_v7 = vld [vmem:[#allocation140_spill] sm:$0xff]  ;;  %2909 = vmatpush.bf16.msra.mxu0 %v5141_v48 }
 0x287   : > { %9928 = vst [vmem:[#allocation121_spill] sm:$0xff] %v7674_v21  ;;  %v1401_v62 = vmul.f32 %v9932_v29, %v9931_v7  ;;  %v5145_v4 = vor.u32 %v5524_v15, %v5144_v40  ;;  %v1784_v48 = vmul.f32 %v7674_v21, %v882_v22  ;;  %v5093_v40 = vor.u32 %v5512_v39, %v5092_v43  ;;  %v5094_v15 = vld [vmem:[%s9321_s3 + $0x3c] sm:$0xf0]  ;;  %v5100_v7 = vld [vmem:[%s9321_s3 + $0x18] sm:$0xf]  ;;  %v884_v43 = vpop.f32.mrf.mxu3  ;;  %v1029_v21 = vpop.f32.mrf.mxu2 }
 0x288   : > { %2696 = vmatmul.bf16.gmra.mxu3 %v7672_v50  ;;  %2745 = vmatmul.bf16.gmra.mxu0 %v7672_v50  ;;  %v5513_v29 = vld [vmem:[%s9321_s3 + $0x40] sm:$0xf0]  ;;  %v5097_v54 = vor.u32 %v5507_v11, %v5094_v15 }
 0x289   : > { %2794 = vmatmul.bf16.gmra.mxu1 %v7672_v50  ;;  %2843 = vmatmul.bf16.gmra.mxu2 %v7672_v50  ;;  %v5101_v42 = vor.u32 %v5513_v29, %v5100_v7  ;;  %v1417_v31 = vadd.f32 %v1401_v62, %v9936_v37  ;;  %v9938_v22 = vld [vmem:[#allocation115_spill] sm:$0xff]  ;;  %v1800_v11 = vadd.f32 %v1784_v48, %v9942_v59  ;;  %v933_v37 = vpop.f32.mrf.mxu0  ;;  %v982_v59 = vpop.f32.mrf.mxu1 }
 0x28a   : > { %v7716_v0 = vpop.permute.xlu2 %1863  ;;  %2958 = vmatpush.bf16.msrb.mxu1 %v5145_v4  ;;  %v1593_v4 = vmul.f32 %v9938_v22, %v9937_v63  ;;  %2861 = vmatpush.bf16.msra.mxu3 %v5093_v40  ;;  %v1785_v63 = vmul.f32 %v7684_v28, %v884_v43  ;;  %v3198_v7 = vld [vmem:[#allocation4 + $0x8] sm:$0x7] }
 0x28b   : > { %9933 = vst [vmem:[#allocation140_spill] sm:$0xff] %v7716_v0  ;;  %2910 = vmatpush.bf16.msra.mxu0 %v5097_v54  ;;  %v1513_v16 = vadd.f32 %v1497_v58, %v1417_v31  ;;  %v1881_v58 = vmul.f32 %v7716_v0, %v933_v37  ;;  %5426 = vmatpush.msk.msra.mxu2 %vm3248_vm2, %v3198_v7  ;;  %v5416_v37 = vld [vmem:[%s9321_s3 + $0x288] sm:$0xf]  ;;  %v5336_v0 = vld [vmem:[%s9321_s3 + $0x1e0] sm:$0xf] }
 0x28d   : > { %v1609_v62 = vadd.f32 %v1593_v4, %v1513_v16 }
 0x28e   : > { %2959 = vmatpush.bf16.msrb.mxu1 %v5101_v42 }
 0x28f   : > { %v7700_v56 = vpop.permute.xlu1 %1859  ;;  %v1705_v54 = vadd.f32 %v1689_v61, %v1609_v62  ;;  %v1031_v4 = vpop.f32.mrf.mxu2  ;;  %v5591_v62 = vld [vmem:[%s9321_s3 + $0x2b0] sm:$0xf0] }
 0x290   : > { %9930 = vst [vmem:[#allocation177_spill] sm:$0xff] %v7700_v56  ;;  %v1880_v39 = vmul.f32 %v7700_v56, %v931_v34  ;;  %v1976_v34 = vmul.f32 %v7743_v33, %v980_v13  ;;  %v5570_v33 = vld [vmem:[%s9321_s3 + $0x208] sm:$0xf0] }
 0x291   : > { %v1801_v45 = vadd.f32 %v1785_v63, %v1705_v54  ;;  %v7769_v7 = vpop.f32.mrf.mxu0  ;;  %v7771_v54 = vpop.f32.mrf.mxu1  ;;  %v5337_v8 = vor.u32 %v5570_v33, %v5336_v0 }
 0x292   : > { %v1896_v15 = vadd.f32 %v1880_v39, %v1800_v11  ;;  %v7752_v40 = vpop.permute.xlu2 %2051 }
 0x293   : > { %9944 = vst [vmem:[#allocation144_spill] sm:$0xff] %v7752_v40  ;;  %v2072_v42 = vmul.f32 %v7752_v40, %v1029_v21  ;;  %v1897_v31 = vadd.f32 %v1881_v58, %v1801_v45  ;;  %v5586_v58 = vld [vmem:[%s9321_s3 + $0x28c] sm:$0xf]  ;;  %v5569_v40 = vld [vmem:[%s9321_s3 + $0x200] sm:$0xf0] }
 0x294   : > { %v1992_v48 = vadd.f32 %v1976_v34, %v1896_v15  ;;  %v5417_v15 = vor.u32 %v5591_v62, %v5416_v37  ;;  %v5580_v37 = vld [vmem:[%s9321_s3 + $0x258] sm:$0xf0] }
 0x296   : > { %v2088_v13 = vadd.f32 %v2072_v42, %v1992_v48  ;;  %3050 = vmatpush.bf16.msrb.mxu3 %v5417_v15  ;;  %v7783_v48 = vpop.f32.mrf.mxu3 }
 0x297   : > { %v7785_v42 = vpop.f32.mrf.mxu2 }
 0x298   : > { %v7748_v29 = vpop.permute.xlu1 %1959  ;;  %v2104_v21 = vmax.f32 %v2088_v13, 0.0 }
 0x299   : > { %9943 = vst [vmem:[#allocation84_spill] sm:$0xff] %v7748_v29  ;;  %v1977_v16 = vmul.f32 %v7748_v29, %v982_v59  ;;  %v5418_v59 = vld [vmem:[%s9321_s3 + $0x2b4] sm:$0xf0]  ;;  %v7795_v13 = vpop.f32.mrf.mxu1 }
 0x29a   : > { %v5421_v45 = vor.u32 %v5586_v58, %v5418_v59  ;;  %v5575_v59 = vld [vmem:[%s9321_s3 + $0x234] sm:$0xf]  ;;  %v5328_v29 = vld [vmem:[%s9321_s3 + $0x1d8] sm:$0xf] }
 0x29b   : > { %v1993_v39 = vadd.f32 %v1977_v16, %v1897_v31  ;;  %v7787_v16 = vpop.f32.mrf.mxu0  ;;  %v5424_v31 = vld [vmem:[%s9321_s3 + $0x290] sm:$0xf] }
 0x29c   : > { %3099 = vmatpush.bf16.msrb.mxu0 %v5421_v45  ;;  %v5374_v45 = vld [vmem:[%s9321_s3 + $0x25c] sm:$0xf0] }
 0x29f   : > { %v7805_v62 = vpop.f32.mrf.mxu2 }
 0x2a1   : > { %v7758_v43 = vpop.permute.xlu1 %2055  ;;  %v7813_v15 = vpop.f32.mrf.mxu1 }
 0x2a2   : > { %9945 = vst [vmem:[#allocation146_spill] sm:$0xff] %v7758_v43  ;;  %v2073_v11 = vmul.f32 %v7758_v43, %v1031_v4  ;;  %v5592_v4 = vld [vmem:[%s9321_s3 + $0x2b8] sm:$0xf0] }
 0x2a4   : > { %v2089_v61 = vadd.f32 %v2073_v11, %v1993_v39  ;;  %v5425_v39 = vor.u32 %v5592_v4, %v5424_v31  ;;  %v7797_v11 = vpop.f32.mrf.mxu3  ;;  %v5380_v31 = vld [vmem:[%s9321_s3 + $0x238] sm:$0xf] }
 0x2a6   : > { %v2105_v63 = vmax.f32 %v2089_v61, 0.0  ;;  %3148 = vmatpush.bf16.msra.mxu1 %v5425_v39  ;;  %v5372_v61 = vld [vmem:[%s9321_s3 + $0x230] sm:$0xf]  ;;  %v5377_v39 = vor.u32 %v5575_v59, %v5374_v45  ;;  %v5329_v59 = vor.u32 %v5569_v40, %v5328_v29 }
 0x2a7   : > { %v7826_v4 = vpop.f32.mrf.mxu2 }
 0x2a8   : > { %v7767_v34 = vpack.c.bf16 %v2105_v63, %v2104_v21  ;;  %v5373_v21 = vor.u32 %v5580_v37, %v5372_v61  ;;  %v7809_v63 = vpop.f32.mrf.mxu0  ;;  %v5581_v61 = vld [vmem:[%s9321_s3 + $0x260] sm:$0xf0]  ;;  %3100 = vmatpush.bf16.msrb.mxu0 %v5377_v39  ;;  %v5330_v39 = vld [vmem:[%s9321_s3 + $0x204] sm:$0xf0] }
 0x2a9   : > { %v5381_v37 = vor.u32 %v5581_v61, %v5380_v31  ;;  %v7833_v43 = vpop.f32.mrf.mxu1  ;;  %v5564_v31 = vld [vmem:[%s9321_s3 + $0x1dc] sm:$0xf] }
 0x2aa   : > { %2701 = vmatmul.bf16.gmra.mxu3 %v7767_v34  ;;  %2750 = vmatmul.bf16.gmra.mxu0 %v7767_v34  ;;  %v5333_v29 = vor.u32 %v5564_v31, %v5330_v39  ;;  %v5284_v39 = vld [vmem:[%s9321_s3 + $0x180] sm:$0xf] }
 0x2ab   : > { %2799 = vmatmul.bf16.gmra.mxu1 %v7767_v34  ;;  %2848 = vmatmul.bf16.gmra.mxu2 %v7767_v34 }
 0x2ac   : > { %3051 = vmatpush.bf16.msrb.mxu3 %v5373_v21  ;;  %v7815_v58 = vpop.f32.mrf.mxu3  ;;  %3149 = vmatpush.bf16.msra.mxu1 %v5381_v37 }
 0x2ad   : > { %3101 = vmatpush.bf16.msrb.mxu0 %v5333_v29  ;;  %v5558_v29 = vld [vmem:[%s9321_s3 + $0x1a8] sm:$0xf0] }
 0x2ae   : > { %v5285_v22 = vor.u32 %v5558_v29, %v5284_v39  ;;  %v5553_v39 = vld [vmem:[%s9321_s3 + $0x184] sm:$0xf]  ;;  %v5286_v29 = vld [vmem:[%s9321_s3 + $0x1ac] sm:$0xf0] }
 0x2af   : > { %v7853_v61 = vpop.f32.mrf.mxu2 }
 0x2b0   : > { %v7831_v21 = vpop.f32.mrf.mxu0  ;;  %3052 = vmatpush.bf16.msrb.mxu3 %v5329_v59  ;;  %3150 = vmatpush.bf16.msra.mxu1 %v5337_v8  ;;  %v3197_v8 = vld [vmem:[#allocation4] sm:$0xff] }
 0x2b1   : > { %3267 = vmatpush.msra.mxu2 %v3197_v8  ;;  %v5289_v8 = vor.u32 %v5553_v39, %v5286_v29  ;;  %v5241_v39 = vor.u32 %v5547_v60, %v5240_v6  ;;  %v5242_v60 = vld [vmem:[%s9321_s3 + $0x154] sm:$0xf0]  ;;  %v5248_v6 = vld [vmem:[%s9321_s3 + $0x130] sm:$0xf] }
 0x2b2   : > { %v7857_v37 = vpop.f32.mrf.mxu1 }
 0x2b3   : > { %3102 = vmatpush.bf16.msrb.mxu0 %v5289_v8 }
 0x2b4   : > { %v7843_v45 = vpop.f32.mrf.mxu3  ;;  %3053 = vmatpush.bf16.msrb.mxu3 %v5285_v22  ;;  %v5292_v22 = vld [vmem:[%s9321_s3 + $0x188] sm:$0xf] }
 0x2b5   : > { %v5293_v17 = vor.u32 %v5559_v32, %v5292_v22  ;;  %v5542_v32 = vld [vmem:[%s9321_s3 + $0x12c] sm:$0xf] }
 0x2b6   : > { %v5245_v8 = vor.u32 %v5542_v32, %v5242_v60 }
 0x2b7   : > { %3151 = vmatpush.bf16.msra.mxu1 %v5293_v17 }
 0x2b8   : > { %v7855_v40 = vpop.f32.mrf.mxu0  ;;  %v7867_v56 = vpop.f32.mrf.mxu2  ;;  %3054 = vmatpush.bf16.msrb.mxu3 %v5241_v39  ;;  %v5548_v39 = vld [vmem:[%s9321_s3 + $0x158] sm:$0xf0]  ;;  %3103 = vmatpush.bf16.msrb.mxu0 %v5245_v8 }
 0x2b9   : > { %v5249_v57 = vor.u32 %v5548_v39, %v5248_v6 }
 0x2ba   : > { %2862 = vmatmul.bf16.vlgmr.msra.gmra.mxu3 %v7313_v19  ;;  %2911 = vmatmul.bf16.vlgmr.msra.gmra.mxu0 %v7313_v19  ;;  %v7871_v31 = vpop.f32.mrf.mxu1 }
 0x2bb   : > { %2960 = vmatmul.bf16.vlgmr.msrb.gmra.mxu1 %v7313_v19  ;;  %3009 = vmatmul.bf16.vlgmr.msrb.gmra.mxu2 %v7313_v19  ;;  %9947 = vst [vmem:[#allocation178_spill] sm:$0xff] %v7871_v31 }
 0x2bc   : > { %v7865_v28 = vpop.f32.mrf.mxu3  ;;  %3152 = vmatpush.bf16.msra.mxu1 %v5249_v57  ;;  %v5531_v57 = vld [vmem:[%s9321_s3 + $0xd4] sm:$0xf] }
 0x2c0   : > { %v7869_v59 = vpop.f32.mrf.mxu0  ;;  %v7885_v0 = vpop.f32.mrf.mxu2 }
 0x2c1   : > { %9946 = vst [vmem:[#allocation126_spill] sm:$0xff] %v7869_v59  ;;  %v10054_v59 = vld [vmem:[#allocation59_spill] sm:$0xff] }
 0x2c2   : > { %9949 = vst [vmem:[#allocation180_spill] sm:$0xff] %v7885_v0  ;;  %v3349_v51 = vmul.f32 %v7771_v54, %v10054_v59  ;;  %v10058_v54 = vld [vmem:[#allocation25_spill] sm:$0xff] }
 0x2c4   : > { %v7883_v33 = vpop.f32.mrf.mxu3  ;;  %v7889_v55 = vpop.f32.mrf.mxu1 }
 0x2c5   : > { %9948 = vst [vmem:[#allocation179_spill] sm:$0xff] %v7883_v33  ;;  %v10055_v33 = vld [vmem:[#allocation68_spill] sm:$0xff] }
 0x2c6   : > { %9951 = vst [vmem:[#allocation182_spill] sm:$0xff] %v7889_v55  ;;  %v3381_v30 = vmul.f32 %v7785_v42, %v10055_v33  ;;  %v10059_v42 = vld [vmem:[#allocation92_spill] sm:$0xff] }
 0x2c8   : > { %v7887_v18 = vpop.f32.mrf.mxu0 }
 0x2c9   : > { %9950 = vst [vmem:[#allocation181_spill] sm:$0xff] %v7887_v18  ;;  %v5599_v18 = vld [vmem:[%s9323_s5 + $0x30] sm:$0xff] }
 0x2ca   : > { %2867 = vmatmul.bf16.gmra.mxu3 %v7365_v38  ;;  %2916 = vmatmul.bf16.gmra.mxu0 %v7365_v38  ;;  %v7905_v2 = vpop.f32.mrf.mxu2 }
 0x2cb   : > { %2965 = vmatmul.bf16.gmra.mxu1 %v7365_v38  ;;  %3014 = vmatmul.bf16.gmra.mxu2 %v7365_v38  ;;  %9953 = vst [vmem:[#allocation184_spill] sm:$0xff] %v7905_v2 }
 0x2cc   : > { %v7903_v20 = vpop.f32.mrf.mxu3  ;;  %v7915_v25 = vpop.f32.mrf.mxu1 }
 0x2cd   : > { %9952 = vst [vmem:[#allocation183_spill] sm:$0xff] %v7903_v20  ;;  %v8127_v20 = vld [vmem:[%s5947_s23 + $0x18] sm:$0xff] }
 0x2ce   : > { %9955 = vst [vmem:[#allocation186_spill] sm:$0xff] %v7915_v25 }
 0x2cf   : > { %9990 = vst [vmem:[#allocation221_spill] sm:$0xff] %v8127_v20 }
 0x2d0   : > { %v7913_v29 = vpop.f32.mrf.mxu0 }
 0x2d1   : > { %9954 = vst [vmem:[#allocation185_spill] sm:$0xff] %v7913_v29 }
 0x2d2   : > { %v7932_v22 = vpop.f32.mrf.mxu2 }
 0x2d3   : > { %9957 = vst [vmem:[#allocation188_spill] sm:$0xff] %v7932_v22  ;;  %v5536_v22 = vld [vmem:[%s9321_s3 + $0xf8] sm:$0xf0] }
 0x2d4   : > { %v7921_v17 = vpop.f32.mrf.mxu3  ;;  %v5197_v32 = vor.u32 %v5536_v22, %v5196_v23  ;;  %v5198_v23 = vld [vmem:[%s9321_s3 + $0xfc] sm:$0xf0]  ;;  %v5204_v22 = vld [vmem:[%s9321_s3 + $0xd8] sm:$0xf] }
 0x2d5   : > { %9956 = vst [vmem:[#allocation187_spill] sm:$0xff] %v7921_v17  ;;  %v5201_v39 = vor.u32 %v5531_v57, %v5198_v23  ;;  %v5152_v57 = vld [vmem:[%s9321_s3 + $0x78] sm:$0xf]  ;;  %v5525_v23 = vld [vmem:[%s9321_s3 + $0xa0] sm:$0xf0] }
 0x2d6   : > { %3055 = vmatpush.bf16.msrb.mxu3 %v5197_v32  ;;  %v5537_v32 = vld [vmem:[%s9321_s3 + $0x100] sm:$0xf0] }
 0x2d7   : > { %3104 = vmatpush.bf16.msrb.mxu0 %v5201_v39 }
 0x2d8   : > { %v7937_v44 = vpop.f32.mrf.mxu0  ;;  %v7939_v25 = vpop.f32.mrf.mxu1 }
 0x2d9   : > { %9958 = vst [vmem:[#allocation189_spill] sm:$0xff] %v7937_v44 }
 0x2da   : > { %2872 = vmatmul.bf16.gmra.mxu3 %v7419_v53  ;;  %2921 = vmatmul.bf16.gmra.mxu0 %v7419_v53  ;;  %9959 = vst [vmem:[#allocation190_spill] sm:$0xff] %v7939_v25 }
 0x2db   : > { %2970 = vmatmul.bf16.gmra.mxu1 %v7419_v53  ;;  %3019 = vmatmul.bf16.gmra.mxu2 %v7419_v53 }
 0x2dd   : > { %v7947_v60 = vpop.f32.mrf.mxu3 }
 0x2de   : > { %9960 = vst [vmem:[#allocation191_spill] sm:$0xff] %v7947_v60  ;;  %v7949_v29 = vpop.f32.mrf.mxu2 }
 0x2df   : > { %9961 = vst [vmem:[#allocation192_spill] sm:$0xff] %v7949_v29 }
 0x2e0   : > { %v7953_v6 = vpop.f32.mrf.mxu0  ;;  %v7966_v8 = vpop.f32.mrf.mxu1 }
 0x2e1   : > { %9962 = vst [vmem:[#allocation193_spill] sm:$0xff] %v7953_v6  ;;  %v5205_v6 = vor.u32 %v5537_v32, %v5204_v22 }
 0x2e2   : > { %9963 = vst [vmem:[#allocation194_spill] sm:$0xff] %v7966_v8 }
 0x2e3   : > { %3153 = vmatpush.bf16.msra.mxu1 %v5205_v6  ;;  %v5153_v6 = vor.u32 %v5525_v23, %v5152_v57  ;;  %v5160_v57 = vld [vmem:[%s9321_s3 + $0x80] sm:$0xf] }
 0x2e5   : > { %v7971_v29 = vpop.f32.mrf.mxu3  ;;  %3056 = vmatpush.bf16.msrb.mxu3 %v5153_v6  ;;  %v5526_v6 = vld [vmem:[%s9321_s3 + $0xa8] sm:$0xf0] }
 0x2e6   : > { %9964 = vst [vmem:[#allocation195_spill] sm:$0xff] %v7971_v29  ;;  %v7973_v25 = vpop.f32.mrf.mxu2 }
 0x2e7   : > { %9965 = vst [vmem:[#allocation196_spill] sm:$0xff] %v7973_v25  ;;  %v5108_v25 = vld [vmem:[%s9321_s3 + $0x20] sm:$0xf] }
 0x2ea   : > { %2877 = vmatmul.bf16.gmra.mxu3 %v7484_v46  ;;  %2926 = vmatmul.bf16.gmra.mxu0 %v7484_v46 }
 0x2eb   : > { %2975 = vmatmul.bf16.gmra.mxu1 %v7484_v46  ;;  %3024 = vmatmul.bf16.gmra.mxu2 %v7484_v46 }
 0x2f0   : > { %v7975_v44 = vpop.f32.mrf.mxu0 }
 0x2f1   : > { %9966 = vst [vmem:[#allocation197_spill] sm:$0xff] %v7975_v44  ;;  %v7977_v60 = vpop.f32.mrf.mxu1 }
 0x2f2   : > { %9967 = vst [vmem:[#allocation198_spill] sm:$0xff] %v7977_v60  ;;  %v5520_v60 = vld [vmem:[%s9321_s3 + $0x7c] sm:$0xf] }
 0x2f6   : > { %v7979_v17 = vpop.f32.mrf.mxu3 }
 0x2f7   : > { %9968 = vst [vmem:[#allocation199_spill] sm:$0xff] %v7979_v17  ;;  %v7987_v22 = vpop.f32.mrf.mxu2 }
 0x2f8   : > { %9969 = vst [vmem:[#allocation200_spill] sm:$0xff] %v7987_v22  ;;  %v7993_v39 = vpop.f32.mrf.mxu0  ;;  %v5154_v22 = vld [vmem:[%s9321_s3 + $0xa4] sm:$0xf0] }
 0x2f9   : > { %9970 = vst [vmem:[#allocation201_spill] sm:$0xff] %v7993_v39  ;;  %v7995_v32 = vpop.f32.mrf.mxu1  ;;  %v5157_v23 = vor.u32 %v5520_v60, %v5154_v22  ;;  %v5514_v60 = vld [vmem:[%s9321_s3 + $0x48] sm:$0xf0]  ;;  %v5509_v22 = vld [vmem:[%s9321_s3 + $0x24] sm:$0xf] }
 0x2fa   : > { %2882 = vmatmul.bf16.gmra.mxu3 %v7543_v49  ;;  %2931 = vmatmul.bf16.gmra.mxu0 %v7543_v49  ;;  %9971 = vst [vmem:[#allocation202_spill] sm:$0xff] %v7995_v32  ;;  %v5161_v32 = vor.u32 %v5526_v6, %v5160_v57  ;;  %v5109_v57 = vor.u32 %v5514_v60, %v5108_v25  ;;  %v5515_v6 = vld [vmem:[%s9321_s3 + $0x50] sm:$0xf0] }
 0x2fb   : > { %2980 = vmatmul.bf16.gmra.mxu1 %v7543_v49  ;;  %3029 = vmatmul.bf16.gmra.mxu2 %v7543_v49 }
 0x2fc   : > { %3105 = vmatpush.bf16.msrb.mxu0 %v5157_v23  ;;  %3154 = vmatpush.bf16.msra.mxu1 %v5161_v32  ;;  %v5110_v23 = vld [vmem:[%s9321_s3 + $0x4c] sm:$0xf0]  ;;  %v5116_v32 = vld [vmem:[%s9321_s3 + $0x28] sm:$0xf] }
 0x2fd   : > { %3057 = vmatpush.bf16.msrb.mxu3 %v5109_v57 }
 0x2fe   : > { %v8009_v39 = vpop.f32.mrf.mxu3 }
 0x2ff   : > { %9972 = vst [vmem:[#allocation203_spill] sm:$0xff] %v8009_v39  ;;  %v8011_v44 = vpop.f32.mrf.mxu2 }
 0x300   : > { %9973 = vst [vmem:[#allocation204_spill] sm:$0xff] %v8011_v44  ;;  %v5117_v44 = vor.u32 %v5515_v6, %v5116_v32 }
 0x302   : > { %3155 = vmatpush.bf16.msra.mxu1 %v5117_v44 }
 0x305   : > { %v8013_v17 = vpop.f32.mrf.mxu0 }
 0x306   : > { %9974 = vst [vmem:[#allocation205_spill] sm:$0xff] %v8013_v17  ;;  %v8024_v39 = vpop.f32.mrf.mxu1  ;;  %v5113_v17 = vor.u32 %v5509_v22, %v5110_v23 }
 0x307   : > { %9975 = vst [vmem:[#allocation206_spill] sm:$0xff] %v8024_v39 }
 0x308   : > { %3106 = vmatpush.bf16.msrb.mxu0 %v5113_v17 }
 0x30a   : > { %2887 = vmatmul.bf16.gmra.mxu3 %v7610_v1  ;;  %2936 = vmatmul.bf16.gmra.mxu0 %v7610_v1 }
 0x30b   : > { %2985 = vmatmul.bf16.gmra.mxu1 %v7610_v1  ;;  %3034 = vmatmul.bf16.gmra.mxu2 %v7610_v1  ;;  %v8037_v25 = vpop.f32.mrf.mxu3 }
 0x30c   : > { %9976 = vst [vmem:[#allocation207_spill] sm:$0xff] %v8037_v25  ;;  %v8041_v60 = vpop.f32.mrf.mxu2 }
 0x30d   : > { %9977 = vst [vmem:[#allocation208_spill] sm:$0xff] %v8041_v60  ;;  %v8043_v39 = vpop.f32.mrf.mxu0 }
 0x30e   : > { %9978 = vst [vmem:[#allocation209_spill] sm:$0xff] %v8043_v39  ;;  %v8045_v8 = vpop.f32.mrf.mxu1 }
 0x30f   : > { %9979 = vst [vmem:[#allocation210_spill] sm:$0xff] %v8045_v8 }
 0x313   : > { %v8047_v22 = vpop.f32.mrf.mxu3 }
 0x314   : > { %9980 = vst [vmem:[#allocation211_spill] sm:$0xff] %v8047_v22  ;;  %v8049_v17 = vpop.f32.mrf.mxu2  ;;  %v8095_v22 = vld [vmem:[%s5947_s23 + $0x8] sm:$0xff] }
 0x315   : > { %9981 = vst [vmem:[#allocation212_spill] sm:$0xff] %v8049_v17 }
 0x31a   : > { %2892 = vmatmul.bf16.gmra.mxu3 %v7672_v50  ;;  %2941 = vmatmul.bf16.gmra.mxu0 %v7672_v50 }
 0x31b   : > { %2990 = vmatmul.bf16.gmra.mxu1 %v7672_v50  ;;  %3039 = vmatmul.bf16.gmra.mxu2 %v7672_v50 }
 0x327   : > { %v8051_v44 = vpop.f32.mrf.mxu0 }
 0x328   : > { %9982 = vst [vmem:[#allocation213_spill] sm:$0xff] %v8051_v44  ;;  %v8053_v57 = vpop.f32.mrf.mxu1 }
 0x329   : > { %9983 = vst [vmem:[#allocation214_spill] sm:$0xff] %v8053_v57 }
 0x32a   : > { %2897 = vmatmul.bf16.gmra.mxu3 %v7767_v34  ;;  %2946 = vmatmul.bf16.gmra.mxu0 %v7767_v34 }
 0x32b   : > { %2995 = vmatmul.bf16.gmra.mxu1 %v7767_v34  ;;  %3044 = vmatmul.bf16.gmra.mxu2 %v7767_v34 }
 0x32d   : > { %v8059_v23 = vpop.f32.mrf.mxu3 }
 0x32e   : > { %9984 = vst [vmem:[#allocation215_spill] sm:$0xff] %v8059_v23  ;;  %v8061_v32 = vpop.f32.mrf.mxu2  ;;  %v5600_v23 = vld [vmem:[%s9323_s5 + $0x38] sm:$0xff] }
 0x32f   : > { %9985 = vst [vmem:[#allocation216_spill] sm:$0xff] %v8061_v32  ;;  %v8063_v6 = vpop.f32.mrf.mxu0  ;;  %v8079_v32 = vld [vmem:[%s5947_s23] sm:$0xff]  ;;  %3725 = vmatpush.bf16.msra.mxu3 %v5600_v23 }
 0x330   : > { %9986 = vst [vmem:[#allocation217_spill] sm:$0xff] %v8063_v6  ;;  %v8065_v17 = vpop.f32.mrf.mxu1 }
 0x331   : > { %9987 = vst [vmem:[#allocation218_spill] sm:$0xff] %v8065_v17 }
 0x333   : > { %3726 = vmatpush.bf16.msra.mxu3 %v5599_v18 }
 0x335   : > { %v8067_v44 = vpop.f32.mrf.mxu3 }
 0x336   : > { %9988 = vst [vmem:[#allocation219_spill] sm:$0xff] %v8067_v44  ;;  %v8069_v57 = vpop.f32.mrf.mxu2 }
 0x337   : > { %9989 = vst [vmem:[#allocation220_spill] sm:$0xff] %v8069_v57  ;;  %v8071_v8 = vpop.f32.mrf.mxu0 }
 0x338   : > { %v8073_v39 = vpop.f32.mrf.mxu1 }
 0x33a   : > { %3058 = vmatmul.bf16.vlgmr.msrb.gmra.mxu3 %v7313_v19  ;;  %3107 = vmatmul.bf16.vlgmr.msrb.gmra.mxu0 %v7313_v19 }
 0x33b   : > { %3156 = vmatmul.bf16.vlgmr.msra.gmra.mxu1 %v7313_v19  ;;  %5427 = vmatmul.msk.f32.vlgmr.msra.gmra.mxu2 %vm3215_vm3, %v8079_v32 }
 0x33d   : > { %v8083_v17 = vpop.f32.mrf.mxu3 }
 0x33e   : > { %v8085_v57 = vpop.f32.mrf.mxu2 }
 0x33f   : > { %v8087_v6 = vpop.f32.mrf.mxu0 }
 0x340   : > { %v8089_v44 = vpop.f32.mrf.mxu1 }
 0x343   : > { %5428 = vmatmul.msk.f32.gmra.mxu2 %vm3215_vm3, %v8095_v22 }
 0x345   : > { %v8099_v19 = vpop.f32.mrf.mxu3 }
 0x346   : > { %v8101_v60 = vpop.f32.mrf.mxu2 }
 0x347   : > { %v8103_v25 = vpop.f32.mrf.mxu0 }
 0x348   : > { %v8105_v29 = vpop.f32.mrf.mxu1 }
 0x34a   : > { %3063 = vmatmul.bf16.gmra.mxu3 %v7365_v38  ;;  %3112 = vmatmul.bf16.gmra.mxu0 %v7365_v38 }
 0x34b   : > { %3161 = vmatmul.bf16.gmra.mxu1 %v7365_v38  ;;  %5429 = vmatmul.msk.f32.gmra.mxu2 %vm3215_vm3, %v8111_v26 }
 0x34d   : > { %v8115_v23 = vpop.f32.mrf.mxu3 }
 0x34e   : > { %v8117_v2 = vpop.f32.mrf.mxu2 }
 0x34f   : > { %v8119_v55 = vpop.f32.mrf.mxu0 }
 0x350   : > { %v8121_v27 = vpop.f32.mrf.mxu1 }
 0x353   : > { %5430 = vmatmul.msk.f32.gmra.mxu2 %vm3215_vm3, %v8127_v20 }
 0x355   : > { %v8131_v38 = vpop.f32.mrf.mxu3 }
 0x356   : > { %v8133_v36 = vpop.f32.mrf.mxu2 }
 0x357   : > { %9991 = vst [vmem:[#allocation222_spill] sm:$0xff] %v8133_v36  ;;  %v8135_v0 = vpop.f32.mrf.mxu0 }
 0x358   : > { %9992 = vst [vmem:[#allocation223_spill] sm:$0xff] %v8135_v0  ;;  %v8137_v52 = vpop.f32.mrf.mxu1  ;;  %v8159_v0 = vld [vmem:[%s5947_s23 + $0x28] sm:$0xff] }
 0x359   : > { %9993 = vst [vmem:[#allocation224_spill] sm:$0xff] %v8137_v52  ;;  %v5598_v52 = vld [vmem:[%s9323_s5 + $0x28] sm:$0xff] }
 0x35a   : > { %3068 = vmatmul.bf16.gmra.mxu3 %v7419_v53  ;;  %3117 = vmatmul.bf16.gmra.mxu0 %v7419_v53  ;;  %9999 = vst [vmem:[#allocation230_spill] sm:$0xff] %v8159_v0 }
 0x35b   : > { %3166 = vmatmul.bf16.gmra.mxu1 %v7419_v53  ;;  %5431 = vmatmul.msk.f32.gmra.mxu2 %vm3215_vm3, %v8143_v10 }
 0x35c   : > { %3727 = vmatpush.bf16.msra.mxu3 %v5598_v52 }
 0x35d   : > { %v8147_v18 = vpop.f32.mrf.mxu3 }
 0x35e   : > { %9995 = vst [vmem:[#allocation226_spill] sm:$0xff] %v8147_v18  ;;  %v8149_v31 = vpop.f32.mrf.mxu2 }
 0x35f   : > { %9996 = vst [vmem:[#allocation227_spill] sm:$0xff] %v8149_v31  ;;  %v8151_v41 = vpop.f32.mrf.mxu0 }
 0x360   : > { %9997 = vst [vmem:[#allocation228_spill] sm:$0xff] %v8151_v41  ;;  %v8153_v47 = vpop.f32.mrf.mxu1 }
 0x361   : > { %9998 = vst [vmem:[#allocation229_spill] sm:$0xff] %v8153_v47  ;;  %v8175_v47 = vld [vmem:[%s5947_s23 + $0x30] sm:$0xff] }
 0x362   : > { %10004 = vst [vmem:[#allocation235_spill] sm:$0xff] %v8175_v47 }
 0x363   : > { %5432 = vmatmul.msk.f32.gmra.mxu2 %vm3215_vm3, %v8159_v0 }
 0x365   : > { %v8163_v53 = vpop.f32.mrf.mxu3 }
 0x366   : > { %10000 = vst [vmem:[#allocation231_spill] sm:$0xff] %v8163_v53  ;;  %v8165_v10 = vpop.f32.mrf.mxu2  ;;  %v8191_v53 = vld [vmem:[%s5947_s23 + $0x38] sm:$0xff] }
 0x367   : > { %10001 = vst [vmem:[#allocation232_spill] sm:$0xff] %v8165_v10  ;;  %v8167_v31 = vpop.f32.mrf.mxu0 }
 0x368   : > { %10002 = vst [vmem:[#allocation233_spill] sm:$0xff] %v8167_v31  ;;  %v8169_v41 = vpop.f32.mrf.mxu1 }
 0x369   : > { %10003 = vst [vmem:[#allocation234_spill] sm:$0xff] %v8169_v41  ;;  %v5597_v41 = vld [vmem:[%s9323_s5 + $0x20] sm:$0xff] }
 0x36a   : > { %3073 = vmatmul.bf16.gmra.mxu3 %v7484_v46  ;;  %3122 = vmatmul.bf16.gmra.mxu0 %v7484_v46  ;;  %10009 = vst [vmem:[#allocation240_spill] sm:$0xff] %v8191_v53 }
 0x36b   : > { %3171 = vmatmul.bf16.gmra.mxu1 %v7484_v46  ;;  %5433 = vmatmul.msk.f32.gmra.mxu2 %vm3215_vm3, %v8175_v47 }
 0x36c   : > { %3728 = vmatpush.bf16.msra.mxu3 %v5597_v41 }
 0x36d   : > { %v8179_v52 = vpop.f32.mrf.mxu3 }
 0x36e   : > { %10005 = vst [vmem:[#allocation236_spill] sm:$0xff] %v8179_v52  ;;  %v8181_v0 = vpop.f32.mrf.mxu2 }
 0x36f   : > { %10006 = vst [vmem:[#allocation237_spill] sm:$0xff] %v8181_v0  ;;  %v8183_v10 = vpop.f32.mrf.mxu0 }
 0x370   : > { %10007 = vst [vmem:[#allocation238_spill] sm:$0xff] %v8183_v10  ;;  %v8185_v31 = vpop.f32.mrf.mxu1 }
 0x371   : > { %10008 = vst [vmem:[#allocation239_spill] sm:$0xff] %v8185_v31  ;;  %v8207_v31 = vld [vmem:[%s5947_s23 + $0x40] sm:$0xff] }
 0x372   : > { %10014 = vst [vmem:[#allocation245_spill] sm:$0xff] %v8207_v31 }
 0x373   : > { %5434 = vmatmul.msk.f32.gmra.mxu2 %vm3215_vm3, %v8191_v53 }
 0x375   : > { %v8195_v46 = vpop.f32.mrf.mxu3 }
 0x376   : > { %10010 = vst [vmem:[#allocation241_spill] sm:$0xff] %v8195_v46  ;;  %v8197_v47 = vpop.f32.mrf.mxu2  ;;  %v8223_v46 = vld [vmem:[%s5947_s23 + $0x48] sm:$0xff] }
 0x377   : > { %10011 = vst [vmem:[#allocation242_spill] sm:$0xff] %v8197_v47  ;;  %v8199_v0 = vpop.f32.mrf.mxu0 }
 0x378   : > { %10012 = vst [vmem:[#allocation243_spill] sm:$0xff] %v8199_v0  ;;  %v8201_v10 = vpop.f32.mrf.mxu1 }
 0x379   : > { %10013 = vst [vmem:[#allocation244_spill] sm:$0xff] %v8201_v10  ;;  %v5596_v10 = vld [vmem:[%s9323_s5 + $0x18] sm:$0xff] }
 0x37a   : > { %3078 = vmatmul.bf16.gmra.mxu3 %v7543_v49  ;;  %3127 = vmatmul.bf16.gmra.mxu0 %v7543_v49  ;;  %10019 = vst [vmem:[#allocation250_spill] sm:$0xff] %v8223_v46 }
 0x37b   : > { %3176 = vmatmul.bf16.gmra.mxu1 %v7543_v49  ;;  %5435 = vmatmul.msk.f32.gmra.mxu2 %vm3215_vm3, %v8207_v31 }
 0x37c   : > { %3729 = vmatpush.bf16.msra.mxu3 %v5596_v10 }
 0x37d   : > { %v8211_v41 = vpop.f32.mrf.mxu3 }
 0x37e   : > { %10015 = vst [vmem:[#allocation246_spill] sm:$0xff] %v8211_v41  ;;  %v8213_v53 = vpop.f32.mrf.mxu2  ;;  %v10053_v41 = vld [vmem:[#allocation37_spill] sm:$0xff] }
 0x37f   : > { %10016 = vst [vmem:[#allocation247_spill] sm:$0xff] %v8213_v53  ;;  %v8215_v47 = vpop.f32.mrf.mxu0 }
 0x380   : > { %10017 = vst [vmem:[#allocation248_spill] sm:$0xff] %v8215_v47  ;;  %v8217_v0 = vpop.f32.mrf.mxu1 }
 0x381   : > { %10018 = vst [vmem:[#allocation249_spill] sm:$0xff] %v8217_v0  ;;  %v8239_v0 = vld [vmem:[%s5947_s23 + $0x50] sm:$0xff] }
 0x382   : > { %10024 = vst [vmem:[#allocation255_spill] sm:$0xff] %v8239_v0 }
 0x383   : > { %5436 = vmatmul.msk.f32.gmra.mxu2 %vm3215_vm3, %v8223_v46 }
 0x385   : > { %v8227_v49 = vpop.f32.mrf.mxu3 }
 0x386   : > { %10020 = vst [vmem:[#allocation251_spill] sm:$0xff] %v8227_v49  ;;  %v8229_v31 = vpop.f32.mrf.mxu2  ;;  %v8255_v49 = vld [vmem:[%s5947_s23 + $0x58] sm:$0xff] }
 0x387   : > { %10021 = vst [vmem:[#allocation252_spill] sm:$0xff] %v8229_v31  ;;  %v8231_v53 = vpop.f32.mrf.mxu0 }
 0x388   : > { %10022 = vst [vmem:[#allocation253_spill] sm:$0xff] %v8231_v53  ;;  %v8233_v47 = vpop.f32.mrf.mxu1 }
 0x389   : > { %10023 = vst [vmem:[#allocation254_spill] sm:$0xff] %v8233_v47  ;;  %v5595_v47 = vld [vmem:[%s9323_s5 + $0x10] sm:$0xff] }
 0x38a   : > { %3083 = vmatmul.bf16.gmra.mxu3 %v7610_v1  ;;  %3132 = vmatmul.bf16.gmra.mxu0 %v7610_v1  ;;  %10029 = vst [vmem:[#allocation260_spill] sm:$0xff] %v8255_v49 }
 0x38b   : > { %3181 = vmatmul.bf16.gmra.mxu1 %v7610_v1  ;;  %5437 = vmatmul.msk.f32.gmra.mxu2 %vm3215_vm3, %v8239_v0 }
 0x38c   : > { %3730 = vmatpush.bf16.msra.mxu3 %v5595_v47 }
 0x38d   : > { %v8243_v10 = vpop.f32.mrf.mxu3 }
 0x38e   : > { %10025 = vst [vmem:[#allocation256_spill] sm:$0xff] %v8243_v10  ;;  %v8245_v46 = vpop.f32.mrf.mxu2 }
 0x38f   : > { %10026 = vst [vmem:[#allocation257_spill] sm:$0xff] %v8245_v46  ;;  %v8247_v31 = vpop.f32.mrf.mxu0 }
 0x390   : > { %10027 = vst [vmem:[#allocation258_spill] sm:$0xff] %v8247_v31  ;;  %v8249_v53 = vpop.f32.mrf.mxu1 }
 0x391   : > { %10028 = vst [vmem:[#allocation259_spill] sm:$0xff] %v8249_v53  ;;  %v8271_v53 = vld [vmem:[%s5947_s23 + $0x60] sm:$0xff] }
 0x392   : > { %10034 = vst [vmem:[#allocation265_spill] sm:$0xff] %v8271_v53 }
 0x393   : > { %5438 = vmatmul.msk.f32.gmra.mxu2 %vm3215_vm3, %v8255_v49 }
 0x395   : > { %v8259_v1 = vpop.f32.mrf.mxu3 }
 0x396   : > { %10030 = vst [vmem:[#allocation261_spill] sm:$0xff] %v8259_v1  ;;  %v8261_v0 = vpop.f32.mrf.mxu2 }
 0x397   : > { %10031 = vst [vmem:[#allocation262_spill] sm:$0xff] %v8261_v0  ;;  %v8263_v46 = vpop.f32.mrf.mxu0 }
 0x398   : > { %10032 = vst [vmem:[#allocation263_spill] sm:$0xff] %v8263_v46  ;;  %v8265_v31 = vpop.f32.mrf.mxu1 }
 0x399   : > { %10033 = vst [vmem:[#allocation264_spill] sm:$0xff] %v8265_v31  ;;  %v8284_v31 = vld [vmem:[%s5947_s23 + $0x68] sm:$0xff] }
 0x39a   : > { %3088 = vmatmul.bf16.gmra.mxu3 %v7672_v50  ;;  %3137 = vmatmul.bf16.gmra.mxu0 %v7672_v50  ;;  %10039 = vst [vmem:[#allocation270_spill] sm:$0xff] %v8284_v31 }
 0x39b   : > { %3186 = vmatmul.bf16.gmra.mxu1 %v7672_v50  ;;  %5439 = vmatmul.msk.f32.gmra.mxu2 %vm3215_vm3, %v8271_v53 }
 0x39d   : > { %v8275_v47 = vpop.f32.mrf.mxu3 }
 0x39e   : > { %10035 = vst [vmem:[#allocation266_spill] sm:$0xff] %v8275_v47  ;;  %v8277_v49 = vpop.f32.mrf.mxu2 }
 0x39f   : > { %10036 = vst [vmem:[#allocation267_spill] sm:$0xff] %v8277_v49  ;;  %v8279_v0 = vpop.f32.mrf.mxu0  ;;  %v10052_v49 = vld [vmem:[#allocation20_spill] sm:$0xff] }
 0x3a0   : > { %10037 = vst [vmem:[#allocation268_spill] sm:$0xff] %v8279_v0  ;;  %v8281_v46 = vpop.f32.mrf.mxu1 }
 0x3a1   : > { %10038 = vst [vmem:[#allocation269_spill] sm:$0xff] %v8281_v46  ;;  %v8300_v46 = vld [vmem:[%s5947_s23 + $0x70] sm:$0xff] }
 0x3a2   : > { %10044 = vst [vmem:[#allocation275_spill] sm:$0xff] %v8300_v46 }
 0x3a3   : > { %5440 = vmatmul.msk.f32.gmra.mxu2 %vm3215_vm3, %v8284_v31 }
 0x3a5   : > { %v8288_v50 = vpop.f32.mrf.mxu3 }
 0x3a6   : > { %10040 = vst [vmem:[#allocation271_spill] sm:$0xff] %v8288_v50  ;;  %v8290_v1 = vpop.f32.mrf.mxu2  ;;  %v8316_v50 = vld [vmem:[%s5947_s23 + $0x78] sm:$0xff] }
 0x3a7   : > { %10041 = vst [vmem:[#allocation272_spill] sm:$0xff] %v8290_v1  ;;  %v8292_v10 = vpop.f32.mrf.mxu0 }
 0x3a8   : > { %10042 = vst [vmem:[#allocation273_spill] sm:$0xff] %v8292_v10  ;;  %v8294_v53 = vpop.f32.mrf.mxu1 }
 0x3a9   : > { %10043 = vst [vmem:[#allocation274_spill] sm:$0xff] %v8294_v53  ;;  %v5594_v53 = vld [vmem:[%s9323_s5 + $0x8] sm:$0xff] }
 0x3aa   : > { %3093 = vmatmul.bf16.gmra.mxu3 %v7767_v34  ;;  %3142 = vmatmul.bf16.gmra.mxu0 %v7767_v34  ;;  %10049 = vst [vmem:[#allocation280_spill] sm:$0xff] %v8316_v50 }
 0x3ab   : > { %3191 = vmatmul.bf16.gmra.mxu1 %v7767_v34  ;;  %5441 = vmatmul.msk.f32.gmra.mxu2 %vm3215_vm3, %v8300_v46 }
 0x3ac   : > { %3731 = vmatpush.bf16.msra.mxu3 %v5594_v53 }
 0x3ad   : > { %v8304_v31 = vpop.f32.mrf.mxu3 }
 0x3ae   : > { %10045 = vst [vmem:[#allocation276_spill] sm:$0xff] %v8304_v31  ;;  %v8306_v0 = vpop.f32.mrf.mxu2 }
 0x3af   : > { %10046 = vst [vmem:[#allocation277_spill] sm:$0xff] %v8306_v0  ;;  %v8308_v1 = vpop.f32.mrf.mxu0 }
 0x3b0   : > { %10047 = vst [vmem:[#allocation278_spill] sm:$0xff] %v8308_v1  ;;  %v8313_v10 = vpop.f32.mrf.mxu1  ;;  %v5593_v1 = vld [vmem:[%s9323_s5] sm:$0xff] }
 0x3b1   : > { %10048 = vst [vmem:[#allocation279_spill] sm:$0xff] %v8313_v10  ;;  %v3199_v10 = vmul.f32 %v7783_v48, %v10052_v49  ;;  %3732 = vmatpush.bf16.msra.mxu3 %v5593_v1  ;;  %v10056_v48 = vld [vmem:[#allocation23_spill] sm:$0xff]  ;;  %v10057_v49 = vld [vmem:[#allocation86_spill] sm:$0xff] }
 0x3b2   : > { %v3200_v1 = vmul.f32 %v7797_v11, %v10056_v48  ;;  %v3413_v20 = vmul.f32 %v8083_v17, %v10057_v49  ;;  %v10060_v17 = vld [vmem:[#allocation62_spill] sm:$0xff]  ;;  %v10061_v48 = vld [vmem:[#allocation108_spill] sm:$0xff] }
 0x3b3   : > { %5442 = vmatmul.msk.f32.gmra.mxu2 %vm3215_vm3, %v8316_v50  ;;  %v3317_v50 = vmul.f32 %v7769_v7, %v10053_v41 }
 0x3b5   : > { %v8320_v34 = vpop.f32.mrf.mxu3 }
 0x3b6   : > { %10050 = vst [vmem:[#allocation281_spill] sm:$0xff] %v8320_v34  ;;  %v8322_v46 = vpop.f32.mrf.mxu2 }
 0x3b7   : > { %10051 = vst [vmem:[#allocation282_spill] sm:$0xff] %v8322_v46  ;;  %v3108_v31 = vpop.f32.mrf.mxu0 }
 0x3b8   : > { %v8324_v0 = vpop.f32.mrf.mxu1 }
 0x3bd   : > { %v3059_v53 = vpop.f32.mrf.mxu3 }
 0x3be   : > { %v3269_v47 = vpop.f32.mrf.mxu2 }
 0x3bf   : > { %v3270_v52 = vadd.f32 %v3269_v47, %v3199_v10  ;;  %v8333_v34 = vpop.f32.mrf.mxu0  ;;  %v3775_v47 = vld [vmem:[%s9324_s6 + $0x8] sm:$0x7] }
 0x3c0   : > { %v8335_v46 = vpop.f32.mrf.mxu1  ;;  %5475 = vmatpush.msk.msra.mxu0 %vm3248_vm2, %v3775_v47  ;;  %v3350_v47 = vmul.f32 %v7795_v13, %v10060_v17  ;;  %v10065_v13 = vld [vmem:[#allocation8_spill] sm:$0xff] }
 0x3c1   : > { %v3333_v18 = vadd.f32 %v3317_v50, %v3270_v52  ;;  %v3318_v52 = vmul.f32 %v7787_v16, %v10058_v54  ;;  %v3477_v16 = vmul.f32 %v8073_v39, %v10061_v48  ;;  %v3414_v17 = vmul.f32 %v8099_v19, %v10065_v13  ;;  %v10067_v48 = vld [vmem:[#allocation102_spill] sm:$0xff] }
 0x3c3   : > { %v3365_v36 = vadd.f32 %v3349_v51, %v3333_v18  ;;  %v3445_v51 = vmul.f32 %v8071_v8, %v10059_v42 }
 0x3c5   : > { %v3397_v7 = vadd.f32 %v3381_v30, %v3365_v36  ;;  %v3061_v10 = vpop.f32.mrf.mxu3  ;;  %v3774_v36 = vld [vmem:[%s9324_s6] sm:$0xff] }
 0x3c6   : > { %v3272_v41 = vpop.f32.mrf.mxu2  ;;  %3810 = vmatpush.msra.mxu0 %v3774_v36  ;;  %v10064_v36 = vld [vmem:[#allocation18_spill] sm:$0xff] }
 0x3c7   : > { %v3429_v18 = vadd.f32 %v3413_v20, %v3397_v7  ;;  %v3273_v11 = vadd.f32 %v3272_v41, %v3200_v1  ;;  %v8353_v50 = vpop.f32.mrf.mxu0  ;;  %5476 = vmatmul.msk.f32.vlgmr.msra.gmra.mxu0 %vm3215_vm3, %v8079_v32  ;;  %v10062_v20 = vld [vmem:[#allocation75_spill] sm:$0xff]  ;;  %v10063_v41 = vld [vmem:[#allocation132_spill] sm:$0xff]  ;;  %v3201_v59 = vmul.f32 %v7815_v58, %v10064_v36 }
 0x3c8   : > { %v8358_v30 = vpop.f32.mrf.mxu1  ;;  %v3382_v8 = vmul.f32 %v7805_v62, %v10062_v20  ;;  %v3509_v1 = vmul.f32 %v8085_v57, %v10063_v41  ;;  %v3446_v62 = vmul.f32 %v8087_v6, %v10067_v48  ;;  %v3541_v57 = vmul.f32 %v3059_v53, %v7283_v9  ;;  %v10068_v58 = vld [vmem:[#allocation48_spill] sm:$0xff]  ;;  %v10070_v6 = vld [vmem:[#allocation39_spill] sm:$0xff] }
 0x3c9   : > { %v3461_v54 = vadd.f32 %v3445_v51, %v3429_v18  ;;  %v3334_v49 = vadd.f32 %v3318_v52, %v3273_v11  ;;  %v10066_v18 = vld [vmem:[#allocation43_spill] sm:$0xff]  ;;  %v3383_v53 = vmul.f32 %v7826_v4, %v10070_v6  ;;  %v10073_v4 = vld [vmem:[#allocation42_spill] sm:$0xff] }
 0x3ca   : > { %v3319_v32 = vmul.f32 %v7809_v63, %v10066_v18 }
 0x3cb   : > { %v3493_v7 = vadd.f32 %v3477_v16, %v3461_v54  ;;  %v3366_v42 = vadd.f32 %v3350_v47, %v3334_v49  ;;  %v3351_v16 = vmul.f32 %v7813_v15, %v10068_v58 }
 0x3cd   : > { %v3525_v39 = vadd.f32 %v3509_v1, %v3493_v7  ;;  %v3398_v51 = vadd.f32 %v3382_v8, %v3366_v42  ;;  %v3064_v52 = vpop.f32.mrf.mxu3  ;;  %v10069_v42 = vld [vmem:[#allocation106_spill] sm:$0xff] }
 0x3ce   : > { %v3275_v11 = vpop.f32.mrf.mxu2  ;;  %v3478_v8 = vmul.f32 %v8089_v44, %v10069_v42  ;;  %v10072_v44 = vld [vmem:[#allocation12_spill] sm:$0xff] }
 0x3cf   : > { %v3430_v54 = vadd.f32 %v3414_v17, %v3398_v51  ;;  %v3276_v49 = vadd.f32 %v3275_v11, %v3201_v59  ;;  %v8379_v47 = vpop.f32.mrf.mxu0  ;;  %v3557_v1 = vadd.f32 %v3541_v57, %v3525_v39  ;;  %5477 = vmatmul.msk.f32.gmra.mxu0 %vm3215_vm3, %v8095_v22  ;;  %v3510_v59 = vmul.f32 %v8101_v60, %v7039_v3  ;;  %v10071_v11 = vld [vmem:[#allocation21_spill] sm:$0xff] }
 0x3d0   : > { %v8383_v19 = vpop.f32.mrf.mxu1  ;;  %v3573_v17 = vmul.f32 %v3108_v31, %v7267_v35  ;;  %v3202_v36 = vmul.f32 %v7843_v45, %v10071_v11  ;;  %v3415_v39 = vmul.f32 %v8115_v23, %v10072_v44  ;;  %v10074_v60 = vld [vmem:[#allocation93_spill] sm:$0xff]  ;;  %v3574_v45 = vmul.f32 %v8333_v34, %v7303_v12 }
 0x3d1   : > { %v3462_v63 = vadd.f32 %v3446_v62, %v3430_v54  ;;  %v3335_v7 = vadd.f32 %v3319_v32, %v3276_v49  ;;  %v3542_v32 = vmul.f32 %v3061_v10, %v7286_v24  ;;  %v3320_v49 = vmul.f32 %v7831_v21, %v10073_v4  ;;  %v10080_v11 = vld [vmem:[#allocation89_spill] sm:$0xff] }
 0x3d2   : > { %v3589_v54 = vadd.f32 %v3573_v17, %v3557_v1  ;;  %v3447_v31 = vmul.f32 %v8103_v25, %v10074_v60  ;;  %v3479_v21 = vmul.f32 %v8105_v29, %v6977_v14  ;;  %v3606_v25 = vmul.f32 %v8335_v46, %v7301_v5 }
 0x3d3   : > { %v3494_v15 = vadd.f32 %v3478_v8, %v3462_v63  ;;  %v3367_v51 = vadd.f32 %v3351_v16, %v3335_v7  ;;  %v10075_v8 = vld [vmem:[#allocation147_spill] sm:$0xff] }
 0x3d4   : > { %v3605_v16 = vmul.f32 %v8324_v0, %v10075_v8 }
 0x3d5   : > { %v3526_v62 = vadd.f32 %v3510_v59, %v3494_v15  ;;  %v3399_v22 = vadd.f32 %v3383_v53, %v3367_v51  ;;  %v3066_v57 = vpop.f32.mrf.mxu3  ;;  %v10076_v53 = vld [vmem:[#allocation65_spill] sm:$0xff] }
 0x3d6   : > { %v3278_v63 = vpop.f32.mrf.mxu2  ;;  %v3352_v1 = vmul.f32 %v7833_v43, %v10076_v53  ;;  %v3621_v34 = vadd.f32 %v3605_v16, %v3589_v54 }
 0x3d7   : > { %v3558_v23 = vadd.f32 %v3542_v32, %v3526_v62  ;;  %v3431_v7 = vadd.f32 %v3415_v39, %v3399_v22  ;;  %v3279_v10 = vadd.f32 %v3278_v63, %v3202_v36  ;;  %v8407_v59 = vpop.f32.mrf.mxu0  ;;  %5478 = vmatmul.msk.f32.gmra.mxu0 %vm3215_vm3, %v8111_v26  ;;  %v10077_v36 = vld [vmem:[#allocation71_spill] sm:$0xff]  ;;  %v10078_v32 = vld [vmem:[#allocation136_spill] sm:$0xff] }
 0x3d8   : > { %v8415_v17 = vpop.f32.mrf.mxu1  ;;  %v3384_v39 = vmul.f32 %v7853_v61, %v10077_v36  ;;  %v3511_v43 = vmul.f32 %v8117_v2, %v10078_v32  ;;  %v10079_v63 = vld [vmem:[#allocation15_spill] sm:$0xff]  ;;  %v3637_v16 = vmax.f32 %v3621_v34, 0.0 }
 0x3d9   : > { %v3463_v0 = vadd.f32 %v3447_v31, %v3431_v7  ;;  %v3336_v15 = vadd.f32 %v3320_v49, %v3279_v10  ;;  %v3590_v51 = vadd.f32 %v3574_v45, %v3558_v23  ;;  %v3203_v46 = vmul.f32 %v7865_v28, %v10079_v63  ;;  %v10081_v23 = vld [vmem:[#allocation29_spill] sm:$0xff]  ;;  %v10085_v34 = vld [vmem:[#allocation111_spill] sm:$0xff] }
 0x3da   : > { %v3416_v49 = vmul.f32 %v8131_v38, %v10080_v11  ;;  %v3321_v61 = vmul.f32 %v7855_v40, %v10081_v23  ;;  %v10082_v7 = vld [vmem:[#allocation105_spill] sm:$0xff]  ;;  %v10099_v11 = vld [vmem:[#allocation223_spill] sm:$0xff] }
 0x3db   : > { %v3495_v62 = vadd.f32 %v3479_v21, %v3463_v0  ;;  %v3368_v29 = vadd.f32 %v3352_v1, %v3336_v15  ;;  %v3622_v22 = vadd.f32 %v3606_v25, %v3590_v51  ;;  %v3448_v2 = vmul.f32 %v8119_v55, %v10082_v7  ;;  %v10083_v1 = vld [vmem:[#allocation150_spill] sm:$0xff]  ;;  %v10084_v15 = vld [vmem:[#allocation53_spill] sm:$0xff]  ;;  %v10108_v7 = vld [vmem:[#allocation180_spill] sm:$0xff] }
 0x3dc   : > { %v3543_v21 = vmul.f32 %v3064_v52, %v10083_v1  ;;  %v3353_v38 = vmul.f32 %v7857_v37, %v10084_v15  ;;  %v10087_v52 = vld [vmem:[#allocation221_spill] sm:$0xff]  ;;  %v10097_v15 = vld [vmem:[#allocation126_spill] sm:$0xff] }
 0x3dd   : > { %v3400_v31 = vadd.f32 %v3384_v39, %v3368_v29  ;;  %v8427_v54 = vpop.f32.mrf.mxu3  ;;  %v3638_v26 = vmax.f32 %v3622_v22, 0.0  ;;  %v3527_v45 = vadd.f32 %v3511_v43, %v3495_v62  ;;  %v3480_v39 = vmul.f32 %v8121_v27, %v10085_v34  ;;  %v10086_v29 = vld [vmem:[#allocation10_spill] sm:$0xff]  ;;  %v10096_v23 = vld [vmem:[#allocation45_spill] sm:$0xff] }
 0x3de   : > { %v3281_v10 = vpop.f32.mrf.mxu2  ;;  %v3385_v55 = vmul.f32 %v7867_v56, %v10086_v29  ;;  %v10095_v56 = vld [vmem:[#allocation148_spill] sm:$0xff] }
 0x3df   : > { %v3432_v25 = vadd.f32 %v3416_v49, %v3400_v31  ;;  %v3282_v28 = vadd.f32 %v3281_v10, %v3203_v46  ;;  %v3653_v0 = vpack.c.bf16 %v3638_v26, %v3637_v16  ;;  %v8436_v51 = vpop.f32.mrf.mxu0  ;;  %v3559_v40 = vadd.f32 %v3543_v21, %v3527_v45  ;;  %5479 = vmatmul.msk.f32.gmra.mxu0 %vm3215_vm3, %v10087_v52  ;;  %v10088_v46 = vld [vmem:[#allocation135_spill] sm:$0xff]  ;;  %v10089_v49 = vld [vmem:[#allocation222_spill] sm:$0xff]  ;;  %v10090_v31 = vld [vmem:[#allocation152_spill] sm:$0xff] }
 0x3e0   : > { %v8442_v22 = vpop.f32.mrf.mxu1  ;;  %v3512_v37 = vmul.f32 %v10089_v49, %v10088_v46  ;;  %v3575_v16 = vmul.f32 %v8353_v50, %v10090_v31  ;;  %v10093_v45 = vld [vmem:[#allocation80_spill] sm:$0xff]  ;;  %v10094_v21 = vld [vmem:[#allocation226_spill] sm:$0xff]  ;;  %v3322_v49 = vmul.f32 %v10097_v15, %v10096_v23  ;;  %v10098_v46 = vld [vmem:[#allocation97_spill] sm:$0xff] }
 0x3e1   : > { %v3464_v43 = vadd.f32 %v3448_v2, %v3432_v25  ;;  %v3337_v62 = vadd.f32 %v3321_v61, %v3282_v28  ;;  %3733 = vmatmul.bf16.vlgmr.msra.gmra.mxu3 %v3653_v0  ;;  %v10091_v2 = vld [vmem:[#allocation16_spill] sm:$0xff]  ;;  %v10092_v61 = vld [vmem:[#allocation179_spill] sm:$0xff]  ;;  %v3417_v25 = vmul.f32 %v10094_v21, %v10093_v45  ;;  %v3544_v28 = vmul.f32 %v3066_v57, %v10095_v56  ;;  %v10107_v56 = vld [vmem:[#allocation74_spill] sm:$0xff] }
 0x3e2   : > { %v3204_v10 = vmul.f32 %v10092_v61, %v10091_v2  ;;  %v3591_v52 = vadd.f32 %v3575_v16, %v3559_v40  ;;  %v3449_v50 = vmul.f32 %v10099_v11, %v10098_v46  ;;  %v10104_v40 = vld [vmem:[#allocation123_spill] sm:$0xff]  ;;  %v10105_v16 = vld [vmem:[#allocation224_spill] sm:$0xff]  ;;  %v3386_v34 = vmul.f32 %v10108_v7, %v10107_v56  ;;  %v10117_v56 = vld [vmem:[#allocation181_spill] sm:$0xff] }
 0x3e3   : > { %v3496_v26 = vadd.f32 %v3480_v39, %v3464_v43  ;;  %v3369_v27 = vadd.f32 %v3353_v38, %v3337_v62  ;;  %v10100_v39 = vld [vmem:[#allocation153_spill] sm:$0xff]  ;;  %v10106_v15 = vld [vmem:[#allocation155_spill] sm:$0xff] }
 0x3e4   : > { %v3607_v38 = vmul.f32 %v8358_v30, %v10100_v39  ;;  %v10101_v62 = vld [vmem:[#allocation149_spill] sm:$0xff]  ;;  %v3608_v23 = vmul.f32 %v8383_v19, %v10106_v15  ;;  %v10113_v19 = vld [vmem:[#allocation183_spill] sm:$0xff]  ;;  %v10148_v15 = vld [vmem:[#allocation188_spill] sm:$0xff] }
 0x3e5   : > { %v3401_v0 = vadd.f32 %v3385_v55, %v3369_v27  ;;  %v3071_v63 = vpop.f32.mrf.mxu3  ;;  %v3528_v29 = vadd.f32 %v3512_v37, %v3496_v26  ;;  %v3576_v61 = vmul.f32 %v8379_v47, %v10101_v62  ;;  %v10102_v55 = vld [vmem:[#allocation63_spill] sm:$0xff]  ;;  %v10103_v27 = vld [vmem:[#allocation178_spill] sm:$0xff]  ;;  %v3481_v26 = vmul.f32 %v10105_v16, %v10104_v40  ;;  %v10123_v40 = vld [vmem:[#allocation113_spill] sm:$0xff] }
 0x3e6   : > { %v3284_v43 = vpop.f32.mrf.mxu2  ;;  %v3354_v37 = vmul.f32 %v10103_v27, %v10102_v55  ;;  %v3623_v30 = vadd.f32 %v3607_v38, %v3591_v52  ;;  %v10112_v16 = vld [vmem:[#allocation26_spill] sm:$0xff]  ;;  %v10116_v55 = vld [vmem:[#allocation33_spill] sm:$0xff] }
 0x3e7   : > { %v3433_v21 = vadd.f32 %v3417_v25, %v3401_v0  ;;  %v3285_v2 = vadd.f32 %v3284_v43, %v3204_v10  ;;  %v3560_v57 = vadd.f32 %v3544_v28, %v3528_v29  ;;  %v8471_v47 = vpop.f32.mrf.mxu0  ;;  %v10109_v10 = vld [vmem:[#allocation225_spill] sm:$0xff]  ;;  %v10111_v25 = vld [vmem:[#allocation227_spill] sm:$0xff] }
 0x3e8   : > { %5480 = vmatmul.msk.f32.gmra.mxu0 %vm3215_vm3, %v10109_v10  ;;  %v10110_v29 = vld [vmem:[#allocation129_spill] sm:$0xff]  ;;  %v8481_v38 = vpop.f32.mrf.mxu1 }
 0x3e9   : > { %v3465_v11 = vadd.f32 %v3449_v50, %v3433_v21  ;;  %v3338_v45 = vadd.f32 %v3322_v49, %v3285_v2  ;;  %v3592_v46 = vadd.f32 %v3576_v61, %v3560_v57  ;;  %v3513_v28 = vmul.f32 %v10111_v25, %v10110_v29  ;;  %v10114_v2 = vld [vmem:[#allocation91_spill] sm:$0xff]  ;;  %v10126_v29 = vld [vmem:[#allocation184_spill] sm:$0xff] }
 0x3ea   : > { %v3205_v50 = vmul.f32 %v10113_v19, %v10112_v16  ;;  %v10115_v49 = vld [vmem:[#allocation231_spill] sm:$0xff]  ;;  %v3639_v21 = vmax.f32 %v3623_v30, 0.0  ;;  %v3323_v25 = vmul.f32 %v10117_v56, %v10116_v55  ;;  %v10124_v30 = vld [vmem:[#allocation229_spill] sm:$0xff] }
 0x3eb   : > { %v3497_v0 = vadd.f32 %v3481_v26, %v3465_v11  ;;  %v3370_v43 = vadd.f32 %v3354_v37, %v3338_v45  ;;  %v3624_v27 = vadd.f32 %v3608_v23, %v3592_v46  ;;  %v3418_v52 = vmul.f32 %v10115_v49, %v10114_v2  ;;  %v10118_v26 = vld [vmem:[#allocation94_spill] sm:$0xff]  ;;  %v10119_v45 = vld [vmem:[#allocation228_spill] sm:$0xff]  ;;  %v10120_v37 = vld [vmem:[#allocation151_spill] sm:$0xff] }
 0x3ec   : > { %v3450_v23 = vmul.f32 %v10119_v45, %v10118_v26  ;;  %v3545_v11 = vmul.f32 %v8427_v54, %v10120_v37  ;;  %v10121_v2 = vld [vmem:[#allocation67_spill] sm:$0xff]  ;;  %v10125_v55 = vld [vmem:[#allocation77_spill] sm:$0xff]  ;;  %v10127_v26 = vld [vmem:[#allocation230_spill] sm:$0xff] }
 0x3ed   : > { %v3402_v7 = vadd.f32 %v3386_v34, %v3370_v43  ;;  %v8483_v61 = vpop.f32.mrf.mxu3  ;;  %v3640_v57 = vmax.f32 %v3624_v27, 0.0  ;;  %v3529_v10 = vadd.f32 %v3513_v28, %v3497_v0  ;;  %v10122_v34 = vld [vmem:[#allocation182_spill] sm:$0xff]  ;;  %v3482_v27 = vmul.f32 %v10124_v30, %v10123_v40  ;;  %v10128_v54 = vld [vmem:[#allocation137_spill] sm:$0xff]  ;;  %v10132_v30 = vld [vmem:[#allocation187_spill] sm:$0xff] }
 0x3ee   : > { %v3287_v46 = vpop.f32.mrf.mxu2  ;;  %v3355_v43 = vmul.f32 %v10122_v34, %v10121_v2  ;;  %v3387_v45 = vmul.f32 %v10126_v29, %v10125_v55  ;;  %v10131_v34 = vld [vmem:[#allocation24_spill] sm:$0xff]  ;;  %v10147_v37 = vld [vmem:[#allocation14_spill] sm:$0xff] }
 0x3ef   : > { %v3434_v19 = vadd.f32 %v3418_v52, %v3402_v7  ;;  %v3288_v49 = vadd.f32 %v3287_v46, %v3205_v50  ;;  %v3654_v16 = vpack.c.bf16 %v3640_v57, %v3639_v21  ;;  %v3561_v56 = vadd.f32 %v3545_v11, %v3529_v10  ;;  %v10129_v52 = vld [vmem:[#allocation232_spill] sm:$0xff]  ;;  %v10130_v7 = vld [vmem:[#allocation157_spill] sm:$0xff]  ;;  %v8507_v11 = vpop.f32.mrf.mxu0 }
 0x3f0   : > { %5481 = vmatmul.msk.f32.gmra.mxu0 %vm3215_vm3, %v10127_v26  ;;  %v3514_v50 = vmul.f32 %v10129_v52, %v10128_v54  ;;  %v3577_v21 = vmul.f32 %v8407_v59, %v10130_v7  ;;  %v10135_v29 = vld [vmem:[#allocation156_spill] sm:$0xff]  ;;  %v10136_v52 = vld [vmem:[#allocation46_spill] sm:$0xff]  ;;  %v10137_v54 = vld [vmem:[#allocation185_spill] sm:$0xff]  ;;  %v3388_v62 = vmul.f32 %v10148_v15, %v10147_v37 }
 0x3f1   : > { %v3466_v28 = vadd.f32 %v3450_v23, %v3434_v19  ;;  %v3339_v0 = vadd.f32 %v3323_v25, %v3288_v49  ;;  %3738 = vmatmul.bf16.gmra.mxu3 %v3654_v16  ;;  %v3206_v23 = vmul.f32 %v10132_v30, %v10131_v34  ;;  %v10133_v25 = vld [vmem:[#allocation81_spill] sm:$0xff]  ;;  %v10134_v16 = vld [vmem:[#allocation236_spill] sm:$0xff]  ;;  %v3546_v19 = vmul.f32 %v3071_v63, %v10135_v29  ;;  %v10138_v59 = vld [vmem:[#allocation107_spill] sm:$0xff]  ;;  %v8516_v30 = vpop.f32.mrf.mxu1 }
 0x3f2   : > { %v3419_v10 = vmul.f32 %v10134_v16, %v10133_v25  ;;  %v3593_v55 = vadd.f32 %v3577_v21, %v3561_v56  ;;  %v3324_v40 = vmul.f32 %v10137_v54, %v10136_v52  ;;  %v10141_v34 = vld [vmem:[#allocation154_spill] sm:$0xff]  ;;  %v10158_v37 = vld [vmem:[#allocation100_spill] sm:$0xff] }
 0x3f3   : > { %v3498_v57 = vadd.f32 %v3482_v27, %v3466_v28  ;;  %v3371_v46 = vadd.f32 %v3355_v43, %v3339_v0  ;;  %v10139_v27 = vld [vmem:[#allocation233_spill] sm:$0xff]  ;;  %v10140_v28 = vld [vmem:[#allocation159_spill] sm:$0xff]  ;;  %v3578_v25 = vmul.f32 %v8436_v51, %v10141_v34  ;;  %v10143_v56 = vld [vmem:[#allocation186_spill] sm:$0xff] }
 0x3f4   : > { %v3451_v43 = vmul.f32 %v10139_v27, %v10138_v59  ;;  %v3609_v0 = vmul.f32 %v8415_v17, %v10140_v28  ;;  %v10145_v54 = vld [vmem:[#allocation234_spill] sm:$0xff]  ;;  %v10149_v51 = vld [vmem:[#allocation235_spill] sm:$0xff] }
 0x3f5   : > { %v3403_v49 = vadd.f32 %v3387_v45, %v3371_v46  ;;  %v3076_v26 = vpop.f32.mrf.mxu3  ;;  %v3530_v2 = vadd.f32 %v3514_v50, %v3498_v57  ;;  %v10142_v50 = vld [vmem:[#allocation57_spill] sm:$0xff]  ;;  %v10146_v29 = vld [vmem:[#allocation158_spill] sm:$0xff] }
 0x3f6   : > { %v3290_v16 = vpop.f32.mrf.mxu2  ;;  %v3356_v21 = vmul.f32 %v10143_v56, %v10142_v50  ;;  %v10144_v57 = vld [vmem:[#allocation109_spill] sm:$0xff]  ;;  %v3610_v27 = vmul.f32 %v8442_v22, %v10146_v29  ;;  %v3625_v28 = vadd.f32 %v3609_v0, %v3593_v55  ;;  %v10154_v22 = vld [vmem:[#allocation82_spill] sm:$0xff] }
 0x3f7   : > { %v3435_v63 = vadd.f32 %v3419_v10, %v3403_v49  ;;  %v3291_v45 = vadd.f32 %v3290_v16, %v3206_v23  ;;  %v3562_v46 = vadd.f32 %v3546_v19, %v3530_v2  ;;  %v3483_v52 = vmul.f32 %v10145_v54, %v10144_v57  ;;  %v10150_v2 = vld [vmem:[#allocation131_spill] sm:$0xff]  ;;  %v10151_v23 = vld [vmem:[#allocation237_spill] sm:$0xff]  ;;  %v10167_v57 = vld [vmem:[#allocation240_spill] sm:$0xff] }
 0x3f8   : > { %5482 = vmatmul.msk.f32.gmra.mxu0 %vm3215_vm3, %v10149_v51  ;;  %v3515_v10 = vmul.f32 %v10151_v23, %v10150_v2  ;;  %v10152_v56 = vld [vmem:[#allocation17_spill] sm:$0xff]  ;;  %v10153_v54 = vld [vmem:[#allocation191_spill] sm:$0xff]  ;;  %v3641_v0 = vmax.f32 %v3625_v28, 0.0  ;;  %v10159_v23 = vld [vmem:[#allocation238_spill] sm:$0xff] }
 0x3f9   : > { %v3467_v59 = vadd.f32 %v3451_v43, %v3435_v63  ;;  %v3340_v17 = vadd.f32 %v3324_v40, %v3291_v45  ;;  %v3594_v7 = vadd.f32 %v3578_v25, %v3562_v46  ;;  %v3207_v50 = vmul.f32 %v10153_v54, %v10152_v56  ;;  %v10155_v43 = vld [vmem:[#allocation241_spill] sm:$0xff] }
 0x3fa   : > { %v3420_v40 = vmul.f32 %v10155_v43, %v10154_v22  ;;  %v10156_v45 = vld [vmem:[#allocation49_spill] sm:$0xff]  ;;  %v10162_v43 = vld [vmem:[#allocation190_spill] sm:$0xff] }
 0x3fb   : > { %v3499_v19 = vadd.f32 %v3483_v52, %v3467_v59  ;;  %v3372_v49 = vadd.f32 %v3356_v21, %v3340_v17  ;;  %v3626_v16 = vadd.f32 %v3610_v27, %v3594_v7  ;;  %v10157_v46 = vld [vmem:[#allocation189_spill] sm:$0xff]  ;;  %v3452_v52 = vmul.f32 %v10159_v23, %v10158_v37  ;;  %v8542_v59 = vpop.f32.mrf.mxu0  ;;  %v10160_v21 = vld [vmem:[#allocation160_spill] sm:$0xff] }
 0x3fc   : > { %v3325_v51 = vmul.f32 %v10157_v46, %v10156_v45  ;;  %v3547_v27 = vmul.f32 %v8483_v61, %v10160_v21  ;;  %v10165_v22 = vld [vmem:[#allocation9_spill] sm:$0xff]  ;;  %v10166_v37 = vld [vmem:[#allocation192_spill] sm:$0xff]  ;;  %v10168_v61 = vld [vmem:[#allocation139_spill] sm:$0xff] }
 0x3fd   : > { %v3404_v25 = vadd.f32 %v3388_v62, %v3372_v49  ;;  %v8536_v55 = vpop.f32.mrf.mxu3  ;;  %v3642_v15 = vmax.f32 %v3626_v16, 0.0  ;;  %v3531_v63 = vadd.f32 %v3515_v10, %v3499_v19  ;;  %v10161_v49 = vld [vmem:[#allocation66_spill] sm:$0xff]  ;;  %v8548_v16 = vpop.f32.mrf.mxu1  ;;  %v10163_v10 = vld [vmem:[#allocation125_spill] sm:$0xff]  ;;  %v10164_v19 = vld [vmem:[#allocation239_spill] sm:$0xff]  ;;  %v3389_v2 = vmul.f32 %v10166_v37, %v10165_v22 }
 0x3fe   : > { %v3293_v7 = vpop.f32.mrf.mxu2  ;;  %v3357_v28 = vmul.f32 %v10162_v43, %v10161_v49  ;;  %v3484_v46 = vmul.f32 %v10164_v19, %v10163_v10  ;;  %v10171_v43 = vld [vmem:[#allocation30_spill] sm:$0xff]  ;;  %v10172_v19 = vld [vmem:[#allocation195_spill] sm:$0xff]  ;;  %v10177_v22 = vld [vmem:[#allocation193_spill] sm:$0xff] }
 0x3ff   : > { %v3436_v17 = vadd.f32 %v3420_v40, %v3404_v25  ;;  %v3294_v54 = vadd.f32 %v3293_v7, %v3207_v50  ;;  %v3655_v62 = vpack.c.bf16 %v3642_v15, %v3641_v0  ;;  %v3563_v23 = vadd.f32 %v3547_v27, %v3531_v63  ;;  %v10169_v50 = vld [vmem:[#allocation242_spill] sm:$0xff]  ;;  %v10170_v25 = vld [vmem:[#allocation161_spill] sm:$0xff]  ;;  %v10175_v27 = vld [vmem:[#allocation163_spill] sm:$0xff] }
 0x400   : > { %5483 = vmatmul.msk.f32.gmra.mxu0 %vm3215_vm3, %v10167_v57  ;;  %v3516_v40 = vmul.f32 %v10169_v50, %v10168_v61  ;;  %v3579_v0 = vmul.f32 %v8471_v47, %v10170_v25  ;;  %v10176_v57 = vld [vmem:[#allocation36_spill] sm:$0xff]  ;;  %v10178_v50 = vld [vmem:[#allocation98_spill] sm:$0xff]  ;;  %v10179_v61 = vld [vmem:[#allocation243_spill] sm:$0xff] }
 0x401   : > { %v3468_v56 = vadd.f32 %v3452_v52, %v3436_v17  ;;  %v3341_v45 = vadd.f32 %v3325_v51, %v3294_v54  ;;  %3743 = vmatmul.bf16.gmra.mxu3 %v3655_v62  ;;  %v3208_v52 = vmul.f32 %v10172_v19, %v10171_v43  ;;  %v10173_v51 = vld [vmem:[#allocation60_spill] sm:$0xff]  ;;  %v10174_v17 = vld [vmem:[#allocation246_spill] sm:$0xff]  ;;  %v3548_v54 = vmul.f32 %v3076_v26, %v10175_v27  ;;  %v10180_v47 = vld [vmem:[#allocation165_spill] sm:$0xff] }
 0x402   : > { %v3421_v63 = vmul.f32 %v10174_v17, %v10173_v51  ;;  %v3595_v49 = vadd.f32 %v3579_v0, %v3563_v23  ;;  %v3326_v10 = vmul.f32 %v10177_v22, %v10176_v57  ;;  %v3453_v21 = vmul.f32 %v10179_v61, %v10178_v50  ;;  %v10184_v0 = vld [vmem:[#allocation116_spill] sm:$0xff] }
 0x403   : > { %v3500_v15 = vadd.f32 %v3484_v46, %v3468_v56  ;;  %v3373_v7 = vadd.f32 %v3357_v28, %v3341_v45  ;;  %v3611_v56 = vmul.f32 %v8481_v38, %v10180_v47  ;;  %v10181_v46 = vld [vmem:[#allocation162_spill] sm:$0xff]  ;;  %v3130_v57 = vpop.f32.mrf.mxu0  ;;  %v10187_v47 = vld [vmem:[#allocation13_spill] sm:$0xff]  ;;  %v10188_v25 = vld [vmem:[#allocation196_spill] sm:$0xff] }
 0x404   : > { %v3580_v19 = vmul.f32 %v8507_v11, %v10181_v46  ;;  %v3390_v11 = vmul.f32 %v10188_v25, %v10187_v47  ;;  %v10199_v46 = vld [vmem:[#allocation248_spill] sm:$0xff] }
 0x405   : > { %v3405_v37 = vadd.f32 %v3389_v2, %v3373_v7  ;;  %v3532_v62 = vadd.f32 %v3516_v40, %v3500_v15  ;;  %v3081_v45 = vpop.f32.mrf.mxu3  ;;  %v10182_v2 = vld [vmem:[#allocation70_spill] sm:$0xff]  ;;  %v10185_v15 = vld [vmem:[#allocation244_spill] sm:$0xff]  ;;  %v3627_v27 = vadd.f32 %v3611_v56, %v3595_v49 }
 0x406   : > { %v3296_v28 = vpop.f32.mrf.mxu2  ;;  %v10183_v40 = vld [vmem:[#allocation194_spill] sm:$0xff]  ;;  %v3485_v22 = vmul.f32 %v10185_v15, %v10184_v0  ;;  %v10186_v7 = vld [vmem:[#allocation164_spill] sm:$0xff] }
 0x407   : > { %v3437_v17 = vadd.f32 %v3421_v63, %v3405_v37  ;;  %v3297_v43 = vadd.f32 %v3296_v28, %v3208_v52  ;;  %v3564_v26 = vadd.f32 %v3548_v54, %v3532_v62  ;;  %v3358_v23 = vmul.f32 %v10183_v40, %v10182_v2  ;;  %v3179_v63 = vpop.f32.mrf.mxu1  ;;  %v10189_v52 = vld [vmem:[#allocation245_spill] sm:$0xff]  ;;  %v10191_v37 = vld [vmem:[#allocation247_spill] sm:$0xff]  ;;  %v10192_v2 = vld [vmem:[#allocation28_spill] sm:$0xff] }
 0x408   : > { %v3612_v61 = vmul.f32 %v8516_v30, %v10186_v7  ;;  %5484 = vmatmul.msk.f32.gmra.mxu0 %vm3215_vm3, %v10189_v52  ;;  %v10190_v54 = vld [vmem:[#allocation141_spill] sm:$0xff]  ;;  %v10193_v30 = vld [vmem:[#allocation199_spill] sm:$0xff]  ;;  %v3643_v56 = vmax.f32 %v3627_v27, 0.0  ;;  %v10198_v52 = vld [vmem:[#allocation110_spill] sm:$0xff] }
 0x409   : > { %v3469_v50 = vadd.f32 %v3453_v21, %v3437_v17  ;;  %v3342_v38 = vadd.f32 %v3326_v10, %v3297_v43  ;;  %v3596_v51 = vadd.f32 %v3580_v19, %v3564_v26  ;;  %v3517_v62 = vmul.f32 %v10191_v37, %v10190_v54  ;;  %v10194_v21 = vld [vmem:[#allocation85_spill] sm:$0xff]  ;;  %v10195_v10 = vld [vmem:[#allocation251_spill] sm:$0xff]  ;;  %v10196_v17 = vld [vmem:[#allocation50_spill] sm:$0xff] }
 0x40a   : > { %v3209_v0 = vmul.f32 %v10193_v30, %v10192_v2  ;;  %v3422_v43 = vmul.f32 %v10195_v10, %v10194_v21  ;;  %v10197_v26 = vld [vmem:[#allocation197_spill] sm:$0xff]  ;;  %v3454_v7 = vmul.f32 %v10199_v46, %v10198_v52  ;;  %v10202_v30 = vld [vmem:[#allocation198_spill] sm:$0xff]  ;;  %v10205_v2 = vld [vmem:[#allocation79_spill] sm:$0xff] }
 0x40b   : > { %v3501_v28 = vadd.f32 %v3485_v22, %v3469_v50  ;;  %v3374_v40 = vadd.f32 %v3358_v23, %v3342_v38  ;;  %v3628_v15 = vadd.f32 %v3612_v61, %v3596_v51  ;;  %v3327_v47 = vmul.f32 %v10197_v26, %v10196_v17  ;;  %v10200_v50 = vld [vmem:[#allocation168_spill] sm:$0xff]  ;;  %v10201_v38 = vld [vmem:[#allocation61_spill] sm:$0xff]  ;;  %v10203_v27 = vld [vmem:[#allocation114_spill] sm:$0xff]  ;;  %v3133_v21 = vpop.f32.mrf.mxu0 }
 0x40c   : > { %v3549_v51 = vmul.f32 %v8536_v55, %v10200_v50  ;;  %v3359_v10 = vmul.f32 %v10202_v30, %v10201_v38  ;;  %v10206_v46 = vld [vmem:[#allocation200_spill] sm:$0xff]  ;;  %v10207_v52 = vld [vmem:[#allocation250_spill] sm:$0xff]  ;;  %v10211_v30 = vld [vmem:[#allocation19_spill] sm:$0xff] }
 0x40d   : > { %v3406_v49 = vadd.f32 %v3390_v11, %v3374_v40  ;;  %v3644_v19 = vmax.f32 %v3628_v15, 0.0  ;;  %v3533_v25 = vadd.f32 %v3517_v62, %v3501_v28  ;;  %v3084_v11 = vpop.f32.mrf.mxu3  ;;  %v10204_v40 = vld [vmem:[#allocation249_spill] sm:$0xff]  ;;  %v3391_v17 = vmul.f32 %v10206_v46, %v10205_v2  ;;  %v10208_v55 = vld [vmem:[#allocation134_spill] sm:$0xff]  ;;  %v10216_v38 = vld [vmem:[#allocation55_spill] sm:$0xff] }
 0x40e   : > { %v3299_v37 = vpop.f32.mrf.mxu2  ;;  %v3486_v62 = vmul.f32 %v10204_v40, %v10203_v27  ;;  %v10218_v27 = vld [vmem:[#allocation52_spill] sm:$0xff] }
 0x40f   : > { %v3438_v23 = vadd.f32 %v3422_v43, %v3406_v49  ;;  %v3300_v22 = vadd.f32 %v3299_v37, %v3209_v0  ;;  %v3656_v61 = vpack.c.bf16 %v3644_v19, %v3643_v56  ;;  %v3565_v26 = vadd.f32 %v3549_v51, %v3533_v25  ;;  %v10209_v0 = vld [vmem:[#allocation252_spill] sm:$0xff]  ;;  %v10210_v49 = vld [vmem:[#allocation167_spill] sm:$0xff] }
 0x410   : > { %5485 = vmatmul.msk.f32.gmra.mxu0 %vm3215_vm3, %v10207_v52  ;;  %v3518_v43 = vmul.f32 %v10209_v0, %v10208_v55  ;;  %v3581_v56 = vmul.f32 %v8542_v59, %v10210_v49  ;;  %v10214_v25 = vld [vmem:[#allocation256_spill] sm:$0xff]  ;;  %v10217_v0 = vld [vmem:[#allocation201_spill] sm:$0xff] }
 0x411   : > { %v3470_v28 = vadd.f32 %v3454_v7, %v3438_v23  ;;  %v3343_v15 = vadd.f32 %v3327_v47, %v3300_v22  ;;  %3748 = vmatmul.bf16.gmra.mxu3 %v3656_v61  ;;  %v10212_v7 = vld [vmem:[#allocation203_spill] sm:$0xff]  ;;  %v8611_v22 = vpop.f32.mrf.mxu1  ;;  %v10215_v61 = vld [vmem:[#allocation166_spill] sm:$0xff]  ;;  %v3328_v55 = vmul.f32 %v10217_v0, %v10216_v38  ;;  %v10219_v59 = vld [vmem:[#allocation253_spill] sm:$0xff] }
 0x412   : > { %v3210_v47 = vmul.f32 %v10212_v7, %v10211_v30  ;;  %v10213_v23 = vld [vmem:[#allocation87_spill] sm:$0xff]  ;;  %v3550_v40 = vmul.f32 %v3081_v45, %v10215_v61  ;;  %v3597_v2 = vadd.f32 %v3581_v56, %v3565_v26  ;;  %v10222_v49 = vld [vmem:[#allocation69_spill] sm:$0xff]  ;;  %v10223_v45 = vld [vmem:[#allocation202_spill] sm:$0xff] }
 0x413   : > { %v3502_v19 = vadd.f32 %v3486_v62, %v3470_v28  ;;  %v3375_v37 = vadd.f32 %v3359_v10, %v3343_v15  ;;  %v3423_v51 = vmul.f32 %v10214_v25, %v10213_v23  ;;  %v3455_v62 = vmul.f32 %v10219_v59, %v10218_v27  ;;  %v10220_v10 = vld [vmem:[#allocation169_spill] sm:$0xff]  ;;  %v10221_v7 = vld [vmem:[#allocation171_spill] sm:$0xff]  ;;  %v10225_v26 = vld [vmem:[#allocation254_spill] sm:$0xff] }
 0x414   : > { %v3613_v28 = vmul.f32 %v8548_v16, %v10220_v10  ;;  %v3582_v30 = vmul.f32 %v3130_v57, %v10221_v7  ;;  %v10227_v61 = vld [vmem:[#allocation11_spill] sm:$0xff]  ;;  %v10228_v16 = vld [vmem:[#allocation204_spill] sm:$0xff] }
 0x415   : > { %v3407_v46 = vadd.f32 %v3391_v17, %v3375_v37  ;;  %v3534_v52 = vadd.f32 %v3518_v43, %v3502_v19  ;;  %v3360_v17 = vmul.f32 %v10223_v45, %v10222_v49  ;;  %v10224_v43 = vld [vmem:[#allocation127_spill] sm:$0xff]  ;;  %v10226_v19 = vld [vmem:[#allocation170_spill] sm:$0xff]  ;;  %v3392_v10 = vmul.f32 %v10228_v16, %v10227_v61  ;;  %v3086_v54 = vpop.f32.mrf.mxu3  ;;  %v10236_v16 = vld [vmem:[#allocation41_spill] sm:$0xff] }
 0x416   : > { %v3302_v15 = vpop.f32.mrf.mxu2  ;;  %v3487_v56 = vmul.f32 %v10225_v26, %v10224_v43  ;;  %v3614_v37 = vmul.f32 %v3179_v63, %v10226_v19  ;;  %v3629_v27 = vadd.f32 %v3613_v28, %v3597_v2  ;;  %v10229_v57 = vld [vmem:[#allocation255_spill] sm:$0xff]  ;;  %v10232_v45 = vld [vmem:[#allocation34_spill] sm:$0xff]  ;;  %v3135_v2 = vpop.f32.mrf.mxu0  ;;  %v10237_v49 = vld [vmem:[#allocation205_spill] sm:$0xff] }
 0x417   : > { %v3439_v25 = vadd.f32 %v3423_v51, %v3407_v46  ;;  %v3303_v23 = vadd.f32 %v3302_v15, %v3210_v47  ;;  %v3566_v50 = vadd.f32 %v3550_v40, %v3534_v52  ;;  %v10230_v47 = vld [vmem:[#allocation143_spill] sm:$0xff]  ;;  %v10231_v51 = vld [vmem:[#allocation257_spill] sm:$0xff]  ;;  %v10239_v43 = vld [vmem:[#allocation258_spill] sm:$0xff] }
 0x418   : > { %5486 = vmatmul.msk.f32.gmra.mxu0 %vm3215_vm3, %v10229_v57  ;;  %v3519_v40 = vmul.f32 %v10231_v51, %v10230_v47  ;;  %v10233_v26 = vld [vmem:[#allocation207_spill] sm:$0xff]  ;;  %v3329_v57 = vmul.f32 %v10237_v49, %v10236_v16  ;;  %v10238_v61 = vld [vmem:[#allocation101_spill] sm:$0xff]  ;;  %v10246_v16 = vld [vmem:[#allocation208_spill] sm:$0xff] }
 0x419   : > { %v3471_v0 = vadd.f32 %v3455_v62, %v3439_v25  ;;  %v3344_v38 = vadd.f32 %v3328_v55, %v3303_v23  ;;  %v3598_v59 = vadd.f32 %v3582_v30, %v3566_v50  ;;  %v3211_v63 = vmul.f32 %v10233_v26, %v10232_v45  ;;  %v10234_v62 = vld [vmem:[#allocation96_spill] sm:$0xff]  ;;  %v10235_v55 = vld [vmem:[#allocation261_spill] sm:$0xff] }
 0x41a   : > { %v3424_v50 = vmul.f32 %v10235_v55, %v10234_v62  ;;  %v3645_v23 = vmax.f32 %v3629_v27, 0.0  ;;  %v3456_v51 = vmul.f32 %v10239_v43, %v10238_v61  ;;  %v10241_v45 = vld [vmem:[#allocation73_spill] sm:$0xff]  ;;  %v10242_v55 = vld [vmem:[#allocation206_spill] sm:$0xff]  ;;  %v10244_v27 = vld [vmem:[#allocation259_spill] sm:$0xff] }
 0x41b   : > { %v3503_v46 = vadd.f32 %v3487_v56, %v3471_v0  ;;  %v3376_v52 = vadd.f32 %v3360_v17, %v3344_v38  ;;  %v3630_v15 = vadd.f32 %v3614_v37, %v3598_v59  ;;  %v3184_v56 = vpop.f32.mrf.mxu1  ;;  %v10240_v17 = vld [vmem:[#allocation173_spill] sm:$0xff]  ;;  %v3361_v62 = vmul.f32 %v10242_v55, %v10241_v45  ;;  %v10247_v61 = vld [vmem:[#allocation260_spill] sm:$0xff]  ;;  %v10252_v45 = vld [vmem:[#allocation211_spill] sm:$0xff] }
 0x41c   : > { %v3551_v37 = vmul.f32 %v3084_v11, %v10240_v17  ;;  %v10248_v11 = vld [vmem:[#allocation145_spill] sm:$0xff]  ;;  %v10251_v55 = vld [vmem:[#allocation32_spill] sm:$0xff] }
 0x41d   : > { %v3408_v30 = vadd.f32 %v3392_v10, %v3376_v52  ;;  %v3646_v28 = vmax.f32 %v3630_v15, 0.0  ;;  %v3535_v25 = vadd.f32 %v3519_v40, %v3503_v46  ;;  %v10243_v10 = vld [vmem:[#allocation118_spill] sm:$0xff]  ;;  %v10245_v15 = vld [vmem:[#allocation27_spill] sm:$0xff]  ;;  %v10268_v17 = vld [vmem:[#allocation212_spill] sm:$0xff] }
 0x41e   : > { %v3305_v38 = vpop.f32.mrf.mxu2  ;;  %v3488_v52 = vmul.f32 %v10244_v27, %v10243_v10  ;;  %v3393_v43 = vmul.f32 %v10246_v16, %v10245_v15  ;;  %v3212_v27 = vmul.f32 %v10252_v45, %v10251_v55  ;;  %v10257_v10 = vld [vmem:[#allocation209_spill] sm:$0xff] }
 0x41f   : > { %v3440_v0 = vadd.f32 %v3424_v50, %v3408_v30  ;;  %v3306_v59 = vadd.f32 %v3305_v38, %v3211_v63  ;;  %v3657_v26 = vpack.c.bf16 %v3646_v28, %v3645_v23  ;;  %v3567_v49 = vadd.f32 %v3551_v37, %v3535_v25  ;;  %v10249_v50 = vld [vmem:[#allocation262_spill] sm:$0xff]  ;;  %v10250_v30 = vld [vmem:[#allocation83_spill] sm:$0xff]  ;;  %v3089_v25 = vpop.f32.mrf.mxu3  ;;  %v10255_v37 = vld [vmem:[#allocation172_spill] sm:$0xff] }
 0x420   : > { %5487 = vmatmul.msk.f32.gmra.mxu0 %vm3215_vm3, %v10247_v61  ;;  %v3520_v63 = vmul.f32 %v10249_v50, %v10248_v11  ;;  %v3583_v23 = vmul.f32 %v3133_v21, %v10250_v30  ;;  %v10256_v61 = vld [vmem:[#allocation56_spill] sm:$0xff]  ;;  %v10259_v11 = vld [vmem:[#allocation263_spill] sm:$0xff] }
 0x421   : > { %v3472_v40 = vadd.f32 %v3456_v51, %v3440_v0  ;;  %v3345_v46 = vadd.f32 %v3329_v57, %v3306_v59  ;;  %3753 = vmatmul.bf16.gmra.mxu3 %v3657_v26  ;;  %v10253_v51 = vld [vmem:[#allocation88_spill] sm:$0xff]  ;;  %v10254_v57 = vld [vmem:[#allocation266_spill] sm:$0xff]  ;;  %v3552_v59 = vmul.f32 %v3086_v54, %v10255_v37  ;;  %v3330_v47 = vmul.f32 %v10257_v10, %v10256_v61 }
 0x422   : > { %v3425_v0 = vmul.f32 %v10254_v57, %v10253_v51  ;;  %v3599_v15 = vadd.f32 %v3583_v23, %v3567_v49  ;;  %v10258_v50 = vld [vmem:[#allocation112_spill] sm:$0xff]  ;;  %v10264_v49 = vld [vmem:[#allocation119_spill] sm:$0xff] }
 0x423   : > { %v3504_v28 = vadd.f32 %v3488_v52, %v3472_v40  ;;  %v3377_v38 = vadd.f32 %v3361_v62, %v3345_v46  ;;  %v3457_v21 = vmul.f32 %v10259_v11, %v10258_v50  ;;  %v10260_v52 = vld [vmem:[#allocation117_spill] sm:$0xff]  ;;  %v3138_v40 = vpop.f32.mrf.mxu0  ;;  %v10261_v46 = vld [vmem:[#allocation174_spill] sm:$0xff]  ;;  %v10262_v54 = vld [vmem:[#allocation64_spill] sm:$0xff]  ;;  %v3187_v61 = vpop.f32.mrf.mxu1 }
 0x424   : > { %v3615_v62 = vmul.f32 %v8611_v22, %v10260_v52  ;;  %v3584_v55 = vmul.f32 %v3135_v2, %v10261_v46  ;;  %v10265_v23 = vld [vmem:[#allocation264_spill] sm:$0xff]  ;;  %v10269_v2 = vld [vmem:[#allocation265_spill] sm:$0xff] }
 0x425   : > { %v3409_v16 = vadd.f32 %v3393_v43, %v3377_v38  ;;  %v3536_v26 = vadd.f32 %v3520_v63, %v3504_v28  ;;  %v10263_v43 = vld [vmem:[#allocation210_spill] sm:$0xff]  ;;  %v3489_v28 = vmul.f32 %v10265_v23, %v10264_v49  ;;  %v10266_v10 = vld [vmem:[#allocation128_spill] sm:$0xff]  ;;  %v10273_v23 = vld [vmem:[#allocation215_spill] sm:$0xff] }
 0x426   : > { %v3308_v45 = vpop.f32.mrf.mxu2  ;;  %v3362_v63 = vmul.f32 %v10263_v43, %v10262_v54  ;;  %v3616_v38 = vmul.f32 %v3184_v56, %v10266_v10  ;;  %v3631_v22 = vadd.f32 %v3615_v62, %v3599_v15  ;;  %v10267_v52 = vld [vmem:[#allocation40_spill] sm:$0xff]  ;;  %v10272_v43 = vld [vmem:[#allocation22_spill] sm:$0xff]  ;;  %v10277_v62 = vld [vmem:[#allocation213_spill] sm:$0xff] }
 0x427   : > { %v3441_v57 = vadd.f32 %v3425_v0, %v3409_v16  ;;  %v3309_v51 = vadd.f32 %v3308_v45, %v3212_v27  ;;  %v3568_v30 = vadd.f32 %v3552_v59, %v3536_v26  ;;  %v3394_v19 = vmul.f32 %v10268_v17, %v10267_v52  ;;  %v10270_v27 = vld [vmem:[#allocation138_spill] sm:$0xff]  ;;  %v10271_v0 = vld [vmem:[#allocation267_spill] sm:$0xff]  ;;  %v10279_v52 = vld [vmem:[#allocation268_spill] sm:$0xff] }
 0x428   : > { %5488 = vmatmul.msk.f32.gmra.mxu0 %vm3215_vm3, %v10269_v2  ;;  %v3521_v59 = vmul.f32 %v10271_v0, %v10270_v27  ;;  %v3213_v56 = vmul.f32 %v10273_v23, %v10272_v43  ;;  %v10274_v54 = vld [vmem:[#allocation90_spill] sm:$0xff]  ;;  %v3647_v15 = vmax.f32 %v3631_v22, 0.0  ;;  %v10278_v2 = vld [vmem:[#allocation104_spill] sm:$0xff]  ;;  %v3091_v0 = vpop.f32.mrf.mxu3 }
 0x429   : > { %v3473_v11 = vadd.f32 %v3457_v21, %v3441_v57  ;;  %v3346_v50 = vadd.f32 %v3330_v47, %v3309_v51  ;;  %v3600_v37 = vadd.f32 %v3584_v55, %v3568_v30  ;;  %v10275_v21 = vld [vmem:[#allocation271_spill] sm:$0xff]  ;;  %v10276_v17 = vld [vmem:[#allocation58_spill] sm:$0xff]  ;;  %v3458_v49 = vmul.f32 %v10279_v52, %v10278_v2  ;;  %v10281_v23 = vld [vmem:[#allocation72_spill] sm:$0xff] }
 0x42a   : > { %v3426_v47 = vmul.f32 %v10275_v21, %v10274_v54  ;;  %v3331_v57 = vmul.f32 %v10277_v62, %v10276_v17  ;;  %v10282_v43 = vld [vmem:[#allocation214_spill] sm:$0xff]  ;;  %v10286_v52 = vld [vmem:[#allocation216_spill] sm:$0xff] }
 0x42b   : > { %v3505_v16 = vadd.f32 %v3489_v28, %v3473_v11  ;;  %v3378_v26 = vadd.f32 %v3362_v63, %v3346_v50  ;;  %v3632_v45 = vadd.f32 %v3616_v38, %v3600_v37  ;;  %v10280_v50 = vld [vmem:[#allocation78_spill] sm:$0xff]  ;;  %v3363_v21 = vmul.f32 %v10282_v43, %v10281_v23  ;;  %v3189_v2 = vpop.f32.mrf.mxu1 }
 0x42c   : > { %v3553_v37 = vmul.f32 %v3089_v25, %v10280_v50  ;;  %v10283_v22 = vld [vmem:[#allocation130_spill] sm:$0xff]  ;;  %v10288_v25 = vld [vmem:[#allocation51_spill] sm:$0xff] }
 0x42d   : > { %v3410_v30 = vadd.f32 %v3394_v19, %v3378_v26  ;;  %v3648_v55 = vmax.f32 %v3632_v45, 0.0  ;;  %v3537_v51 = vadd.f32 %v3521_v59, %v3505_v16  ;;  %v3140_v19 = vpop.f32.mrf.mxu0  ;;  %v10284_v26 = vld [vmem:[#allocation269_spill] sm:$0xff]  ;;  %v10285_v17 = vld [vmem:[#allocation54_spill] sm:$0xff]  ;;  %v10298_v50 = vld [vmem:[#allocation103_spill] sm:$0xff] }
 0x42e   : > { %v3311_v28 = vpop.f32.mrf.mxu2  ;;  %v3490_v59 = vmul.f32 %v10284_v26, %v10283_v22  ;;  %v3395_v54 = vmul.f32 %v10286_v52, %v10285_v17  ;;  %v10287_v27 = vld [vmem:[#allocation270_spill] sm:$0xff]  ;;  %v10292_v26 = vld [vmem:[#allocation219_spill] sm:$0xff]  ;;  %v10296_v17 = vld [vmem:[#allocation44_spill] sm:$0xff] }
 0x42f   : > { %v3442_v63 = vadd.f32 %v3426_v47, %v3410_v30  ;;  %v3312_v38 = vadd.f32 %v3311_v28, %v3213_v56  ;;  %v3658_v11 = vpack.c.bf16 %v3648_v55, %v3647_v15  ;;  %v3569_v62 = vadd.f32 %v3553_v37, %v3537_v51  ;;  %v10289_v56 = vld [vmem:[#allocation272_spill] sm:$0xff]  ;;  %v10290_v30 = vld [vmem:[#allocation175_spill] sm:$0xff]  ;;  %v10291_v28 = vld [vmem:[#allocation38_spill] sm:$0xff] }
 0x430   : > { %5489 = vmatmul.msk.f32.gmra.mxu0 %vm3215_vm3, %v10287_v27  ;;  %v3522_v47 = vmul.f32 %v10289_v56, %v10288_v25  ;;  %v3585_v43 = vmul.f32 %v3138_v40, %v10290_v30  ;;  %v10295_v37 = vld [vmem:[#allocation95_spill] sm:$0xff]  ;;  %v10297_v27 = vld [vmem:[#allocation217_spill] sm:$0xff] }
 0x431   : > { %v3474_v16 = vadd.f32 %v3458_v49, %v3442_v63  ;;  %v3347_v45 = vadd.f32 %v3331_v57, %v3312_v38  ;;  %3758 = vmatmul.bf16.gmra.mxu3 %v3658_v11  ;;  %v3214_v49 = vmul.f32 %v10292_v26, %v10291_v28  ;;  %v10293_v57 = vld [vmem:[#allocation99_spill] sm:$0xff]  ;;  %v10294_v63 = vld [vmem:[#allocation276_spill] sm:$0xff]  ;;  %v3554_v38 = vmul.f32 %v3091_v0, %v10295_v37  ;;  %v10299_v56 = vld [vmem:[#allocation273_spill] sm:$0xff] }
 0x432   : > { %v3427_v51 = vmul.f32 %v10294_v63, %v10293_v57  ;;  %v3601_v23 = vadd.f32 %v3585_v43, %v3569_v62  ;;  %v3332_v22 = vmul.f32 %v10297_v27, %v10296_v17  ;;  %v3459_v25 = vmul.f32 %v10299_v56, %v10298_v50  ;;  %v10300_v40 = vld [vmem:[#allocation35_spill] sm:$0xff]  ;;  %v10302_v63 = vld [vmem:[#allocation76_spill] sm:$0xff]  ;;  %v10303_v57 = vld [vmem:[#allocation218_spill] sm:$0xff] }
 0x433   : > { %v3506_v15 = vadd.f32 %v3490_v59, %v3474_v16  ;;  %v3379_v55 = vadd.f32 %v3363_v21, %v3347_v45  ;;  %v3617_v59 = vmul.f32 %v3187_v61, %v10300_v40  ;;  %v10301_v16 = vld [vmem:[#allocation124_spill] sm:$0xff]  ;;  %v3364_v0 = vmul.f32 %v10303_v57, %v10302_v63  ;;  %v10307_v61 = vld [vmem:[#allocation31_spill] sm:$0xff] }
 0x434   : > { %v3586_v45 = vmul.f32 %v3140_v19, %v10301_v16  ;;  %v10306_v43 = vld [vmem:[#allocation120_spill] sm:$0xff] }
 0x435   : > { %v3411_v11 = vadd.f32 %v3395_v54, %v3379_v55  ;;  %v3538_v52 = vadd.f32 %v3522_v47, %v3506_v15  ;;  %v10304_v54 = vld [vmem:[#allocation122_spill] sm:$0xff]  ;;  %v3618_v15 = vmul.f32 %v3189_v2, %v10306_v43  ;;  %v3094_v55 = vpop.f32.mrf.mxu3  ;;  %v3633_v50 = vadd.f32 %v3617_v59, %v3601_v23  ;;  %v10308_v37 = vld [vmem:[#allocation220_spill] sm:$0xff]  ;;  %v3143_v19 = vpop.f32.mrf.mxu0  ;;  %v10313_v2 = vld [vmem:[#allocation281_spill] sm:$0xff] }
 0x436   : > { %v3314_v21 = vpop.f32.mrf.mxu2  ;;  %v10305_v47 = vld [vmem:[#allocation274_spill] sm:$0xff]  ;;  %v3396_v40 = vmul.f32 %v10308_v37, %v10307_v61  ;;  %v10314_v59 = vld [vmem:[#allocation115_spill] sm:$0xff] }
 0x437   : > { %v3443_v26 = vadd.f32 %v3427_v51, %v3411_v11  ;;  %v3315_v28 = vadd.f32 %v3314_v21, %v3214_v49  ;;  %v3570_v30 = vadd.f32 %v3554_v38, %v3538_v52  ;;  %v3491_v62 = vmul.f32 %v10305_v47, %v10304_v54  ;;  %v10309_v51 = vld [vmem:[#allocation275_spill] sm:$0xff]  ;;  %v10310_v49 = vld [vmem:[#allocation121_spill] sm:$0xff]  ;;  %v10315_v37 = vld [vmem:[#allocation278_spill] sm:$0xff] }
 0x438   : > { %5490 = vmatmul.msk.f32.gmra.mxu0 %vm3215_vm3, %v10309_v51  ;;  %v10311_v38 = vld [vmem:[#allocation277_spill] sm:$0xff]  ;;  %v10312_v47 = vld [vmem:[#allocation47_spill] sm:$0xff] }
 0x439   : > { %v3475_v27 = vadd.f32 %v3459_v25, %v3443_v26  ;;  %v3348_v17 = vadd.f32 %v3332_v22, %v3315_v28  ;;  %v3602_v56 = vadd.f32 %v3586_v45, %v3570_v30  ;;  %v3523_v57 = vmul.f32 %v10311_v38, %v10310_v49  ;;  %v3192_v25 = vpop.f32.mrf.mxu1  ;;  %v10316_v26 = vld [vmem:[#allocation177_spill] sm:$0xff]  ;;  %v10318_v38 = vld [vmem:[#allocation279_spill] sm:$0xff] }
 0x43a   : > { %v3428_v43 = vmul.f32 %v10313_v2, %v10312_v47  ;;  %v3649_v30 = vmax.f32 %v3633_v50, 0.0  ;;  %v3460_v45 = vmul.f32 %v10315_v37, %v10314_v59  ;;  %v3555_v63 = vmul.f32 %v3094_v55, %v10316_v26  ;;  %v10317_v54 = vld [vmem:[#allocation133_spill] sm:$0xff]  ;;  %v10320_v50 = vld [vmem:[#allocation176_spill] sm:$0xff] }
 0x43b   : > { %v3507_v11 = vadd.f32 %v3491_v62, %v3475_v27  ;;  %v3380_v52 = vadd.f32 %v3364_v0, %v3348_v17  ;;  %v3634_v21 = vadd.f32 %v3618_v15, %v3602_v56  ;;  %v3492_v62 = vmul.f32 %v10318_v38, %v10317_v54  ;;  %v10319_v27 = vld [vmem:[#allocation280_spill] sm:$0xff] }
 0x43c   : > { %v10323_v55 = vld [vmem:[#allocation140_spill] sm:$0xff] }
 0x43d   : > { %v3412_v22 = vadd.f32 %v3396_v40, %v3380_v52  ;;  %v3650_v23 = vmax.f32 %v3634_v21, 0.0  ;;  %v3539_v28 = vadd.f32 %v3523_v57, %v3507_v11  ;;  %v3096_v15 = vpop.f32.mrf.mxu3  ;;  %v10321_v40 = vld [vmem:[#allocation282_spill] sm:$0xff]  ;;  %v3145_v21 = vpop.f32.mrf.mxu0 }
 0x43e   : > { %v3524_v56 = vmul.f32 %v10321_v40, %v10320_v50  ;;  %v10322_v57 = vld [vmem:[#allocation142_spill] sm:$0xff] }
 0x43f   : > { %v3444_v51 = vadd.f32 %v3428_v43, %v3412_v22  ;;  %v3659_v61 = vpack.c.bf16 %v3650_v23, %v3649_v30  ;;  %v3571_v0 = vadd.f32 %v3555_v63, %v3539_v28  ;;  %v3587_v11 = vmul.f32 %v3143_v19, %v10322_v57  ;;  %v10324_v23 = vld [vmem:[#allocation144_spill] sm:$0xff] }
 0x440   : > { %5491 = vmatmul.msk.f32.gmra.mxu0 %vm3215_vm3, %v10319_v27  ;;  %v3556_v43 = vmul.f32 %v3096_v15, %v10323_v55  ;;  %v3619_v37 = vmul.f32 %v3192_v25, %v10324_v23  ;;  %v10328_v15 = vld [vmem:[#allocation37_spill] sm:$0xff] }
 0x441   : > { %v3476_v17 = vadd.f32 %v3460_v45, %v3444_v51  ;;  %3763 = vmatmul.bf16.gmra.mxu3 %v3659_v61  ;;  %v3603_v22 = vadd.f32 %v3587_v11, %v3571_v0  ;;  %v3194_v30 = vpop.f32.mrf.mxu1  ;;  %v10325_v61 = vld [vmem:[#allocation84_spill] sm:$0xff]  ;;  %v10326_v45 = vld [vmem:[#allocation146_spill] sm:$0xff]  ;;  %v10327_v0 = vld [vmem:[#allocation59_spill] sm:$0xff] }
 0x442   : > { %v3588_v63 = vmul.f32 %v3145_v21, %v10325_v61  ;;  %v3620_v51 = vmul.f32 %v3194_v30, %v10326_v45  ;;  %v10330_v11 = vld [vmem:[#allocation92_spill] sm:$0xff] }
 0x443   : > { %v3508_v52 = vadd.f32 %v3492_v62, %v3476_v17  ;;  %v3635_v27 = vadd.f32 %v3619_v37, %v3603_v22  ;;  %v10332_v37 = vld [vmem:[#allocation62_spill] sm:$0xff] }
 0x445   : > { %v3540_v2 = vadd.f32 %v3524_v56, %v3508_v52  ;;  %v3651_v40 = vmax.f32 %v3635_v27, 0.0  ;;  %v10331_v52 = vld [vmem:[#allocation86_spill] sm:$0xff] }
 0x447   : > { %v3572_v28 = vadd.f32 %v3556_v43, %v3540_v2 }
 0x449   : > { %v3604_v38 = vadd.f32 %v3588_v63, %v3572_v28  ;;  %v10333_v63 = vld [vmem:[#allocation25_spill] sm:$0xff] }
 0x44b   : > { %v3636_v47 = vadd.f32 %v3620_v51, %v3604_v38 }
 0x44d   : > { %v3652_v50 = vmax.f32 %v3636_v47, 0.0  ;;  %v10329_v47 = vld [vmem:[#allocation108_spill] sm:$0xff] }
 0x44f   : > { %v3660_v19 = vpack.c.bf16 %v3652_v50, %v3651_v40 }
 0x451   : > { %3768 = vmatmul.bf16.gmra.mxu3 %v3660_v19 }
 0x464   : > { %v8733_v62 = vpop.f32.mrf.mxu3 }
 0x465   : > { %v4052_v17 = vmul.f32 %v8733_v62, %v10055_v33  ;;  %v3956_v25 = vmul.f32 %v8733_v62, %v10327_v0  ;;  %v3860_v56 = vmul.f32 %v8733_v62, %v10328_v15  ;;  %v4340_v50 = vmul.f32 %v8733_v62, %v10329_v47 }
 0x466   : > { %v4244_v33 = vmul.f32 %v8733_v62, %v10330_v11  ;;  %v4148_v21 = vmul.f32 %v8733_v62, %v10331_v52  ;;  %v4628_v43 = vmul.f32 %v8733_v62, %v7267_v35  ;;  %v4532_v2 = vmul.f32 %v8733_v62, %v7283_v9 }
 0x467   : > { %4084 = vrot.lane.b32.xlu1 %v4052_v17, %s5855_s16  ;;  %3988 = vrot.lane.b32.xlu0 %v3956_v25, %s5856_s17  ;;  %v4436_v22 = vmul.f32 %v8733_v62, %v10063_v41  ;;  %v4724_v41 = vmul.f32 %v8733_v62, %v10075_v8  ;;  %v10335_v17 = vld [vmem:[#allocation105_spill] sm:$0xff] }
 0x468   : > { %3892 = vrot.lane.b32.xlu2 %v3860_v56, %s5857_s18  ;;  %v10336_v25 = vld [vmem:[#allocation89_spill] sm:$0xff]  ;;  %v10338_v56 = vld [vmem:[#allocation148_spill] sm:$0xff] }
 0x46c   : > { %v8762_v30 = vpop.f32.mrf.mxu3 }
 0x46d   : > { %v3957_v35 = vmul.f32 %v8762_v30, %v10332_v37  ;;  %v3861_v9 = vmul.f32 %v8762_v30, %v10333_v63  ;;  %v4245_v28 = vmul.f32 %v8762_v30, %v10067_v48  ;;  %v4149_v51 = vmul.f32 %v8762_v30, %v10065_v13  ;;  %v10342_v37 = vld [vmem:[#allocation155_spill] sm:$0xff]  ;;  %v10343_v63 = vld [vmem:[#allocation20_spill] sm:$0xff] }
 0x46e   : > { %v4053_v38 = vmul.f32 %v8762_v30, %v10062_v20  ;;  %v4533_v8 = vmul.f32 %v8762_v30, %v7286_v24  ;;  %v4437_v27 = vmul.f32 %v8762_v30, %v7039_v3  ;;  %v4341_v48 = vmul.f32 %v8762_v30, %v10069_v42 }
 0x46f   : > { %4372 = vrot.lane.b32.xlu1 %v4340_v50, %s5858_s19  ;;  %4276 = vrot.lane.b32.xlu0 %v4244_v33, %s5859_s21  ;;  %v4725_v13 = vmul.f32 %v8762_v30, %v7301_v5  ;;  %v4629_v3 = vmul.f32 %v8762_v30, %v7303_v12  ;;  %v10339_v50 = vld [vmem:[#allocation135_spill] sm:$0xff] }
 0x470   : > { %4180 = vrot.lane.b32.xlu2 %v4148_v21, %s5860_s22  ;;  %v10340_v21 = vld [vmem:[#allocation53_spill] sm:$0xff] }
 0x474   : > { %v8791_v20 = vpop.f32.mrf.mxu3 }
 0x475   : > { %v3862_v24 = vmul.f32 %v8791_v20, %v10066_v18  ;;  %v4054_v42 = vmul.f32 %v8791_v20, %v10070_v6  ;;  %v4150_v40 = vmul.f32 %v8791_v20, %v10072_v44  ;;  %v3958_v5 = vmul.f32 %v8791_v20, %v10068_v58 }
 0x476   : > { %v4342_v12 = vmul.f32 %v8791_v20, %v6977_v14  ;;  %v4438_v18 = vmul.f32 %v8791_v20, %v10078_v32  ;;  %v4246_v6 = vmul.f32 %v8791_v20, %v10074_v60  ;;  %v4630_v58 = vmul.f32 %v8791_v20, %v10090_v31 }
 0x477   : > { %4660 = vrot.lane.b32.xlu1 %v4628_v43, %s5861_s25  ;;  %4564 = vrot.lane.b32.xlu0 %v4532_v2, %s5862_s26  ;;  %v4726_v44 = vmul.f32 %v8791_v20, %v10100_v39  ;;  %v4534_v14 = vmul.f32 %v8791_v20, %v10083_v1  ;;  %v10334_v1 = vld [vmem:[#allocation111_spill] sm:$0xff]  ;;  %v10341_v2 = vld [vmem:[#allocation29_spill] sm:$0xff] }
 0x478   : > { %4468 = vrot.lane.b32.xlu2 %v4436_v22, %s5863_s27 }
 0x47c   : > { %v8829_v60 = vpop.f32.mrf.mxu3 }
 0x47d   : > { %v4055_v32 = vmul.f32 %v8829_v60, %v10077_v36  ;;  %v3959_v31 = vmul.f32 %v8829_v60, %v10076_v53  ;;  %v3863_v39 = vmul.f32 %v8829_v60, %v10073_v4  ;;  %v4343_v19 = vmul.f32 %v8829_v60, %v10334_v1  ;;  %v10337_v53 = vld [vmem:[#allocation149_spill] sm:$0xff] }
 0x47e   : > { %v4247_v0 = vmul.f32 %v8829_v60, %v10335_v17  ;;  %v4151_v36 = vmul.f32 %v8829_v60, %v10336_v25  ;;  %v4631_v15 = vmul.f32 %v8829_v60, %v10337_v53  ;;  %v4535_v47 = vmul.f32 %v8829_v60, %v10338_v56  ;;  %v10351_v53 = vld [vmem:[#allocation45_spill] sm:$0xff] }
 0x47f   : > { %3990 = vrot.lane.b32.xlu1 %v3957_v35, %s5856_s17  ;;  %3894 = vrot.lane.b32.xlu0 %v3861_v9, %s5857_s18  ;;  %v4439_v11 = vmul.f32 %v8829_v60, %v10339_v50  ;;  %v4727_v35 = vmul.f32 %v8829_v60, %v10342_v37  ;;  %v3776_v9 = vmul.f32 %v8733_v62, %v10343_v63  ;;  %v10352_v56 = vld [vmem:[#allocation157_spill] sm:$0xff]  ;;  %v10354_v63 = vld [vmem:[#allocation74_spill] sm:$0xff] }
 0x480   : > { %4756 = vrot.lane.b32.xlu2 %v4724_v41, %s5864_s28 }
 0x484   : > { %v8858_v33 = vpop.f32.mrf.mxu3 }
 0x485   : > { %v3960_v43 = vmul.f32 %v8858_v33, %v10340_v21  ;;  %v3864_v22 = vmul.f32 %v8858_v33, %v10341_v2  ;;  %v10353_v2 = vld [vmem:[#allocation23_spill] sm:$0xff] }
 0x487   : > { %4278 = vrot.lane.b32.xlu1 %v4245_v28, %s5859_s21  ;;  %4182 = vrot.lane.b32.xlu0 %v4149_v51, %s5860_s22  ;;  %v3812_v28 = vpop.f32.mrf.mxu0  ;;  %v10344_v51 = vld [vmem:[#allocation97_spill] sm:$0xff] }
 0x488   : > { %4086 = vrot.lane.b32.xlu2 %v4053_v38, %s5855_s16  ;;  %v4248_v38 = vmul.f32 %v8858_v33, %v10344_v51 }
 0x48f   : > { %4566 = vrot.lane.b32.xlu1 %v4533_v8, %s5862_s26  ;;  %4470 = vrot.lane.b32.xlu0 %v4437_v27, %s5863_s27  ;;  %v10345_v8 = vld [vmem:[#allocation80_spill] sm:$0xff] }
 0x490   : > { %4374 = vrot.lane.b32.xlu2 %v4341_v48, %s5858_s19  ;;  %v4152_v27 = vmul.f32 %v8858_v33, %v10345_v8  ;;  %v3813_v48 = vadd.f32 %v3812_v28, %v3776_v9 }
 0x497   : > { %4758 = vrot.lane.b32.xlu0 %v4725_v13, %s5864_s28  ;;  %3896 = vrot.lane.b32.xlu1 %v3862_v24, %s5857_s18  ;;  %v10346_v13 = vld [vmem:[#allocation10_spill] sm:$0xff] }
 0x498   : > { %4662 = vrot.lane.b32.xlu2 %v4629_v3, %s5861_s25  ;;  %v4056_v24 = vmul.f32 %v8858_v33, %v10346_v13 }
 0x49f   : > { %4088 = vrot.lane.b32.xlu0 %v4054_v42, %s5855_s16  ;;  %4184 = vrot.lane.b32.xlu1 %v4150_v40, %s5860_s22 }
 0x4a0   : > { %3992 = vrot.lane.b32.xlu2 %v3958_v5, %s5856_s17 }
 0x4a7   : > { %4376 = vrot.lane.b32.xlu0 %v4342_v12, %s5858_s19  ;;  %4472 = vrot.lane.b32.xlu1 %v4438_v18, %s5863_s27  ;;  %v10347_v18 = vld [vmem:[#allocation151_spill] sm:$0xff] }
 0x4a8   : > { %4280 = vrot.lane.b32.xlu2 %v4246_v6, %s5859_s21  ;;  %v4536_v6 = vmul.f32 %v8858_v33, %v10347_v18 }
 0x4af   : > { %4664 = vrot.lane.b32.xlu0 %v4630_v58, %s5861_s25  ;;  %4760 = vrot.lane.b32.xlu1 %v4726_v44, %s5864_s28  ;;  %v10348_v58 = vld [vmem:[#allocation129_spill] sm:$0xff] }
 0x4b0   : > { %4568 = vrot.lane.b32.xlu2 %v4534_v14, %s5862_s26  ;;  %v4440_v44 = vmul.f32 %v8858_v33, %v10348_v58  ;;  %v10349_v14 = vld [vmem:[#allocation123_spill] sm:$0xff] }
 0x4b7   : > { %4090 = vrot.lane.b32.xlu1 %v4055_v32, %s5855_s16  ;;  %3994 = vrot.lane.b32.xlu0 %v3959_v31, %s5856_s17  ;;  %v4344_v32 = vmul.f32 %v8858_v33, %v10349_v14 }
 0x4b8   : > { %3898 = vrot.lane.b32.xlu2 %v3863_v39, %s5857_s18 }
 0x4bf   : > { %4378 = vrot.lane.b32.xlu1 %v4343_v19, %s5858_s19  ;;  %4282 = vrot.lane.b32.xlu0 %v4247_v0, %s5859_s21  ;;  %v8889_v19 = vpop.f32.mrf.mxu3 }
 0x4c0   : > { %4186 = vrot.lane.b32.xlu2 %v4151_v36, %s5860_s22  ;;  %v10350_v36 = vld [vmem:[#allocation159_spill] sm:$0xff]  ;;  %v4057_v9 = vmul.f32 %v8889_v19, %v10354_v63 }
 0x4c2   : > { %v3893_v4 = vpop.permute.xlu2 %3892 }
 0x4c3   : > { %v3940_v3 = vadd.f32 %v3893_v4, %v3813_v48  ;;  %v4728_v4 = vmul.f32 %v8858_v33, %v10350_v36 }
 0x4c7   : > { %4666 = vrot.lane.b32.xlu1 %v4631_v15, %s5861_s25  ;;  %4570 = vrot.lane.b32.xlu0 %v4535_v47, %s5862_s26  ;;  %v3865_v15 = vmul.f32 %v8889_v19, %v10351_v53  ;;  %v4632_v47 = vmul.f32 %v8858_v33, %v10352_v56  ;;  %v8937_v53 = vpop.f32.mrf.mxu3 }
 0x4c8   : > { %4474 = vrot.lane.b32.xlu2 %v4439_v11, %s5863_s27 }
 0x4ca   : > { %v4181_v52 = vpop.permute.xlu2 %4180 }
 0x4cf   : > { %3996 = vrot.lane.b32.xlu1 %v3960_v43, %s5856_s17  ;;  %3900 = vrot.lane.b32.xlu0 %v3864_v22, %s5857_s18  ;;  %v3777_v22 = vmul.f32 %v8762_v30, %v10353_v2  ;;  %v10364_v2 = vld [vmem:[#allocation33_spill] sm:$0xff] }
 0x4d0   : > { %4762 = vrot.lane.b32.xlu2 %v4727_v35, %s5864_s28  ;;  %v3815_v35 = vpop.f32.mrf.mxu0 }
 0x4d1   : > { %v3816_v30 = vadd.f32 %v3815_v35, %v3777_v22 }
 0x4d2   : > { %v4469_v41 = vpop.permute.xlu2 %4468 }
 0x4d7   : > { %4284 = vrot.lane.b32.xlu1 %v4248_v38, %s5859_s21  ;;  %4188 = vrot.lane.b32.xlu0 %v4152_v27, %s5860_s22  ;;  %v10356_v38 = vld [vmem:[#allocation63_spill] sm:$0xff] }
 0x4d8   : > { %4092 = vrot.lane.b32.xlu2 %v4056_v24, %s5855_s16  ;;  %v3961_v8 = vmul.f32 %v8889_v19, %v10356_v38  ;;  %v3818_v22 = vpop.f32.mrf.mxu0 }
 0x4d9   : > { %v4085_v62 = vpop.permute.xlu1 %4084  ;;  %v3989_v42 = vpop.permute.xlu0 %3988 }
 0x4da   : > { %v4036_v40 = vadd.f32 %v3989_v42, %v3940_v3  ;;  %v4757_v5 = vpop.permute.xlu2 %4756 }
 0x4dc   : > { %v4132_v12 = vadd.f32 %v4085_v62, %v4036_v40  ;;  %v10357_v62 = vld [vmem:[#allocation113_spill] sm:$0xff] }
 0x4dd   : > { %v4345_v42 = vmul.f32 %v8889_v19, %v10357_v62  ;;  %v10358_v40 = vld [vmem:[#allocation137_spill] sm:$0xff] }
 0x4de   : > { %v4228_v31 = vadd.f32 %v4181_v52, %v4132_v12  ;;  %v10359_v12 = vld [vmem:[#allocation94_spill] sm:$0xff] }
 0x4df   : > { %4572 = vrot.lane.b32.xlu1 %v4536_v6, %s5862_s26  ;;  %4476 = vrot.lane.b32.xlu0 %v4440_v44, %s5863_s27  ;;  %v4249_v18 = vmul.f32 %v8889_v19, %v10359_v12 }
 0x4e0   : > { %4380 = vrot.lane.b32.xlu2 %v4344_v32, %s5858_s19 }
 0x4e1   : > { %v4373_v39 = vpop.permute.xlu1 %4372  ;;  %v4277_v1 = vpop.permute.xlu0 %4276 }
 0x4e2   : > { %v4324_v17 = vadd.f32 %v4277_v1, %v4228_v31  ;;  %v4087_v0 = vpop.permute.xlu2 %4086  ;;  %v4729_v1 = vmul.f32 %v8889_v19, %v10146_v29 }
 0x4e4   : > { %v4420_v25 = vadd.f32 %v4373_v39, %v4324_v17  ;;  %v4633_v39 = vmul.f32 %v8889_v19, %v10141_v34  ;;  %v10360_v17 = vld [vmem:[#allocation156_spill] sm:$0xff] }
 0x4e6   : > { %v4516_v50 = vadd.f32 %v4469_v41, %v4420_v25  ;;  %v10355_v41 = vld [vmem:[#allocation91_spill] sm:$0xff]  ;;  %v4537_v25 = vmul.f32 %v8889_v19, %v10360_v17 }
 0x4e7   : > { %4764 = vrot.lane.b32.xlu0 %v4728_v4, %s5864_s28  ;;  %3902 = vrot.lane.b32.xlu1 %v3865_v15, %s5857_s18  ;;  %v4153_v28 = vmul.f32 %v8889_v19, %v10355_v41 }
 0x4e8   : > { %4668 = vrot.lane.b32.xlu2 %v4632_v47, %s5861_s25  ;;  %v10361_v47 = vld [vmem:[#allocation77_spill] sm:$0xff] }
 0x4e9   : > { %v4661_v11 = vpop.permute.xlu1 %4660  ;;  %v4565_v52 = vpop.permute.xlu0 %4564  ;;  %v4058_v29 = vmul.f32 %v8937_v53, %v10361_v47 }
 0x4ea   : > { %v4612_v21 = vadd.f32 %v4565_v52, %v4516_v50  ;;  %v4375_v43 = vpop.permute.xlu2 %4374  ;;  %v10362_v50 = vld [vmem:[#allocation67_spill] sm:$0xff]  ;;  %v10363_v52 = vld [vmem:[#allocation18_spill] sm:$0xff] }
 0x4ec   : > { %v4708_v37 = vadd.f32 %v4661_v11, %v4612_v21  ;;  %v3962_v11 = vmul.f32 %v8937_v53, %v10362_v50  ;;  %v3778_v21 = vmul.f32 %v8791_v20, %v10363_v52  ;;  %v10365_v20 = vld [vmem:[#allocation109_spill] sm:$0xff] }
 0x4ed   : > { %v4346_v38 = vmul.f32 %v8937_v53, %v10365_v20 }
 0x4ee   : > { %v4804_v51 = vadd.f32 %v4757_v5, %v4708_v37  ;;  %v4441_v5 = vmul.f32 %v8889_v19, %v10358_v40 }
 0x4ef   : > { %4094 = vrot.lane.b32.xlu0 %v4057_v9, %s5855_s16  ;;  %4190 = vrot.lane.b32.xlu1 %v4153_v28, %s5860_s22  ;;  %v3819_v9 = vadd.f32 %v3818_v22, %v3778_v21 }
 0x4f0   : > { %4821 = vst.msk [vmem:[%s8906_s8] sm:$0xff] %vm4820_vm4, %v4804_v51  ;;  %3998 = vrot.lane.b32.xlu2 %v3961_v8, %s5856_s17  ;;  %v10366_v8 = vld [vmem:[#allocation107_spill] sm:$0xff] }
 0x4f1   : > { %v3991_v27 = vpop.permute.xlu1 %3990  ;;  %v3895_v48 = vpop.permute.xlu0 %3894 }
 0x4f2   : > { %v4663_v13 = vpop.permute.xlu2 %4662  ;;  %v3941_v24 = vadd.f32 %v3895_v48, %v3816_v30  ;;  %v4250_v30 = vmul.f32 %v8937_v53, %v10366_v8 }
 0x4f4   : > { %v4037_v3 = vadd.f32 %v3991_v27, %v3941_v24  ;;  %v10367_v27 = vld [vmem:[#allocation81_spill] sm:$0xff] }
 0x4f5   : > { %v4154_v48 = vmul.f32 %v8937_v53, %v10367_v27 }
 0x4f6   : > { %v4133_v6 = vadd.f32 %v4087_v0, %v4037_v3 }
 0x4f7   : > { %4382 = vrot.lane.b32.xlu0 %v4345_v42, %s5858_s19  ;;  %4478 = vrot.lane.b32.xlu1 %v4441_v5, %s5863_s27  ;;  %v10368_v5 = vld [vmem:[#allocation161_spill] sm:$0xff] }
 0x4f8   : > { %4286 = vrot.lane.b32.xlu2 %v4249_v18, %s5859_s21  ;;  %v4634_v12 = vmul.f32 %v8937_v53, %v10368_v5  ;;  %v10369_v18 = vld [vmem:[#allocation160_spill] sm:$0xff] }
 0x4f9   : > { %v4279_v58 = vpop.permute.xlu1 %4278  ;;  %v4183_v44 = vpop.permute.xlu0 %4182 }
 0x4fa   : > { %v4229_v14 = vadd.f32 %v4183_v44, %v4133_v6  ;;  %v3993_v32 = vpop.permute.xlu2 %3992  ;;  %v4538_v6 = vmul.f32 %v8937_v53, %v10369_v18 }
 0x4fc   : > { %v4325_v31 = vadd.f32 %v4279_v58, %v4229_v14  ;;  %v10370_v58 = vld [vmem:[#allocation131_spill] sm:$0xff] }
 0x4fd   : > { %v4442_v44 = vmul.f32 %v8937_v53, %v10370_v58 }
 0x4fe   : > { %v4421_v0 = vadd.f32 %v4375_v43, %v4325_v31  ;;  %v3866_v43 = vmul.f32 %v8937_v53, %v10364_v2 }
 0x4ff   : > { %4670 = vrot.lane.b32.xlu0 %v4633_v39, %s5861_s25  ;;  %4766 = vrot.lane.b32.xlu1 %v4729_v1, %s5864_s28  ;;  %v8970_v39 = vpop.f32.mrf.mxu3 }
 0x500   : > { %4574 = vrot.lane.b32.xlu2 %v4537_v25, %s5862_s26 }
 0x501   : > { %v4567_v36 = vpop.permute.xlu1 %4566  ;;  %v4471_v4 = vpop.permute.xlu0 %4470 }
 0x502   : > { %v4517_v15 = vadd.f32 %v4471_v4, %v4421_v0  ;;  %v4281_v56 = vpop.permute.xlu2 %4280  ;;  %v10371_v0 = vld [vmem:[#allocation57_spill] sm:$0xff]  ;;  %v10372_v4 = vld [vmem:[#allocation46_spill] sm:$0xff] }
 0x504   : > { %v4613_v34 = vadd.f32 %v4567_v36, %v4517_v15  ;;  %v3963_v36 = vmul.f32 %v8970_v39, %v10371_v0  ;;  %v3867_v15 = vmul.f32 %v8970_v39, %v10372_v4 }
 0x506   : > { %v4709_v37 = vadd.f32 %v4663_v13, %v4613_v34  ;;  %v10373_v34 = vld [vmem:[#allocation165_spill] sm:$0xff] }
 0x507   : > { %4096 = vrot.lane.b32.xlu1 %v4058_v29, %s5855_s16  ;;  %4000 = vrot.lane.b32.xlu0 %v3962_v11, %s5856_s17  ;;  %v4730_v47 = vmul.f32 %v8937_v53, %v10373_v34  ;;  %v10374_v11 = vld [vmem:[#allocation21_spill] sm:$0xff]  ;;  %v9003_v18 = vpop.f32.mrf.mxu3 }
 0x508   : > { %3904 = vrot.lane.b32.xlu2 %v3866_v43, %s5857_s18  ;;  %v3779_v52 = vmul.f32 %v8829_v60, %v10374_v11  ;;  %v3821_v43 = vpop.f32.mrf.mxu0  ;;  %v10385_v11 = vld [vmem:[#allocation9_spill] sm:$0xff] }
 0x509   : > { %v4759_v35 = vpop.permute.xlu0 %4758  ;;  %v3897_v63 = vpop.permute.xlu1 %3896 }
 0x50a   : > { %v4805_v41 = vadd.f32 %v4759_v35, %v4709_v37  ;;  %v4569_v28 = vpop.permute.xlu2 %4568  ;;  %v3942_v51 = vadd.f32 %v3897_v63, %v3819_v9  ;;  %v10375_v37 = vld [vmem:[#allocation100_spill] sm:$0xff]  ;;  %v10376_v63 = vld [vmem:[#allocation82_spill] sm:$0xff] }
 0x50b   : > { %v4251_v35 = vmul.f32 %v8970_v39, %v10375_v37  ;;  %v4155_v9 = vmul.f32 %v8970_v39, %v10376_v63  ;;  %v10387_v37 = vld [vmem:[#allocation66_spill] sm:$0xff] }
 0x50c   : > { %4822 = vst.msk [vmem:[%s8906_s8 + $0x8] sm:$0xff] %vm4820_vm4, %v4805_v41  ;;  %v4038_v13 = vadd.f32 %v3993_v32, %v3942_v51  ;;  %v3822_v41 = vadd.f32 %v3821_v43, %v3779_v52  ;;  %v10377_v51 = vld [vmem:[#allocation14_spill] sm:$0xff]  ;;  %v4060_v52 = vmul.f32 %v9003_v18, %v10385_v11 }
 0x50f   : > { %4384 = vrot.lane.b32.xlu1 %v4346_v38, %s5858_s19  ;;  %4288 = vrot.lane.b32.xlu0 %v4250_v30, %s5859_s21 }
 0x510   : > { %4192 = vrot.lane.b32.xlu2 %v4154_v48, %s5860_s22  ;;  %v10378_v48 = vld [vmem:[#allocation163_spill] sm:$0xff] }
 0x511   : > { %v4089_v24 = vpop.permute.xlu0 %4088  ;;  %v4185_v3 = vpop.permute.xlu1 %4184 }
 0x512   : > { %v4134_v62 = vadd.f32 %v4089_v24, %v4038_v13  ;;  %v3899_v42 = vpop.permute.xlu2 %3898  ;;  %v4539_v13 = vmul.f32 %v8970_v39, %v10378_v48  ;;  %v10379_v24 = vld [vmem:[#allocation139_spill] sm:$0xff] }
 0x513   : > { %v3943_v60 = vadd.f32 %v3899_v42, %v3822_v41 }
 0x514   : > { %v4230_v40 = vadd.f32 %v4185_v3, %v4134_v62  ;;  %v4443_v3 = vmul.f32 %v8970_v39, %v10379_v24  ;;  %v10380_v62 = vld [vmem:[#allocation125_spill] sm:$0xff] }
 0x516   : > { %v4326_v14 = vadd.f32 %v4281_v56, %v4230_v40  ;;  %v4347_v40 = vmul.f32 %v8970_v39, %v10380_v62 }
 0x517   : > { %4672 = vrot.lane.b32.xlu1 %v4634_v12, %s5861_s25  ;;  %4576 = vrot.lane.b32.xlu0 %v4538_v6, %s5862_s26 }
 0x518   : > { %4480 = vrot.lane.b32.xlu2 %v4442_v44, %s5863_s27 }
 0x519   : > { %v4377_v32 = vpop.permute.xlu0 %4376  ;;  %v4473_v31 = vpop.permute.xlu1 %4472 }
 0x51a   : > { %v4422_v1 = vadd.f32 %v4377_v32, %v4326_v14  ;;  %v4187_v17 = vpop.permute.xlu2 %4186  ;;  %v10381_v14 = vld [vmem:[#allocation164_spill] sm:$0xff] }
 0x51b   : > { %v4731_v32 = vmul.f32 %v8970_v39, %v10381_v14 }
 0x51c   : > { %v4518_v25 = vadd.f32 %v4473_v31, %v4422_v1  ;;  %v10382_v31 = vld [vmem:[#allocation49_spill] sm:$0xff] }
 0x51d   : > { %v3868_v1 = vmul.f32 %v9003_v18, %v10382_v31  ;;  %v9045_v31 = vpop.f32.mrf.mxu3 }
 0x51e   : > { %v4614_v56 = vadd.f32 %v4569_v28, %v4518_v25  ;;  %v4059_v28 = vmul.f32 %v8970_v39, %v10377_v51  ;;  %v10383_v25 = vld [vmem:[#allocation162_spill] sm:$0xff] }
 0x51f   : > { %4002 = vrot.lane.b32.xlu1 %v3963_v36, %s5856_s17  ;;  %3906 = vrot.lane.b32.xlu0 %v3867_v15, %s5857_s18  ;;  %v4635_v0 = vmul.f32 %v8970_v39, %v10383_v25 }
 0x520   : > { %4768 = vrot.lane.b32.xlu2 %v4730_v47, %s5864_s28  ;;  %v10384_v47 = vld [vmem:[#allocation15_spill] sm:$0xff] }
 0x521   : > { %v4665_v29 = vpop.permute.xlu0 %4664  ;;  %v4761_v50 = vpop.permute.xlu1 %4760 }
 0x522   : > { %v4710_v21 = vadd.f32 %v4665_v29, %v4614_v56  ;;  %v4475_v2 = vpop.permute.xlu2 %4474  ;;  %v3780_v56 = vmul.f32 %v8858_v33, %v10384_v47  ;;  %v10396_v47 = vld [vmem:[#allocation16_spill] sm:$0xff] }
 0x524   : > { %v4806_v22 = vadd.f32 %v4761_v50, %v4710_v21  ;;  %v3824_v50 = vpop.f32.mrf.mxu0  ;;  %v10386_v21 = vld [vmem:[#allocation60_spill] sm:$0xff] }
 0x525   : > { %v4156_v43 = vmul.f32 %v9003_v18, %v10386_v21 }
 0x526   : > { %4823 = vst.msk [vmem:[%s8906_s8 + $0x10] sm:$0xff] %vm4820_vm4, %v4806_v22 }
 0x527   : > { %4290 = vrot.lane.b32.xlu1 %v4251_v35, %s5859_s21  ;;  %4194 = vrot.lane.b32.xlu0 %v4155_v9, %s5860_s22  ;;  %v3964_v35 = vmul.f32 %v9003_v18, %v10387_v37 }
 0x528   : > { %4098 = vrot.lane.b32.xlu2 %v4059_v28, %s5855_s16  ;;  %v10388_v28 = vld [vmem:[#allocation116_spill] sm:$0xff] }
 0x529   : > { %v4091_v20 = vpop.permute.xlu1 %4090  ;;  %v3995_v38 = vpop.permute.xlu0 %3994 }
 0x52a   : > { %v4039_v8 = vadd.f32 %v3995_v38, %v3943_v60  ;;  %v4763_v30 = vpop.permute.xlu2 %4762  ;;  %v4348_v60 = vmul.f32 %v9003_v18, %v10388_v28 }
 0x52c   : > { %v4135_v27 = vadd.f32 %v4091_v20, %v4039_v8  ;;  %v10389_v20 = vld [vmem:[#allocation141_spill] sm:$0xff]  ;;  %v10390_v8 = vld [vmem:[#allocation98_spill] sm:$0xff] }
 0x52d   : > { %v4444_v38 = vmul.f32 %v9003_v18, %v10389_v20 }
 0x52e   : > { %v4231_v42 = vadd.f32 %v4187_v17, %v4135_v27 }
 0x52f   : > { %4578 = vrot.lane.b32.xlu1 %v4539_v13, %s5862_s26  ;;  %4482 = vrot.lane.b32.xlu0 %v4443_v3, %s5863_s27 }
 0x530   : > { %4386 = vrot.lane.b32.xlu2 %v4347_v40, %s5858_s19  ;;  %v10391_v40 = vld [vmem:[#allocation167_spill] sm:$0xff] }
 0x531   : > { %v4379_v5 = vpop.permute.xlu1 %4378  ;;  %v4283_v12 = vpop.permute.xlu0 %4282 }
 0x532   : > { %v4327_v6 = vadd.f32 %v4283_v12, %v4231_v42  ;;  %v4093_v58 = vpop.permute.xlu2 %4092  ;;  %v4636_v42 = vmul.f32 %v9003_v18, %v10391_v40 }
 0x534   : > { %v4423_v44 = vadd.f32 %v4379_v5, %v4327_v6  ;;  %v10392_v5 = vld [vmem:[#allocation169_spill] sm:$0xff]  ;;  %v10393_v6 = vld [vmem:[#allocation168_spill] sm:$0xff] }
 0x535   : > { %v4732_v12 = vmul.f32 %v9003_v18, %v10392_v5 }
 0x536   : > { %v4519_v17 = vadd.f32 %v4475_v2, %v4423_v44  ;;  %v3825_v2 = vadd.f32 %v3824_v50, %v3780_v56  ;;  %v4540_v44 = vmul.f32 %v9003_v18, %v10393_v6  ;;  %v3781_v56 = vmul.f32 %v8889_v19, %v10396_v47  ;;  %v3827_v50 = vpop.f32.mrf.mxu0  ;;  %v10398_v19 = vld [vmem:[#allocation114_spill] sm:$0xff]  ;;  %v10403_v6 = vld [vmem:[#allocation61_spill] sm:$0xff] }
 0x537   : > { %4770 = vrot.lane.b32.xlu0 %v4731_v32, %s5864_s28  ;;  %3908 = vrot.lane.b32.xlu1 %v3868_v1, %s5857_s18 }
 0x538   : > { %4674 = vrot.lane.b32.xlu2 %v4635_v0, %s5861_s25 }
 0x539   : > { %v4667_v36 = vpop.permute.xlu1 %4666  ;;  %v4571_v4 = vpop.permute.xlu0 %4570 }
 0x53a   : > { %v4615_v15 = vadd.f32 %v4571_v4, %v4519_v17  ;;  %v4381_v34 = vpop.permute.xlu2 %4380  ;;  %v10394_v17 = vld [vmem:[#allocation13_spill] sm:$0xff]  ;;  %v10395_v4 = vld [vmem:[#allocation70_spill] sm:$0xff] }
 0x53c   : > { %v4711_v29 = vadd.f32 %v4667_v36, %v4615_v15  ;;  %v4061_v36 = vmul.f32 %v9045_v31, %v10394_v17  ;;  %v3965_v15 = vmul.f32 %v9045_v31, %v10395_v4 }
 0x53e   : > { %v4807_v22 = vadd.f32 %v4763_v30, %v4711_v29  ;;  %v4252_v30 = vmul.f32 %v9003_v18, %v10390_v8  ;;  %v10397_v29 = vld [vmem:[#allocation36_spill] sm:$0xff] }
 0x53f   : > { %4100 = vrot.lane.b32.xlu0 %v4060_v52, %s5855_s16  ;;  %4196 = vrot.lane.b32.xlu1 %v4156_v43, %s5860_s22  ;;  %v3828_v43 = vadd.f32 %v3827_v50, %v3781_v56  ;;  %v3830_v56 = vpop.f32.mrf.mxu0 }
 0x540   : > { %4824 = vst.msk [vmem:[%s8906_s8 + $0x18] sm:$0xff] %vm4820_vm4, %v4807_v22  ;;  %4004 = vrot.lane.b32.xlu2 %v3964_v35, %s5856_s17 }
 0x541   : > { %v3997_v33 = vpop.permute.xlu1 %3996  ;;  %v3901_v63 = vpop.permute.xlu0 %3900 }
 0x542   : > { %v4669_v9 = vpop.permute.xlu2 %4668  ;;  %v3944_v41 = vadd.f32 %v3901_v63, %v3825_v2  ;;  %v4349_v2 = vmul.f32 %v9045_v31, %v10398_v19 }
 0x544   : > { %v4040_v51 = vadd.f32 %v3997_v33, %v3944_v41  ;;  %v10399_v33 = vld [vmem:[#allocation110_spill] sm:$0xff]  ;;  %v10400_v41 = vld [vmem:[#allocation85_spill] sm:$0xff] }
 0x545   : > { %v4253_v63 = vmul.f32 %v9045_v31, %v10399_v33 }
 0x546   : > { %v4136_v27 = vadd.f32 %v4093_v58, %v4040_v51  ;;  %v4157_v51 = vmul.f32 %v9045_v31, %v10400_v41 }
 0x547   : > { %4388 = vrot.lane.b32.xlu0 %v4348_v60, %s5858_s19  ;;  %4484 = vrot.lane.b32.xlu1 %v4444_v38, %s5863_s27 }
 0x548   : > { %4292 = vrot.lane.b32.xlu2 %v4252_v30, %s5859_s21  ;;  %v4637_v30 = vmul.f32 %v9045_v31, %v10221_v7 }
 0x549   : > { %v4285_v48 = vpop.permute.xlu1 %4284  ;;  %v4189_v13 = vpop.permute.xlu0 %4188 }
 0x54a   : > { %v4232_v24 = vadd.f32 %v4189_v13, %v4136_v27  ;;  %v3999_v3 = vpop.permute.xlu2 %3998  ;;  %v10401_v27 = vld [vmem:[#allocation166_spill] sm:$0xff] }
 0x54b   : > { %v10402_v13 = vld [vmem:[#allocation134_spill] sm:$0xff] }
 0x54c   : > { %v4328_v62 = vadd.f32 %v4285_v48, %v4232_v24  ;;  %v4541_v48 = vmul.f32 %v9045_v31, %v10401_v27  ;;  %v4445_v24 = vmul.f32 %v9045_v31, %v10402_v13 }
 0x54e   : > { %v4424_v58 = vadd.f32 %v4381_v34, %v4328_v62  ;;  %v3869_v34 = vmul.f32 %v9045_v31, %v10397_v29 }
 0x54f   : > { %4676 = vrot.lane.b32.xlu0 %v4636_v42, %s5861_s25  ;;  %4772 = vrot.lane.b32.xlu1 %v4732_v12, %s5864_s28  ;;  %v9078_v42 = vpop.f32.mrf.mxu3 }
 0x550   : > { %4580 = vrot.lane.b32.xlu2 %v4540_v44, %s5862_s26  ;;  %v3966_v44 = vmul.f32 %v9078_v42, %v10403_v6 }
 0x551   : > { %v4573_v14 = vpop.permute.xlu1 %4572  ;;  %v4477_v32 = vpop.permute.xlu0 %4476 }
 0x552   : > { %v4520_v1 = vadd.f32 %v4477_v32, %v4424_v58  ;;  %v4287_v25 = vpop.permute.xlu2 %4286  ;;  %v10404_v58 = vld [vmem:[#allocation50_spill] sm:$0xff] }
 0x553   : > { %v10405_v32 = vld [vmem:[#allocation170_spill] sm:$0xff] }
 0x554   : > { %v4616_v0 = vadd.f32 %v4573_v14, %v4520_v1  ;;  %v3870_v14 = vmul.f32 %v9078_v42, %v10404_v58  ;;  %v4733_v1 = vmul.f32 %v9045_v31, %v10405_v32  ;;  %v10416_v32 = vld [vmem:[#allocation24_spill] sm:$0xff] }
 0x556   : > { %v4712_v11 = vadd.f32 %v4669_v9, %v4616_v0 }
 0x557   : > { %4102 = vrot.lane.b32.xlu1 %v4061_v36, %s5855_s16  ;;  %4006 = vrot.lane.b32.xlu0 %v3965_v15, %s5856_s17  ;;  %v10406_v36 = vld [vmem:[#allocation26_spill] sm:$0xff] }
 0x558   : > { %3910 = vrot.lane.b32.xlu2 %v3869_v34, %s5857_s18  ;;  %v3782_v4 = vmul.f32 %v8937_v53, %v10406_v36  ;;  %v10407_v34 = vld [vmem:[#allocation52_spill] sm:$0xff] }
 0x559   : > { %v4765_v52 = vpop.permute.xlu0 %4764  ;;  %v3903_v21 = vpop.permute.xlu1 %3902  ;;  %v4254_v50 = vmul.f32 %v9078_v42, %v10407_v34 }
 0x55a   : > { %v4808_v22 = vadd.f32 %v4765_v52, %v4712_v11  ;;  %v4575_v37 = vpop.permute.xlu2 %4574  ;;  %v3945_v35 = vadd.f32 %v3903_v21, %v3828_v43  ;;  %v10408_v11 = vld [vmem:[#allocation87_spill] sm:$0xff]  ;;  %v3831_v21 = vadd.f32 %v3830_v56, %v3782_v4  ;;  %v10418_v4 = vld [vmem:[#allocation96_spill] sm:$0xff] }
 0x55b   : > { %v4158_v52 = vmul.f32 %v9078_v42, %v10408_v11  ;;  %v10409_v43 = vld [vmem:[#allocation79_spill] sm:$0xff] }
 0x55c   : > { %4825 = vst.msk [vmem:[%s8906_s8 + $0x20] sm:$0xff] %vm4820_vm4, %v4808_v22  ;;  %v4041_v9 = vadd.f32 %v3999_v3, %v3945_v35  ;;  %v4062_v22 = vmul.f32 %v9078_v42, %v10409_v43  ;;  %v10420_v43 = vld [vmem:[#allocation118_spill] sm:$0xff] }
 0x55f   : > { %4390 = vrot.lane.b32.xlu1 %v4349_v2, %s5858_s19  ;;  %4294 = vrot.lane.b32.xlu0 %v4253_v63, %s5859_s21  ;;  %v10410_v63 = vld [vmem:[#allocation173_spill] sm:$0xff] }
 0x560   : > { %4198 = vrot.lane.b32.xlu2 %v4157_v51, %s5860_s22  ;;  %v4542_v41 = vmul.f32 %v9078_v42, %v10410_v63  ;;  %v10411_v51 = vld [vmem:[#allocation143_spill] sm:$0xff] }
 0x561   : > { %v4095_v28 = vpop.permute.xlu0 %4094  ;;  %v4191_v60 = vpop.permute.xlu1 %4190 }
 0x562   : > { %v4137_v20 = vadd.f32 %v4095_v28, %v4041_v9  ;;  %v3905_v38 = vpop.permute.xlu2 %3904  ;;  %v4446_v9 = vmul.f32 %v9078_v42, %v10411_v51  ;;  %v10412_v28 = vld [vmem:[#allocation127_spill] sm:$0xff] }
 0x563   : > { %v3946_v53 = vadd.f32 %v3905_v38, %v3831_v21 }
 0x564   : > { %v4233_v8 = vadd.f32 %v4191_v60, %v4137_v20  ;;  %v4350_v60 = vmul.f32 %v9078_v42, %v10412_v28 }
 0x566   : > { %v4329_v3 = vadd.f32 %v4287_v25, %v4233_v8 }
 0x567   : > { %4678 = vrot.lane.b32.xlu1 %v4637_v30, %s5861_s25  ;;  %4582 = vrot.lane.b32.xlu0 %v4541_v48, %s5862_s26  ;;  %v9111_v30 = vpop.f32.mrf.mxu3 }
 0x568   : > { %4486 = vrot.lane.b32.xlu2 %v4445_v24, %s5863_s27  ;;  %v10413_v24 = vld [vmem:[#allocation117_spill] sm:$0xff]  ;;  %v4639_v28 = vmul.f32 %v9111_v30, %v10261_v46 }
 0x569   : > { %v4383_v62 = vpop.permute.xlu0 %4382  ;;  %v4479_v40 = vpop.permute.xlu1 %4478 }
 0x56a   : > { %v4425_v5 = vadd.f32 %v4383_v62, %v4329_v3  ;;  %v4193_v12 = vpop.permute.xlu2 %4192  ;;  %v4734_v3 = vmul.f32 %v9078_v42, %v10413_v24  ;;  %v10414_v62 = vld [vmem:[#allocation55_spill] sm:$0xff] }
 0x56c   : > { %v4521_v7 = vadd.f32 %v4479_v40, %v4425_v5  ;;  %v3871_v40 = vmul.f32 %v9111_v30, %v10414_v62  ;;  %v10415_v5 = vld [vmem:[#allocation83_spill] sm:$0xff] }
 0x56d   : > { %v10424_v62 = vld [vmem:[#allocation27_spill] sm:$0xff] }
 0x56e   : > { %v4617_v25 = vadd.f32 %v4575_v37, %v4521_v7  ;;  %v4638_v7 = vmul.f32 %v9078_v42, %v10415_v5 }
 0x56f   : > { %4008 = vrot.lane.b32.xlu1 %v3966_v44, %s5856_s17  ;;  %3912 = vrot.lane.b32.xlu0 %v3870_v14, %s5857_s18 }
 0x570   : > { %4774 = vrot.lane.b32.xlu2 %v4733_v1, %s5864_s28  ;;  %v3783_v1 = vmul.f32 %v8970_v39, %v10416_v32 }
 0x571   : > { %v4671_v0 = vpop.permute.xlu0 %4670  ;;  %v4767_v17 = vpop.permute.xlu1 %4766 }
 0x572   : > { %v4713_v15 = vadd.f32 %v4671_v0, %v4617_v25  ;;  %v4481_v47 = vpop.permute.xlu2 %4480  ;;  %v3833_v0 = vpop.f32.mrf.mxu0 }
 0x574   : > { %v4809_v29 = vadd.f32 %v4767_v17, %v4713_v15  ;;  %v10417_v17 = vld [vmem:[#allocation11_spill] sm:$0xff]  ;;  %v4159_v15 = vmul.f32 %v9111_v30, %v10418_v4 }
 0x575   : > { %v4063_v36 = vmul.f32 %v9111_v30, %v10417_v17 }
 0x576   : > { %4826 = vst.msk [vmem:[%s8906_s8 + $0x28] sm:$0xff] %vm4820_vm4, %v4809_v29  ;;  %v10419_v29 = vld [vmem:[#allocation69_spill] sm:$0xff] }
 0x577   : > { %4296 = vrot.lane.b32.xlu1 %v4254_v50, %s5859_s21  ;;  %4200 = vrot.lane.b32.xlu0 %v4158_v52, %s5860_s22  ;;  %v3967_v34 = vmul.f32 %v9111_v30, %v10419_v29  ;;  %v10430_v29 = vld [vmem:[#allocation88_spill] sm:$0xff] }
 0x578   : > { %4104 = vrot.lane.b32.xlu2 %v4062_v22, %s5855_s16  ;;  %v4351_v22 = vmul.f32 %v9111_v30, %v10420_v43  ;;  %v10431_v43 = vld [vmem:[#allocation175_spill] sm:$0xff] }
 0x579   : > { %v4097_v37 = vpop.permute.xlu1 %4096  ;;  %v4001_v35 = vpop.permute.xlu0 %4000 }
 0x57a   : > { %v4042_v19 = vadd.f32 %v4001_v35, %v3946_v53  ;;  %v4769_v2 = vpop.permute.xlu2 %4768  ;;  %v10421_v53 = vld [vmem:[#allocation145_spill] sm:$0xff] }
 0x57b   : > { %v10422_v35 = vld [vmem:[#allocation101_spill] sm:$0xff] }
 0x57c   : > { %v4138_v33 = vadd.f32 %v4097_v37, %v4042_v19  ;;  %v4447_v37 = vmul.f32 %v9111_v30, %v10421_v53  ;;  %v4255_v19 = vmul.f32 %v9111_v30, %v10422_v35  ;;  %v10432_v53 = vld [vmem:[#allocation78_spill] sm:$0xff] }
 0x57d   : > { %v10433_v35 = vld [vmem:[#allocation138_spill] sm:$0xff] }
 0x57e   : > { %v4234_v20 = vadd.f32 %v4193_v12, %v4138_v33 }
 0x57f   : > { %4584 = vrot.lane.b32.xlu1 %v4542_v41, %s5862_s26  ;;  %4488 = vrot.lane.b32.xlu0 %v4446_v9, %s5863_s27 }
 0x580   : > { %4392 = vrot.lane.b32.xlu2 %v4350_v60, %s5858_s19  ;;  %v4735_v60 = vmul.f32 %v9111_v30, %v10266_v10 }
 0x581   : > { %v4385_v38 = vpop.permute.xlu1 %4384  ;;  %v4289_v8 = vpop.permute.xlu0 %4288 }
 0x582   : > { %v4330_v27 = vadd.f32 %v4289_v8, %v4234_v20  ;;  %v4099_v48 = vpop.permute.xlu2 %4098  ;;  %v10423_v20 = vld [vmem:[#allocation172_spill] sm:$0xff] }
 0x584   : > { %v4426_v13 = vadd.f32 %v4385_v38, %v4330_v27  ;;  %v4543_v38 = vmul.f32 %v9111_v30, %v10423_v20 }
 0x586   : > { %v4522_v12 = vadd.f32 %v4481_v47, %v4426_v13  ;;  %v3834_v47 = vadd.f32 %v3833_v0, %v3783_v1  ;;  %v9153_v13 = vpop.f32.mrf.mxu3 }
 0x587   : > { %4776 = vrot.lane.b32.xlu0 %v4734_v3, %s5864_s28  ;;  %3914 = vrot.lane.b32.xlu1 %v3871_v40, %s5857_s18  ;;  %v4064_v10 = vmul.f32 %v9153_v13, %v10424_v62  ;;  %v10425_v40 = vld [vmem:[#allocation73_spill] sm:$0xff]  ;;  %v10437_v62 = vld [vmem:[#allocation30_spill] sm:$0xff] }
 0x588   : > { %4680 = vrot.lane.b32.xlu2 %v4638_v7, %s5861_s25  ;;  %v3968_v5 = vmul.f32 %v9153_v13, %v10425_v40  ;;  %v10426_v7 = vld [vmem:[#allocation17_spill] sm:$0xff] }
 0x589   : > { %v4673_v6 = vpop.permute.xlu1 %4672  ;;  %v4577_v44 = vpop.permute.xlu0 %4576 }
 0x58a   : > { %v4618_v58 = vadd.f32 %v4577_v44, %v4522_v12  ;;  %v4387_v14 = vpop.permute.xlu2 %4386  ;;  %v3784_v12 = vmul.f32 %v9003_v18, %v10426_v7  ;;  %v10428_v18 = vld [vmem:[#allocation119_spill] sm:$0xff] }
 0x58b   : > { %v4352_v4 = vmul.f32 %v9153_v13, %v10428_v18 }
 0x58c   : > { %v4714_v25 = vadd.f32 %v4673_v6, %v4618_v58  ;;  %v10427_v6 = vld [vmem:[#allocation41_spill] sm:$0xff]  ;;  %v3836_v58 = vpop.f32.mrf.mxu0 }
 0x58d   : > { %v3872_v44 = vmul.f32 %v9153_v13, %v10427_v6  ;;  %v10438_v6 = vld [vmem:[#allocation104_spill] sm:$0xff] }
 0x58e   : > { %v4810_v56 = vadd.f32 %v4769_v2, %v4714_v25  ;;  %v3837_v25 = vadd.f32 %v3836_v58, %v3784_v12  ;;  %v10439_v58 = vld [vmem:[#allocation90_spill] sm:$0xff] }
 0x58f   : > { %4106 = vrot.lane.b32.xlu0 %v4063_v36, %s5855_s16  ;;  %4202 = vrot.lane.b32.xlu1 %v4159_v15, %s5860_s22  ;;  %v10429_v15 = vld [vmem:[#allocation112_spill] sm:$0xff] }
 0x590   : > { %4827 = vst.msk [vmem:[%s8906_s8 + $0x30] sm:$0xff] %vm4820_vm4, %v4810_v56  ;;  %4010 = vrot.lane.b32.xlu2 %v3967_v34, %s5856_s17  ;;  %v4256_v56 = vmul.f32 %v9153_v13, %v10429_v15  ;;  %v4160_v34 = vmul.f32 %v9153_v13, %v10430_v29  ;;  %v10441_v15 = vld [vmem:[#allocation95_spill] sm:$0xff] }
 0x591   : > { %v4003_v39 = vpop.permute.xlu1 %4002  ;;  %v3907_v50 = vpop.permute.xlu0 %3906  ;;  %v10442_v29 = vld [vmem:[#allocation51_spill] sm:$0xff] }
 0x592   : > { %v4675_v11 = vpop.permute.xlu2 %4674  ;;  %v3947_v52 = vadd.f32 %v3907_v50, %v3834_v47 }
 0x594   : > { %v4043_v21 = vadd.f32 %v4003_v39, %v3947_v52  ;;  %v3839_v7 = vpop.f32.mrf.mxu0 }
 0x596   : > { %v4139_v2 = vadd.f32 %v4099_v48, %v4043_v21 }
 0x597   : > { %4394 = vrot.lane.b32.xlu0 %v4351_v22, %s5858_s19  ;;  %4490 = vrot.lane.b32.xlu1 %v4447_v37, %s5863_s27  ;;  %v4640_v22 = vmul.f32 %v9153_v13, %v10431_v43  ;;  %v4544_v37 = vmul.f32 %v9153_v13, %v10432_v53 }
 0x598   : > { %4298 = vrot.lane.b32.xlu2 %v4255_v19, %s5859_s21  ;;  %v4448_v19 = vmul.f32 %v9153_v13, %v10433_v35 }
 0x599   : > { %v4291_v33 = vpop.permute.xlu1 %4290  ;;  %v4195_v63 = vpop.permute.xlu0 %4194 }
 0x59a   : > { %v4235_v41 = vadd.f32 %v4195_v63, %v4139_v2  ;;  %v4005_v51 = vpop.permute.xlu2 %4004 }
 0x59c   : > { %v4331_v9 = vadd.f32 %v4291_v33, %v4235_v41  ;;  %v9186_v41 = vpop.f32.mrf.mxu3 }
 0x59e   : > { %v4427_v8 = vadd.f32 %v4387_v14, %v4331_v9 }
 0x59f   : > { %4682 = vrot.lane.b32.xlu0 %v4639_v28, %s5861_s25  ;;  %4778 = vrot.lane.b32.xlu1 %v4735_v60, %s5864_s28  ;;  %v10434_v60 = vld [vmem:[#allocation64_spill] sm:$0xff] }
 0x5a0   : > { %4586 = vrot.lane.b32.xlu2 %v4543_v38, %s5862_s26  ;;  %v3969_v20 = vmul.f32 %v9186_v41, %v10434_v60  ;;  %v10435_v38 = vld [vmem:[#allocation56_spill] sm:$0xff] }
 0x5a1   : > { %v4579_v27 = vpop.permute.xlu1 %4578  ;;  %v4483_v48 = vpop.permute.xlu0 %4482 }
 0x5a2   : > { %v4523_v24 = vadd.f32 %v4483_v48, %v4427_v8  ;;  %v4293_v3 = vpop.permute.xlu2 %4292  ;;  %v3873_v8 = vmul.f32 %v9186_v41, %v10435_v38 }
 0x5a4   : > { %v4619_v46 = vadd.f32 %v4579_v27, %v4523_v24  ;;  %v10436_v27 = vld [vmem:[#allocation35_spill] sm:$0xff] }
 0x5a5   : > { %v4736_v48 = vmul.f32 %v9153_v13, %v10436_v27  ;;  %v3842_v27 = vpop.f32.mrf.mxu0 }
 0x5a6   : > { %v4715_v14 = vadd.f32 %v4675_v11, %v4619_v46 }
 0x5a7   : > { %4108 = vrot.lane.b32.xlu1 %v4064_v10, %s5855_s16  ;;  %4012 = vrot.lane.b32.xlu0 %v3968_v5, %s5856_s17  ;;  %v3785_v10 = vmul.f32 %v9045_v31, %v10437_v62  ;;  %v10449_v62 = vld [vmem:[#allocation72_spill] sm:$0xff] }
 0x5a8   : > { %3916 = vrot.lane.b32.xlu2 %v3872_v44, %s5857_s18  ;;  %v4257_v44 = vmul.f32 %v9186_v41, %v10438_v6 }
 0x5a9   : > { %v4771_v32 = vpop.permute.xlu0 %4770  ;;  %v3909_v1 = vpop.permute.xlu1 %3908 }
 0x5aa   : > { %v4811_v0 = vadd.f32 %v4771_v32, %v4715_v14  ;;  %v4581_v17 = vpop.permute.xlu2 %4580  ;;  %v3948_v36 = vadd.f32 %v3909_v1, %v3837_v25  ;;  %v4161_v14 = vmul.f32 %v9186_v41, %v10439_v58  ;;  %v3840_v32 = vadd.f32 %v3839_v7, %v3785_v10  ;;  %v10440_v1 = vld [vmem:[#allocation40_spill] sm:$0xff] }
 0x5ab   : > { %v4065_v25 = vmul.f32 %v9186_v41, %v10440_v1 }
 0x5ac   : > { %4828 = vst.msk [vmem:[%s8906_s8 + $0x38] sm:$0xff] %vm4820_vm4, %v4811_v0  ;;  %v4044_v47 = vadd.f32 %v4005_v51, %v3948_v36 }
 0x5af   : > { %4396 = vrot.lane.b32.xlu1 %v4352_v4, %s5858_s19  ;;  %4300 = vrot.lane.b32.xlu0 %v4256_v56, %s5859_s21  ;;  %v4545_v56 = vmul.f32 %v9186_v41, %v10441_v15 }
 0x5b0   : > { %4204 = vrot.lane.b32.xlu2 %v4160_v34, %s5860_s22  ;;  %v4449_v34 = vmul.f32 %v9186_v41, %v10442_v29 }
 0x5b1   : > { %v4101_v39 = vpop.permute.xlu0 %4100  ;;  %v4197_v50 = vpop.permute.xlu1 %4196 }
 0x5b2   : > { %v4140_v11 = vadd.f32 %v4101_v39, %v4044_v47  ;;  %v3911_v52 = vpop.permute.xlu2 %3910  ;;  %v10443_v47 = vld [vmem:[#allocation130_spill] sm:$0xff] }
 0x5b3   : > { %v3949_v31 = vadd.f32 %v3911_v52, %v3840_v32  ;;  %v4353_v39 = vmul.f32 %v9186_v41, %v10443_v47 }
 0x5b4   : > { %v4236_v21 = vadd.f32 %v4197_v50, %v4140_v11 }
 0x5b6   : > { %v4332_v2 = vadd.f32 %v4293_v3, %v4236_v21  ;;  %v9219_v21 = vpop.f32.mrf.mxu3 }
 0x5b7   : > { %4684 = vrot.lane.b32.xlu1 %v4640_v22, %s5861_s25  ;;  %4588 = vrot.lane.b32.xlu0 %v4544_v37, %s5862_s26  ;;  %v10444_v37 = vld [vmem:[#allocation54_spill] sm:$0xff]  ;;  %v3970_v10 = vmul.f32 %v9219_v21, %v10449_v62  ;;  %v4450_v58 = vmul.f32 %v9219_v21, %v10310_v49 }
 0x5b8   : > { %4492 = vrot.lane.b32.xlu2 %v4448_v19, %s5863_s27  ;;  %v4066_v35 = vmul.f32 %v9219_v21, %v10444_v37  ;;  %v10445_v19 = vld [vmem:[#allocation58_spill] sm:$0xff] }
 0x5b9   : > { %v4389_v33 = vpop.permute.xlu0 %4388  ;;  %v4485_v63 = vpop.permute.xlu1 %4484 }
 0x5ba   : > { %v4428_v51 = vadd.f32 %v4389_v33, %v4332_v2  ;;  %v4199_v9 = vpop.permute.xlu2 %4198  ;;  %v3874_v2 = vmul.f32 %v9219_v21, %v10445_v19  ;;  %v4641_v33 = vmul.f32 %v9186_v41, %v10301_v16 }
 0x5bc   : > { %v4524_v28 = vadd.f32 %v4485_v63, %v4428_v51 }
 0x5be   : > { %v4620_v24 = vadd.f32 %v4581_v17, %v4524_v28 }
 0x5bf   : > { %4014 = vrot.lane.b32.xlu1 %v3969_v20, %s5856_s17  ;;  %3918 = vrot.lane.b32.xlu0 %v3873_v8, %s5857_s18  ;;  %v10446_v20 = vld [vmem:[#allocation28_spill] sm:$0xff] }
 0x5c0   : > { %4780 = vrot.lane.b32.xlu2 %v4736_v48, %s5864_s28  ;;  %v3786_v38 = vmul.f32 %v9078_v42, %v10446_v20  ;;  %v10447_v48 = vld [vmem:[#allocation122_spill] sm:$0xff] }
 0x5c1   : > { %v4677_v3 = vpop.permute.xlu0 %4676  ;;  %v4773_v46 = vpop.permute.xlu1 %4772  ;;  %v4354_v16 = vmul.f32 %v9219_v21, %v10447_v48 }
 0x5c2   : > { %v4716_v40 = vadd.f32 %v4677_v3, %v4620_v24  ;;  %v4487_v5 = vpop.permute.xlu2 %4486  ;;  %v10448_v24 = vld [vmem:[#allocation99_spill] sm:$0xff] }
 0x5c3   : > { %v4162_v3 = vmul.f32 %v9219_v21, %v10448_v24  ;;  %v10456_v24 = vld [vmem:[#allocation120_spill] sm:$0xff] }
 0x5c4   : > { %v4812_v12 = vadd.f32 %v4773_v46, %v4716_v40  ;;  %v3843_v40 = vadd.f32 %v3842_v27, %v3786_v38 }
 0x5c6   : > { %4829 = vst.msk [vmem:[%s8906_s8 + $0x40] sm:$0xff] %vm4820_vm4, %v4812_v12 }
 0x5c7   : > { %4302 = vrot.lane.b32.xlu1 %v4257_v44, %s5859_s21  ;;  %4206 = vrot.lane.b32.xlu0 %v4161_v14, %s5860_s22  ;;  %v4642_v44 = vmul.f32 %v9219_v21, %v10322_v57  ;;  %v10450_v14 = vld [vmem:[#allocation103_spill] sm:$0xff] }
 0x5c8   : > { %4110 = vrot.lane.b32.xlu2 %v4065_v25, %s5855_s16  ;;  %v4258_v32 = vmul.f32 %v9219_v21, %v10450_v14 }
 0x5c9   : > { %v4103_v0 = vpop.permute.xlu1 %4102  ;;  %v4007_v17 = vpop.permute.xlu0 %4006 }
 0x5ca   : > { %v4045_v36 = vadd.f32 %v4007_v17, %v3949_v31  ;;  %v4775_v18 = vpop.permute.xlu2 %4774 }
 0x5cc   : > { %v4141_v4 = vadd.f32 %v4103_v0, %v4045_v36  ;;  %v9252_v0 = vpop.f32.mrf.mxu3 }
 0x5ce   : > { %v4237_v50 = vadd.f32 %v4199_v9, %v4141_v4  ;;  %v10452_v4 = vld [vmem:[#allocation76_spill] sm:$0xff] }
 0x5cf   : > { %4590 = vrot.lane.b32.xlu1 %v4545_v56, %s5862_s26  ;;  %4494 = vrot.lane.b32.xlu0 %v4449_v34, %s5863_s27  ;;  %v3971_v15 = vmul.f32 %v9252_v0, %v10452_v4  ;;  %v4546_v56 = vmul.f32 %v9219_v21, %v10316_v26  ;;  %v10453_v26 = vld [vmem:[#allocation19_spill] sm:$0xff] }
 0x5d0   : > { %4398 = vrot.lane.b32.xlu2 %v4353_v39, %s5858_s19 }
 0x5d1   : > { %v4391_v11 = vpop.permute.xlu1 %4390  ;;  %v4295_v52 = vpop.permute.xlu0 %4294 }
 0x5d2   : > { %v4333_v43 = vadd.f32 %v4295_v52, %v4237_v50  ;;  %v4105_v22 = vpop.permute.xlu2 %4104  ;;  %v4355_v52 = vmul.f32 %v9252_v0, %v10317_v54 }
 0x5d4   : > { %v4429_v53 = vadd.f32 %v4391_v11, %v4333_v43  ;;  %v4259_v43 = vmul.f32 %v9252_v0, %v10314_v59 }
 0x5d6   : > { %v4525_v63 = vadd.f32 %v4487_v5, %v4429_v53  ;;  %v10454_v53 = vld [vmem:[#allocation44_spill] sm:$0xff] }
 0x5d7   : > { %4112 = vrot.lane.b32.xlu0 %v4066_v35, %s5855_s16  ;;  %3920 = vrot.lane.b32.xlu1 %v3874_v2, %s5857_s18  ;;  %v3875_v37 = vmul.f32 %v9252_v0, %v10454_v53  ;;  %v3845_v35 = vpop.f32.mrf.mxu0 }
 0x5d8   : > { %4686 = vrot.lane.b32.xlu2 %v4641_v33, %s5861_s25 }
 0x5d9   : > { %v4679_v51 = vpop.permute.xlu1 %4678  ;;  %v4583_v9 = vpop.permute.xlu0 %4582 }
 0x5da   : > { %v4621_v28 = vadd.f32 %v4583_v9, %v4525_v63  ;;  %v4393_v60 = vpop.permute.xlu2 %4392  ;;  %v4547_v9 = vmul.f32 %v9252_v0, %v10323_v55  ;;  %v4737_v55 = vmul.f32 %v9186_v41, %v10456_v24 }
 0x5dc   : > { %v4717_v8 = vadd.f32 %v4679_v51, %v4621_v28  ;;  %v10455_v28 = vld [vmem:[#allocation47_spill] sm:$0xff] }
 0x5de   : > { %v4813_v46 = vadd.f32 %v4775_v18, %v4717_v8  ;;  %v10451_v18 = vld [vmem:[#allocation31_spill] sm:$0xff] }
 0x5df   : > { %4400 = vrot.lane.b32.xlu0 %v4354_v16, %s5858_s19  ;;  %4208 = vrot.lane.b32.xlu1 %v4162_v3, %s5860_s22  ;;  %v4067_v49 = vmul.f32 %v9252_v0, %v10451_v18  ;;  %v10457_v3 = vld [vmem:[#allocation176_spill] sm:$0xff] }
 0x5e0   : > { %4830 = vst.msk [vmem:[%s8906_s8 + $0x48] sm:$0xff] %vm4820_vm4, %v4813_v46  ;;  %4016 = vrot.lane.b32.xlu2 %v3970_v10, %s5856_s17  ;;  %v4451_v46 = vmul.f32 %v9252_v0, %v10457_v3 }
 0x5e1   : > { %v4009_v42 = vpop.permute.xlu1 %4008  ;;  %v3913_v5 = vpop.permute.xlu0 %3912 }
 0x5e2   : > { %v4681_v7 = vpop.permute.xlu2 %4680  ;;  %v3950_v12 = vadd.f32 %v3913_v5, %v3843_v40 }
 0x5e4   : > { %v4046_v6 = vadd.f32 %v4009_v42, %v3950_v12 }
 0x5e6   : > { %v4142_v1 = vadd.f32 %v4105_v22, %v4046_v6  ;;  %v3787_v22 = vmul.f32 %v9111_v30, %v10453_v26  ;;  %v4643_v30 = vmul.f32 %v9252_v0, %v10325_v61  ;;  %v4738_v61 = vmul.f32 %v9219_v21, %v10324_v23 }
 0x5e7   : > { %4688 = vrot.lane.b32.xlu0 %v4642_v44, %s5861_s25  ;;  %4496 = vrot.lane.b32.xlu1 %v4450_v58, %s5863_s27  ;;  %v4739_v23 = vmul.f32 %v9252_v0, %v10326_v45  ;;  %v10458_v58 = vld [vmem:[#allocation34_spill] sm:$0xff] }
 0x5e8   : > { %4304 = vrot.lane.b32.xlu2 %v4258_v32, %s5859_s21  ;;  %v3846_v54 = vadd.f32 %v3845_v35, %v3787_v22  ;;  %v3788_v14 = vmul.f32 %v9153_v13, %v10458_v58 }
 0x5e9   : > { %v4297_v25 = vpop.permute.xlu1 %4296  ;;  %v4201_v31 = vpop.permute.xlu0 %4200 }
 0x5ea   : > { %v4238_v17 = vadd.f32 %v4201_v31, %v4142_v1  ;;  %v4011_v36 = vpop.permute.xlu2 %4010 }
 0x5ec   : > { %v4334_v57 = vadd.f32 %v4297_v25, %v4238_v17  ;;  %v3848_v25 = vpop.f32.mrf.mxu0 }
 0x5ed   : > { %v3849_v17 = vadd.f32 %v3848_v25, %v3788_v14 }
 0x5ee   : > { %v4430_v29 = vadd.f32 %v4393_v60, %v4334_v57  ;;  %v4163_v60 = vmul.f32 %v9252_v0, %v10455_v28 }
 0x5ef   : > { %4114 = vrot.lane.b32.xlu1 %v4067_v49, %s5855_s16  ;;  %4018 = vrot.lane.b32.xlu0 %v3971_v15, %s5856_s17 }
 0x5f0   : > { %4592 = vrot.lane.b32.xlu2 %v4546_v56, %s5862_s26 }
 0x5f1   : > { %v4585_v34 = vpop.permute.xlu1 %4584  ;;  %v4489_v47 = vpop.permute.xlu0 %4488 }
 0x5f2   : > { %v4526_v39 = vadd.f32 %v4489_v47, %v4430_v29  ;;  %v4299_v50 = vpop.permute.xlu2 %4298 }
 0x5f4   : > { %v4622_v11 = vadd.f32 %v4585_v34, %v4526_v39 }
 0x5f6   : > { %v4718_v19 = vadd.f32 %v4681_v7, %v4622_v11 }
 0x5f7   : > { %4402 = vrot.lane.b32.xlu1 %v4355_v52, %s5858_s19  ;;  %4306 = vrot.lane.b32.xlu0 %v4259_v43, %s5859_s21 }
 0x5f8   : > { %3922 = vrot.lane.b32.xlu2 %v3875_v37, %s5857_s18 }
 0x5f9   : > { %v4777_v2 = vpop.permute.xlu0 %4776  ;;  %v3915_v33 = vpop.permute.xlu1 %3914 }
 0x5fa   : > { %v4814_v63 = vadd.f32 %v4777_v2, %v4718_v19  ;;  %v4587_v51 = vpop.permute.xlu2 %4586  ;;  %v3951_v59 = vadd.f32 %v3915_v33, %v3846_v54 }
 0x5fc   : > { %4831 = vst.msk [vmem:[%s8906_s8 + $0x50] sm:$0xff] %vm4820_vm4, %v4814_v63  ;;  %v4047_v20 = vadd.f32 %v4011_v36, %v3951_v59  ;;  %v3851_v59 = vpop.f32.mrf.mxu0 }
 0x5ff   : > { %4690 = vrot.lane.b32.xlu1 %v4643_v30, %s5861_s25  ;;  %4594 = vrot.lane.b32.xlu0 %v4547_v9, %s5862_s26 }
 0x600   : > { %4210 = vrot.lane.b32.xlu2 %v4163_v60, %s5860_s22 }
 0x601   : > { %v4107_v38 = vpop.permute.xlu0 %4106  ;;  %v4203_v8 = vpop.permute.xlu1 %4202 }
 0x602   : > { %v4143_v27 = vadd.f32 %v4107_v38, %v4047_v20  ;;  %v3917_v48 = vpop.permute.xlu2 %3916 }
 0x603   : > { %v3952_v36 = vadd.f32 %v3917_v48, %v3849_v17  ;;  %v10460_v48 = vld [vmem:[#allocation22_spill] sm:$0xff] }
 0x604   : > { %v4239_v16 = vadd.f32 %v4203_v8, %v4143_v27  ;;  %v3854_v60 = vpop.f32.mrf.mxu0  ;;  %v10459_v8 = vld [vmem:[#allocation32_spill] sm:$0xff] }
 0x605   : > { %v3789_v27 = vmul.f32 %v9186_v41, %v10459_v8 }
 0x606   : > { %v4335_v62 = vadd.f32 %v4299_v50, %v4239_v16  ;;  %v3790_v16 = vmul.f32 %v9219_v21, %v10460_v48 }
 0x607   : > { %4784 = vrot.lane.b32.xlu1 %v4738_v61, %s5864_s28  ;;  %4782 = vrot.lane.b32.xlu0 %v4737_v55, %s5864_s28  ;;  %v3852_v3 = vadd.f32 %v3851_v59, %v3789_v27 }
 0x608   : > { %4498 = vrot.lane.b32.xlu2 %v4451_v46, %s5863_s27  ;;  %v3855_v46 = vadd.f32 %v3854_v60, %v3790_v16 }
 0x609   : > { %v4395_v10 = vpop.permute.xlu0 %4394  ;;  %v4491_v40 = vpop.permute.xlu1 %4490 }
 0x60a   : > { %v4431_v42 = vadd.f32 %v4395_v10, %v4335_v62  ;;  %v4205_v5 = vpop.permute.xlu2 %4204  ;;  %v10461_v62 = vld [vmem:[#allocation38_spill] sm:$0xff] }
 0x60b   : > { %v3791_v10 = vmul.f32 %v9252_v0, %v10461_v62 }
 0x60c   : > { %v4527_v7 = vadd.f32 %v4491_v40, %v4431_v42  ;;  %v3857_v40 = vpop.f32.mrf.mxu0 }
 0x60e   : > { %v4623_v12 = vadd.f32 %v4587_v51, %v4527_v7  ;;  %v3858_v7 = vadd.f32 %v3857_v40, %v3791_v10 }
 0x610   : > { %4786 = vrot.lane.b32.xlu2 %v4739_v23, %s5864_s28 }
 0x611   : > { %v4683_v6 = vpop.permute.xlu0 %4682  ;;  %v4779_v44 = vpop.permute.xlu1 %4778 }
 0x612   : > { %v4719_v32 = vadd.f32 %v4683_v6, %v4623_v12  ;;  %v4493_v1 = vpop.permute.xlu2 %4492 }
 0x614   : > { %v4815_v31 = vadd.f32 %v4779_v44, %v4719_v32 }
 0x616   : > { %4832 = vst.msk [vmem:[%s8906_s8 + $0x58] sm:$0xff] %vm4820_vm4, %v4815_v31 }
 0x619   : > { %v4109_v57 = vpop.permute.xlu1 %4108  ;;  %v4013_v18 = vpop.permute.xlu0 %4012 }
 0x61a   : > { %v4048_v49 = vadd.f32 %v4013_v18, %v3952_v36  ;;  %v4781_v45 = vpop.permute.xlu2 %4780 }
 0x61c   : > { %v4144_v4 = vadd.f32 %v4109_v57, %v4048_v49 }
 0x61e   : > { %v4240_v15 = vadd.f32 %v4205_v5, %v4144_v4 }
 0x621   : > { %v4397_v56 = vpop.permute.xlu1 %4396  ;;  %v4301_v29 = vpop.permute.xlu0 %4300 }
 0x622   : > { %v4336_v34 = vadd.f32 %v4301_v29, %v4240_v15  ;;  %v4111_v47 = vpop.permute.xlu2 %4110 }
 0x624   : > { %v4432_v13 = vadd.f32 %v4397_v56, %v4336_v34 }
 0x626   : > { %v4528_v39 = vadd.f32 %v4493_v1, %v4432_v13 }
 0x629   : > { %v4685_v50 = vpop.permute.xlu1 %4684  ;;  %v4589_v11 = vpop.permute.xlu0 %4588 }
 0x62a   : > { %v4624_v52 = vadd.f32 %v4589_v11, %v4528_v39  ;;  %v4399_v43 = vpop.permute.xlu2 %4398 }
 0x62c   : > { %v4720_v26 = vadd.f32 %v4685_v50, %v4624_v52 }
 0x62e   : > { %v4816_v22 = vadd.f32 %v4781_v45, %v4720_v26 }
 0x630   : > { %4833 = vst.msk [vmem:[%s8906_s8 + $0x60] sm:$0xff] %vm4820_vm4, %v4816_v22 }
 0x631   : > { %v4015_v53 = vpop.permute.xlu1 %4014  ;;  %v3919_v37 = vpop.permute.xlu0 %3918 }
 0x632   : > { %v4687_v35 = vpop.permute.xlu2 %4686  ;;  %v3953_v42 = vadd.f32 %v3919_v37, %v3852_v3 }
 0x634   : > { %v4049_v23 = vadd.f32 %v4015_v53, %v3953_v42 }
 0x636   : > { %v4145_v21 = vadd.f32 %v4111_v47, %v4049_v23 }
 0x639   : > { %v4303_v19 = vpop.permute.xlu1 %4302  ;;  %v4207_v2 = vpop.permute.xlu0 %4206 }
 0x63a   : > { %v4017_v33 = vpop.permute.xlu2 %4016  ;;  %v4241_v25 = vadd.f32 %v4207_v2, %v4145_v21 }
 0x63c   : > { %v4337_v0 = vadd.f32 %v4303_v19, %v4241_v25 }
 0x63e   : > { %v4433_v15 = vadd.f32 %v4399_v43, %v4337_v0 }
 0x641   : > { %v4591_v54 = vpop.permute.xlu1 %4590  ;;  %v4495_v63 = vpop.permute.xlu0 %4494 }
 0x642   : > { %v4305_v51 = vpop.permute.xlu2 %4304  ;;  %v4529_v29 = vadd.f32 %v4495_v63, %v4433_v15 }
 0x644   : > { %v4625_v11 = vadd.f32 %v4591_v54, %v4529_v29 }
 0x646   : > { %v4721_v19 = vadd.f32 %v4687_v35, %v4625_v11 }
 0x649   : > { %v4113_v30 = vpop.permute.xlu0 %4112  ;;  %v3921_v9 = vpop.permute.xlu1 %3920 }
 0x64a   : > { %v4593_v28 = vpop.permute.xlu2 %4592  ;;  %v3954_v5 = vadd.f32 %v3921_v9, %v3855_v46 }
 0x64c   : > { %v4050_v12 = vadd.f32 %v4017_v33, %v3954_v5 }
 0x64e   : > { %v4146_v32 = vadd.f32 %v4113_v30, %v4050_v12 }
 0x651   : > { %v4401_v20 = vpop.permute.xlu0 %4400  ;;  %v4209_v38 = vpop.permute.xlu1 %4208 }
 0x652   : > { %v3923_v61 = vpop.permute.xlu2 %3922  ;;  %v4242_v31 = vadd.f32 %v4209_v38, %v4146_v32 }
 0x653   : > { %v3955_v6 = vadd.f32 %v3923_v61, %v3858_v7 }
 0x654   : > { %v4338_v18 = vadd.f32 %v4305_v51, %v4242_v31 }
 0x656   : > { %v4434_v56 = vadd.f32 %v4401_v20, %v4338_v18 }
 0x659   : > { %v4689_v24 = vpop.permute.xlu0 %4688  ;;  %v4497_v55 = vpop.permute.xlu1 %4496 }
 0x65a   : > { %v4211_v44 = vpop.permute.xlu2 %4210  ;;  %v4530_v34 = vadd.f32 %v4497_v55, %v4434_v56 }
 0x65c   : > { %v4626_v52 = vadd.f32 %v4593_v28, %v4530_v34 }
 0x65e   : > { %v4722_v37 = vadd.f32 %v4689_v24, %v4626_v52 }
 0x661   : > { %v4115_v41 = vpop.permute.xlu1 %4114  ;;  %v4019_v58 = vpop.permute.xlu0 %4018 }
 0x662   : > { %v4051_v14 = vadd.f32 %v4019_v58, %v3955_v6  ;;  %v4499_v45 = vpop.permute.xlu2 %4498 }
 0x664   : > { %v4147_v1 = vadd.f32 %v4115_v41, %v4051_v14 }
 0x666   : > { %v4243_v17 = vadd.f32 %v4211_v44, %v4147_v1 }
 0x669   : > { %v4403_v36 = vpop.permute.xlu1 %4402  ;;  %v4307_v57 = vpop.permute.xlu0 %4306 }
 0x66a   : > { %v4339_v49 = vadd.f32 %v4307_v57, %v4243_v17  ;;  %v4787_v22 = vpop.permute.xlu2 %4786 }
 0x66c   : > { %v4435_v4 = vadd.f32 %v4403_v36, %v4339_v49 }
 0x66e   : > { %v4531_v13 = vadd.f32 %v4499_v45, %v4435_v4 }
 0x671   : > { %v4691_v47 = vpop.permute.xlu1 %4690  ;;  %v4595_v39 = vpop.permute.xlu0 %4594 }
 0x672   : > { %v4627_v50 = vadd.f32 %v4595_v39, %v4531_v13 }
 0x674   : > { %v4723_v26 = vadd.f32 %v4691_v47, %v4627_v50 }
 0x676   : > { %v4819_v53 = vadd.f32 %v4787_v22, %v4723_v26 }
 0x678   : > { %4836 = vst.msk [vmem:[%s8906_s8 + $0x78] sm:$0xff] %vm4820_vm4, %v4819_v53 }
 0x679   : > { %v4785_v2 = vpop.permute.xlu1 %4784  ;;  %v4783_v43 = vpop.permute.xlu0 %4782 }
 0x67a   : > { %v4818_v33 = vadd.f32 %v4785_v2, %v4722_v37  ;;  %v4817_v63 = vadd.f32 %v4783_v43, %v4721_v19 }
 0x67c   : > { %4835 = vst.msk [vmem:[%s8906_s8 + $0x70] sm:$0xff] %vm4820_vm4, %v4818_v33 }
 0x67d   : > { %4834 = vst.msk [vmem:[%s8906_s8 + $0x68] sm:$0xff] %vm4820_vm4, %v4817_v63 }
 0x67e PF: > { %s19_s24 = sadd.s32 1, %s5836_s24  }
 0x67f   : > { %p16_p7 = scmp.ge.s32.totalorder %s19_s24, 4  }
 0x681   :  { %18 = sbr.rel (!%p16_p7) target bundleno = 2 (0x2), region = 90 }
 0x686   :  { %4859 = vsyncpa [#allocation3], 1 }
 0x687   :  { %4861 = vsyncpa [#allocation3 + $0x1], 1 }
 0x688   :  { %4862 = vsyncpa [#allocation5], 1 }

</bundles_post_ra>
